<compile_context>
chip_gen: v7x
topology: tpu7x:2x2x1
jax: 0.10.0
libtpu: 0.0.40
codegen_flags: <defaults>
</compile_context>

<pallas_src>
import functools

import jax
import jax.numpy as jnp
from jax.experimental import pallas as pl
from jax.experimental.pallas import tpu as pltpu


LANES = 128   # padded output-channel width -> lane-dense (128-wide) stores


# ----------------------------------------------------------------------------
# Pallas kernel: fused  out = [relu](A @ W + b)
#   bf16 MXU operands, f32 accumulation, f32 bias/ReLU epilogue.
# ----------------------------------------------------------------------------
def _matmul_bias_act_kernel(a_ref, w_ref, b_ref, o_ref, *, apply_relu):
    a = a_ref[...].astype(jnp.bfloat16)          # activations arrive as f32
    w = w_ref[...].astype(jnp.bfloat16)          # weights pre-packed as bf16
    acc = jnp.dot(a, w, preferred_element_type=jnp.float32)   # MXU, f32 acc
    acc = acc + b_ref[...]                       # (1, N) bias, broadcasts over M
    if apply_relu:
        acc = jnp.maximum(acc, 0.0)
    o_ref[...] = acc.astype(o_ref.dtype)


def _pick_row_tile(m):
    """Largest divisor of m that is a multiple of 8 and <= 128 (else m itself).

    Exact divisors avoid partial blocks; m <= 128 runs as a single block."""
    if m <= 128:
        return m
    best = None
    for tm in range(8, 129, 8):
        if m % tm == 0:
            best = tm
    return best if best is not None else m


def matmul_bias_act(a, w, b, *, apply_relu):
    """a: (M, K) f32, w: (K, N) bf16, b: (1, N) f32 -> (M, N) f32.

    Gridded over M with 'parallel' semantics (shards across v7x's 2 TCs and
    keeps per-block VMEM bounded as batch grows); K and N stay whole — N is
    always 128/512 here (lane-dense), K a multiple of 128."""
    M, K = a.shape
    K2, N = w.shape
    assert K == K2 and b.shape == (1, N)
    tm = _pick_row_tile(M)
    kernel = functools.partial(_matmul_bias_act_kernel, apply_relu=apply_relu)
    return pl.pallas_call(
        kernel,
        out_shape=jax.ShapeDtypeStruct((M, N), jnp.float32),
        grid=(M // tm,),
        in_specs=[
            pl.BlockSpec((tm, K), lambda i: (i, 0)),
            pl.BlockSpec((K, N), lambda i: (0, 0)),   # weights resident across grid
            pl.BlockSpec((1, N), lambda i: (0, 0)),
        ],
        out_specs=pl.BlockSpec((tm, N), lambda i: (i, 0)),
        compiler_params=pltpu.CompilerParams(
            dimension_semantics=("parallel",)),
    )(a, w, b)


# ----------------------------------------------------------------------------
# Pallas kernel: fused  fc2(relu(fc1(x) + b1)) + b2   (fully VMEM-resident)
# ----------------------------------------------------------------------------
def _fc_fused_kernel(x_ref, w1_ref, b1_ref, w2_ref, b2_ref, o_ref):
    x = x_ref[...].astype(jnp.bfloat16)
    h = jnp.dot(x, w1_ref[...].astype(jnp.bfloat16),
                preferred_element_type=jnp.float32)
    h = jnp.maximum(h + b1_ref[...], 0.0)                      # f32 epilogue
    y = jnp.dot(h.astype(jnp.bfloat16), w2_ref[...].astype(jnp.bfloat16),
                preferred_element_type=jnp.float32)
    o_ref[...] = (y + b2_ref[...]).astype(o_ref.dtype)


def fc_fused(x, w1, b1, w2, b2):
    """x: (B, K1) f32, w1: (K1, N1) bf16, w2: (N1, N2) bf16 -> (B, N2) f32."""
    B = x.shape[0]
    N2 = w2.shape[1]
    vmem = pl.BlockSpec(memory_space=pltpu.MemorySpace.VMEM)
    return pl.pallas_call(
        _fc_fused_kernel,
        out_shape=jax.ShapeDtypeStruct((B, N2), jnp.float32),
        in_specs=[vmem, vmem, vmem, vmem, vmem],
        out_specs=vmem,
    )(x, w1, b1, w2, b2)


# ----------------------------------------------------------------------------
# Conv2d (valid padding, square stride) + ReLU:
#   one XLA im2col op  +  one fused Pallas matmul kernel.
# ----------------------------------------------------------------------------
def conv2d_relu(x_nhwc, wm, bm, ksize, stride):
    """x_nhwc: (B, H, W, C) f32; wm: (C*k*k, 128) bf16; bm: (1, 128) f32.

    Returns the NHWC activation with 128 (zero-padded) output channels, f32."""
    B, H, W, C = x_nhwc.shape
    # TODO(synk): patch extraction is a single XLA op per conv; folding it into
    # the Pallas kernel (strided VMEM loads) would remove this HBM round-trip.
    patches = jax.lax.conv_general_dilated_patches(
        x_nhwc, (ksize, ksize), (stride, stride), "VALID",
        dimension_numbers=("NHWC", "HWIO", "NHWC"))    # (B, OH, OW, C*k*k)
    OH, OW = patches.shape[1], patches.shape[2]
    a = patches.reshape(B * OH * OW, C * ksize * ksize)  # leading-dim merge only
    y = matmul_bias_act(a, wm, bm, apply_relu=True)      # (B*OH*OW, 128)
    return y.reshape(B, OH, OW, LANES)


# ----------------------------------------------------------------------------
# DoomNN forward (online branch)
# ----------------------------------------------------------------------------
def doom_forward(x, packed, output_dim):
    """x: (B, C, H, W) float32 (PyTorch NCHW layout)."""
    B = x.shape[0]
    x = jnp.transpose(x, (0, 2, 3, 1))                          # one-time NCHW->NHWC
    x = conv2d_relu(x, packed["c1_w"], packed["c1_b"], 8, 4)    # (B, 14, 14, 128)
    x = conv2d_relu(x, packed["c2_w"], packed["c2_b"], 4, 2)    # (B,  6,  6, 128)
    x = conv2d_relu(x, packed["c3_w"], packed["c3_b"], 3, 1)    # (B,  4,  4, 128)
    f = x.reshape(B, -1)                                        # (B, 2048) (h,w,c_pad)
    y = fc_fused(f, packed["fc1_w"], packed["fc1_b"],
                 packed["fc2_w"], packed["fc2_b"])              # (B, 128)
    return y[:, :output_dim]


# ----------------------------------------------------------------------------
# One-time weight repacking (PyTorch layout -> TPU-friendly layout)
# ----------------------------------------------------------------------------
def pack_params(params, output_dim):
    """Pads output channels to 128 (lane-dense), pads conv input channels to
    match the padded activations, orders conv-weight rows as (c, kh, kw) to
    match conv_general_dilated_patches, pre-transposes FC weights to (in, out),
    permutes fc1 columns to consume the NHWC(128-padded) flatten, and casts
    all matmul weights to bf16 (biases stay f32)."""
    assert output_dim <= LANES

    def conv(wkey, bkey, cin_pad):
        w, b = params[wkey], params[bkey]
        OC, C, KH, KW = w.shape
        w = jnp.pad(w, ((0, LANES - OC), (0, cin_pad - C), (0, 0), (0, 0)))
        wm = w.reshape(LANES, cin_pad * KH * KW).T.astype(jnp.bfloat16)
        bm = jnp.pad(b, (0, LANES - OC)).reshape(1, LANES).astype(jnp.float32)
        return wm, bm

    c1_w, c1_b = conv("conv1_w", "conv1_b", params["conv1_w"].shape[1])
    c2_w, c2_b = conv("conv2_w", "conv2_b", LANES)
    c3_w, c3_b = conv("conv3_w", "conv3_b", LANES)

    # fc1: (512, 1024) with inputs in PyTorch (c, h, w) order (c < 64) ->
    # (2048, 512) with rows in (h, w, c_pad) order (zero rows for c_pad >= 64).
    w1 = params["fc1_w"].reshape(512, 64, 4, 4)          # (out, c, h, w)
    w1 = jnp.transpose(w1, (2, 3, 1, 0))                 # (h, w, c, out)
    w1 = jnp.pad(w1, ((0, 0), (0, 0), (0, LANES - 64), (0, 0)))
    fc1_w = w1.reshape(4 * 4 * LANES, 512).astype(jnp.bfloat16)
    fc1_b = params["fc1_b"].reshape(1, 512).astype(jnp.float32)

    fc2_w = jnp.pad(params["fc2_w"].T,
                    ((0, 0), (0, LANES - output_dim))).astype(jnp.bfloat16)
    fc2_b = jnp.pad(params["fc2_b"],
                    (0, LANES - output_dim)).reshape(1, LANES).astype(jnp.float32)

    return {"c1_w": c1_w, "c1_b": c1_b, "c2_w": c2_w, "c2_b": c2_b,
            "c3_w": c3_w, "c3_b": c3_b, "fc1_w": fc1_w, "fc1_b": fc1_b,
            "fc2_w": fc2_w, "fc2_b": fc2_b}


# ----------------------------------------------------------------------------
# Deterministic parameter init (shapes from DoomNN.__init__, PyTorch layout)
# ----------------------------------------------------------------------------
def init_params(key, c, output_dim):
    ks = jax.random.split(key, 10)

    def w_init(k, shape, fan_in):
        return (jax.random.normal(k, shape, jnp.float32)
                / jnp.sqrt(jnp.float32(fan_in)))

    def b_init(k, n):
        return 0.01 * jax.random.normal(k, (n,), jnp.float32)

    return {
        "conv1_w": w_init(ks[0], (32, c, 8, 8), c * 8 * 8),
        "conv1_b": b_init(ks[1], 32),
        "conv2_w": w_init(ks[2], (64, 32, 4, 4), 32 * 4 * 4),
        "conv2_b": b_init(ks[3], 64),
        "conv3_w": w_init(ks[4], (64, 64, 3, 3), 64 * 3 * 3),
        "conv3_b": b_init(ks[5], 64),
        "fc1_w":   w_init(ks[6], (512, 1024), 1024),   # (out, in) like PyTorch
        "fc1_b":   b_init(ks[7], 512),
        "fc2_w":   w_init(ks[8], (output_dim, 512), 512),
        "fc2_b":   b_init(ks[9], output_dim),
    }


# ----------------------------------------------------------------------------
# Pure-JAX f32 reference (lax.conv) for correctness check
# ----------------------------------------------------------------------------
def reference_forward(x, params):
    def conv(x, w, b, s):
        y = jax.lax.conv_general_dilated(
            x, w, window_strides=(s, s), padding="VALID",
            dimension_numbers=("NCHW", "OIHW", "NCHW"))
        return jnp.maximum(y + b.reshape(1, -1, 1, 1), 0.0)

    x = conv(x, params["conv1_w"], params["conv1_b"], 4)
    x = conv(x, params["conv2_w"], params["conv2_b"], 2)
    x = conv(x, params["conv3_w"], params["conv3_b"], 1)
    x = x.reshape(x.shape[0], -1)
    x = jnp.maximum(x @ params["fc1_w"].T + params["fc1_b"], 0.0)
    return x @ params["fc2_w"].T + params["fc2_b"]


if __name__ == "__main__":
    key = jax.random.PRNGKey(0)
    k_x, k_p = jax.random.split(key)

    # input_image = (4, 60, 60) => conv stack yields (64, 4, 4) => flatten 1024
    B, C, H, W = 2, 4, 60, 60
    output_dim = 8

    x = jax.random.normal(k_x, (B, C, H, W), jnp.float32)
    params = init_params(k_p, C, output_dim)
    packed = pack_params(params, output_dim)        # one-time weight repack

    fwd = jax.jit(functools.partial(doom_forward, output_dim=output_dim))
    out = jax.block_until_ready(fwd(x, packed))

    ref = reference_forward(x, params)
    assert out.shape == (B, output_dim), out.shape
    err = jnp.max(jnp.abs(out - ref))
    # bf16 MXU operands (with f32 accumulation) vs. an all-f32 reference ->
    # looser tolerance than the pure-f32 version.
    assert jnp.allclose(out, ref, rtol=1e-1, atol=5e-2), f"max abs err {err}"

    print("KERNEL_OK")
</pallas_src>

<mosaic_0001>
module attributes {stable_mosaic.version = 11 : i64} {
  func.func @_matmul_bias_act_kernel(%arg0: i32, %arg1: memref<56x256xf32, #tpu.memory_space<vmem>>, %arg2: memref<256x128xbf16, #tpu.memory_space<vmem>>, %arg3: memref<1x128xf32, #tpu.memory_space<vmem>>, %arg4: memref<56x128xf32, #tpu.memory_space<vmem>>) attributes {dimension_semantics = [#tpu.dimension_semantics<parallel>], iteration_bounds = array<i64: 7>, scalar_prefetch = 0 : i64, scratch_operands = 0 : i64, tpu.core_type = #tpu.core_type<tc>, window_params = [{transform_indices = @transform_0, window_bounds = array<i64: 56, 256>}, {pipeline_mode = #tpu.pipeline_mode<synchronous>, transform_indices = @transform_1, window_bounds = array<i64: 256, 128>}, {pipeline_mode = #tpu.pipeline_mode<synchronous>, transform_indices = @transform_2, window_bounds = array<i64: 1, 128>}, {transform_indices = @transform_3, window_bounds = array<i64: 56, 128>}]} {
    %c0 = arith.constant 0 : index
    %c0_0 = arith.constant 0 : index
    %0 = vector.load %arg1[%c0, %c0_0] : memref<56x256xf32, #tpu.memory_space<vmem>>, vector<56x256xf32>
    %1 = arith.truncf %0 : vector<56x256xf32> to vector<56x256xbf16>
    %c0_1 = arith.constant 0 : index
    %c0_2 = arith.constant 0 : index
    %2 = vector.load %arg2[%c0_1, %c0_2] : memref<256x128xbf16, #tpu.memory_space<vmem>>, vector<256x128xbf16>
    %cst = arith.constant dense<0.000000e+00> : vector<56x128xf32>
    %3 = tpu.matmul %1, %2, %cst {dimension_numbers = #tpu.dot_dimension_numbers<[1], [0], [0], [1], [0, 0, 1, 1], [], []>} : vector<56x256xbf16>, vector<256x128xbf16>, vector<56x128xf32> -> vector<56x128xf32>
    %c0_3 = arith.constant 0 : index
    %c0_4 = arith.constant 0 : index
    %4 = vector.load %arg3[%c0_3, %c0_4] : memref<1x128xf32, #tpu.memory_space<vmem>>, vector<1x128xf32>
    %5 = vector.broadcast %4 : vector<1x128xf32> to vector<56x128xf32>
    %6 = arith.addf %3, %5 : vector<56x128xf32>
    %cst_5 = arith.constant 0.000000e+00 : f32
    %7 = vector.broadcast %cst_5 : f32 to vector<56x128xf32>
    %8 = arith.maximumf %6, %7 : vector<56x128xf32>
    %c0_6 = arith.constant 0 : index
    %c0_7 = arith.constant 0 : index
    %9 = vector.load %arg4[%c0_6, %c0_7] : memref<56x128xf32, #tpu.memory_space<vmem>>, vector<56x128xf32>
    tpu.vector_store %arg4[%c0_6, %c0_7], %8 {strides = array<i32>} : memref<56x128xf32, #tpu.memory_space<vmem>>, vector<56x128xf32>,
    return
  }
  func.func @transform_0(%arg0: i32) -> (i32, i32) {
    %c0_i32 = arith.constant 0 : i32
    %c0_i32_0 = arith.constant 0 : i32
    return %arg0, %c0_i32 : i32, i32
  }
  func.func @transform_1(%arg0: i32) -> (i32, i32) {
    %c0_i32 = arith.constant 0 : i32
    %c0_i32_0 = arith.constant 0 : i32
    %c0_i32_1 = arith.constant 0 : i32
    return %c0_i32, %c0_i32_0 : i32, i32
  }
  func.func @transform_2(%arg0: i32) -> (i32, i32) {
    %c0_i32 = arith.constant 0 : i32
    %c0_i32_0 = arith.constant 0 : i32
    %c0_i32_1 = arith.constant 0 : i32
    return %c0_i32, %c0_i32_0 : i32, i32
  }
  func.func @transform_3(%arg0: i32) -> (i32, i32) {
    %c0_i32 = arith.constant 0 : i32
    %c0_i32_0 = arith.constant 0 : i32
    return %arg0, %c0_i32 : i32, i32
  }
}

module attributes {stable_mosaic.version = 11 : i64} {
  func.func @_matmul_bias_act_kernel(%arg0: i32, %arg1: memref<72x2048xf32, #tpu.memory_space<vmem>>, %arg2: memref<2048x128xbf16, #tpu.memory_space<vmem>>, %arg3: memref<1x128xf32, #tpu.memory_space<vmem>>, %arg4: memref<72x128xf32, #tpu.memory_space<vmem>>) attributes {dimension_semantics = [#tpu.dimension_semantics<parallel>], iteration_bounds = array<i64: 1>, scalar_prefetch = 0 : i64, scratch_operands = 0 : i64, tpu.core_type = #tpu.core_type<tc>, window_params = [{transform_indices = @transform_0, window_bounds = array<i64: 72, 2048>}, {pipeline_mode = #tpu.pipeline_mode<synchronous>, transform_indices = @transform_1, window_bounds = array<i64: 2048, 128>}, {pipeline_mode = #tpu.pipeline_mode<synchronous>, transform_indices = @transform_2, window_bounds = array<i64: 1, 128>}, {transform_indices = @transform_3, window_bounds = array<i64: 72, 128>}]} {
    %c0 = arith.constant 0 : index
    %c0_0 = arith.constant 0 : index
    %0 = vector.load %arg1[%c0, %c0_0] : memref<72x2048xf32, #tpu.memory_space<vmem>>, vector<72x2048xf32>
    %1 = arith.truncf %0 : vector<72x2048xf32> to vector<72x2048xbf16>
    %c0_1 = arith.constant 0 : index
    %c0_2 = arith.constant 0 : index
    %2 = vector.load %arg2[%c0_1, %c0_2] : memref<2048x128xbf16, #tpu.memory_space<vmem>>, vector<2048x128xbf16>
    %cst = arith.constant dense<0.000000e+00> : vector<72x128xf32>
    %3 = tpu.matmul %1, %2, %cst {dimension_numbers = #tpu.dot_dimension_numbers<[1], [0], [0], [1], [0, 0, 1, 1], [], []>} : vector<72x2048xbf16>, vector<2048x128xbf16>, vector<72x128xf32> -> vector<72x128xf32>
    %c0_3 = arith.constant 0 : index
    %c0_4 = arith.constant 0 : index
    %4 = vector.load %arg3[%c0_3, %c0_4] : memref<1x128xf32, #tpu.memory_space<vmem>>, vector<1x128xf32>
    %5 = vector.broadcast %4 : vector<1x128xf32> to vector<72x128xf32>
    %6 = arith.addf %3, %5 : vector<72x128xf32>
    %cst_5 = arith.constant 0.000000e+00 : f32
    %7 = vector.broadcast %cst_5 : f32 to vector<72x128xf32>
    %8 = arith.maximumf %6, %7 : vector<72x128xf32>
    %c0_6 = arith.constant 0 : index
    %c0_7 = arith.constant 0 : index
    %9 = vector.load %arg4[%c0_6, %c0_7] : memref<72x128xf32, #tpu.memory_space<vmem>>, vector<72x128xf32>
    tpu.vector_store %arg4[%c0_6, %c0_7], %8 {strides = array<i32>} : memref<72x128xf32, #tpu.memory_space<vmem>>, vector<72x128xf32>,
    return
  }
  func.func @transform_0(%arg0: i32) -> (i32, i32) {
    %c0_i32 = arith.constant 0 : i32
    %c0_i32_0 = arith.constant 0 : i32
    return %arg0, %c0_i32 : i32, i32
  }
  func.func @transform_1(%arg0: i32) -> (i32, i32) {
    %c0_i32 = arith.constant 0 : i32
    %c0_i32_0 = arith.constant 0 : i32
    %c0_i32_1 = arith.constant 0 : i32
    return %c0_i32, %c0_i32_0 : i32, i32
  }
  func.func @transform_2(%arg0: i32) -> (i32, i32) {
    %c0_i32 = arith.constant 0 : i32
    %c0_i32_0 = arith.constant 0 : i32
    %c0_i32_1 = arith.constant 0 : i32
    return %c0_i32, %c0_i32_0 : i32, i32
  }
  func.func @transform_3(%arg0: i32) -> (i32, i32) {
    %c0_i32 = arith.constant 0 : i32
    %c0_i32_0 = arith.constant 0 : i32
    return %arg0, %c0_i32 : i32, i32
  }
}

module attributes {stable_mosaic.version = 11 : i64} {
  func.func @_matmul_bias_act_kernel(%arg0: i32, %arg1: memref<32x1152xf32, #tpu.memory_space<vmem>>, %arg2: memref<1152x128xbf16, #tpu.memory_space<vmem>>, %arg3: memref<1x128xf32, #tpu.memory_space<vmem>>, %arg4: memref<32x128xf32, #tpu.memory_space<vmem>>) attributes {dimension_semantics = [#tpu.dimension_semantics<parallel>], iteration_bounds = array<i64: 1>, scalar_prefetch = 0 : i64, scratch_operands = 0 : i64, tpu.core_type = #tpu.core_type<tc>, window_params = [{transform_indices = @transform_0, window_bounds = array<i64: 32, 1152>}, {pipeline_mode = #tpu.pipeline_mode<synchronous>, transform_indices = @transform_1, window_bounds = array<i64: 1152, 128>}, {pipeline_mode = #tpu.pipeline_mode<synchronous>, transform_indices = @transform_2, window_bounds = array<i64: 1, 128>}, {transform_indices = @transform_3, window_bounds = array<i64: 32, 128>}]} {
    %c0 = arith.constant 0 : index
    %c0_0 = arith.constant 0 : index
    %0 = vector.load %arg1[%c0, %c0_0] : memref<32x1152xf32, #tpu.memory_space<vmem>>, vector<32x1152xf32>
    %1 = arith.truncf %0 : vector<32x1152xf32> to vector<32x1152xbf16>
    %c0_1 = arith.constant 0 : index
    %c0_2 = arith.constant 0 : index
    %2 = vector.load %arg2[%c0_1, %c0_2] : memref<1152x128xbf16, #tpu.memory_space<vmem>>, vector<1152x128xbf16>
    %cst = arith.constant dense<0.000000e+00> : vector<32x128xf32>
    %3 = tpu.matmul %1, %2, %cst {dimension_numbers = #tpu.dot_dimension_numbers<[1], [0], [0], [1], [0, 0, 1, 1], [], []>} : vector<32x1152xbf16>, vector<1152x128xbf16>, vector<32x128xf32> -> vector<32x128xf32>
    %c0_3 = arith.constant 0 : index
    %c0_4 = arith.constant 0 : index
    %4 = vector.load %arg3[%c0_3, %c0_4] : memref<1x128xf32, #tpu.memory_space<vmem>>, vector<1x128xf32>
    %5 = vector.broadcast %4 : vector<1x128xf32> to vector<32x128xf32>
    %6 = arith.addf %3, %5 : vector<32x128xf32>
    %cst_5 = arith.constant 0.000000e+00 : f32
    %7 = vector.broadcast %cst_5 : f32 to vector<32x128xf32>
    %8 = arith.maximumf %6, %7 : vector<32x128xf32>
    %c0_6 = arith.constant 0 : index
    %c0_7 = arith.constant 0 : index
    %9 = vector.load %arg4[%c0_6, %c0_7] : memref<32x128xf32, #tpu.memory_space<vmem>>, vector<32x128xf32>
    tpu.vector_store %arg4[%c0_6, %c0_7], %8 {strides = array<i32>} : memref<32x128xf32, #tpu.memory_space<vmem>>, vector<32x128xf32>,
    return
  }
  func.func @transform_0(%arg0: i32) -> (i32, i32) {
    %c0_i32 = arith.constant 0 : i32
    %c0_i32_0 = arith.constant 0 : i32
    return %arg0, %c0_i32 : i32, i32
  }
  func.func @transform_1(%arg0: i32) -> (i32, i32) {
    %c0_i32 = arith.constant 0 : i32
    %c0_i32_0 = arith.constant 0 : i32
    %c0_i32_1 = arith.constant 0 : i32
    return %c0_i32, %c0_i32_0 : i32, i32
  }
  func.func @transform_2(%arg0: i32) -> (i32, i32) {
    %c0_i32 = arith.constant 0 : i32
    %c0_i32_0 = arith.constant 0 : i32
    %c0_i32_1 = arith.constant 0 : i32
    return %c0_i32, %c0_i32_0 : i32, i32
  }
  func.func @transform_3(%arg0: i32) -> (i32, i32) {
    %c0_i32 = arith.constant 0 : i32
    %c0_i32_0 = arith.constant 0 : i32
    return %arg0, %c0_i32 : i32, i32
  }
}

module attributes {stable_mosaic.version = 11 : i64} {
  func.func @_fc_fused_kernel(%arg0: memref<2x2048xf32, #tpu.memory_space<vmem>>, %arg1: memref<2048x512xbf16, #tpu.memory_space<vmem>>, %arg2: memref<1x512xf32, #tpu.memory_space<vmem>>, %arg3: memref<512x128xbf16, #tpu.memory_space<vmem>>, %arg4: memref<1x128xf32, #tpu.memory_space<vmem>>, %arg5: memref<2x128xf32, #tpu.memory_space<vmem>>) attributes {dimension_semantics = [], scalar_prefetch = 0 : i64, scratch_operands = 0 : i64, tpu.core_type = #tpu.core_type<tc>} {
    %c0 = arith.constant 0 : index
    %c0_0 = arith.constant 0 : index
    %0 = vector.load %arg0[%c0, %c0_0] : memref<2x2048xf32, #tpu.memory_space<vmem>>, vector<2x2048xf32>
    %1 = arith.truncf %0 : vector<2x2048xf32> to vector<2x2048xbf16>
    %c0_1 = arith.constant 0 : index
    %c0_2 = arith.constant 0 : index
    %2 = vector.load %arg1[%c0_1, %c0_2] : memref<2048x512xbf16, #tpu.memory_space<vmem>>, vector<2048x512xbf16>
    %cst = arith.constant dense<0.000000e+00> : vector<2x512xf32>
    %3 = tpu.matmul %1, %2, %cst {dimension_numbers = #tpu.dot_dimension_numbers<[1], [0], [0], [1], [0, 0, 1, 1], [], []>} : vector<2x2048xbf16>, vector<2048x512xbf16>, vector<2x512xf32> -> vector<2x512xf32>
    %c0_3 = arith.constant 0 : index
    %c0_4 = arith.constant 0 : index
    %4 = vector.load %arg2[%c0_3, %c0_4] : memref<1x512xf32, #tpu.memory_space<vmem>>, vector<1x512xf32>
    %5 = vector.broadcast %4 : vector<1x512xf32> to vector<2x512xf32>
    %6 = arith.addf %3, %5 : vector<2x512xf32>
    %cst_5 = arith.constant 0.000000e+00 : f32
    %7 = vector.broadcast %cst_5 : f32 to vector<2x512xf32>
    %8 = arith.maximumf %6, %7 : vector<2x512xf32>
    %9 = arith.truncf %8 : vector<2x512xf32> to vector<2x512xbf16>
    %c0_6 = arith.constant 0 : index
    %c0_7 = arith.constant 0 : index
    %10 = vector.load %arg3[%c0_6, %c0_7] : memref<512x128xbf16, #tpu.memory_space<vmem>>, vector<512x128xbf16>
    %cst_8 = arith.constant dense<0.000000e+00> : vector<2x128xf32>
    %11 = tpu.matmul %9, %10, %cst_8 {dimension_numbers = #tpu.dot_dimension_numbers<[1], [0], [0], [1], [0, 0, 1, 1], [], []>} : vector<2x512xbf16>, vector<512x128xbf16>, vector<2x128xf32> -> vector<2x128xf32>
    %c0_9 = arith.constant 0 : index
    %c0_10 = arith.constant 0 : index
    %12 = vector.load %arg4[%c0_9, %c0_10] : memref<1x128xf32, #tpu.memory_space<vmem>>, vector<1x128xf32>
    %13 = vector.broadcast %12 : vector<1x128xf32> to vector<2x128xf32>
    %14 = arith.addf %11, %13 : vector<2x128xf32>
    %c0_11 = arith.constant 0 : index
    %c0_12 = arith.constant 0 : index
    %15 = vector.load %arg5[%c0_11, %c0_12] : memref<2x128xf32, #tpu.memory_space<vmem>>, vector<2x128xf32>
    tpu.vector_store %arg5[%c0_11, %c0_12], %14 {strides = array<i32>} : memref<2x128xf32, #tpu.memory_space<vmem>>, vector<2x128xf32>,
    return
  }
}

</mosaic_0001>

<bundles_post_ra>
// kernel: doom_forward.4
= control target key start
LH: loop header
LB: loop body
LE: loop exit
PB: predicated region body
PF: predicated region fallthrough
CT: control target
= control target key end

     0   :  { %s605_s12 = smov 0   ;;  %s693_s0 = inlined_call_operand.vmem [shape: f32[392,256], index: 0, kind: input, shape index: {}]   ;;  %s694_s1 = inlined_call_operand.vmem [shape: bf16[256,128], index: 1, kind: input, shape index: {}]   ;;  %s695_s2 = inlined_call_operand.vmem [shape: f32[1,128], index: 2, kind: input, shape index: {}]   ;;  %s696_s3 = inlined_call_operand.vmem [shape: f32[392,128], index: 3, kind: output, shape index: {}]  }
   0x1 LB: > { %s469_s13 = sadd.s32 4294967295, %s583_s12   ;;  %p473_p0 = scmp.ge.s32.totalorder %s583_s12, 1  ;;  %s583_s12 = sphi %s605_s12, %s13_s12  }
   0x2   : > { %p139_p1 = scmp.lt.s32.totalorder %s583_s12, 8 }
   0x4   : > { %p140_p2 = pnand %p473_p0, %p139_p1 }
   0x5   : > { %v561_v0 = vld [vmem:[%s694_s1 + $0x40] sm:$0xff] (!%p140_p2)   ;;  %s164_s16 = smul.u32 (!%p140_p2), 7, %s469_s13  ;;  %v563_v2 = vld [vmem:[%s694_s1 + $0x48] sm:$0xff] (!%p140_p2)   ;;  %v565_v4 = vld [vmem:[%s694_s1 + $0x50] sm:$0xff] (!%p140_p2)  }
   0x6   : > { %143 = sbr.rel (%p140_p2) target bundleno = 268 (0x10c), region = 32  ;;  %v562_v1 = vld [vmem:[%s694_s1] sm:$0xff] (!%p140_p2)   ;;  %497 = vmatprep.subr.bf16.mxu0 (!%p140_p2), %v561_v0  ;;  %537 = vmatprep.subr.bf16.mxu1 (!%p140_p2), %v561_v0  ;;  %v564_v3 = vld [vmem:[%s694_s1 + $0x8] sm:$0xff] (!%p140_p2)   ;;  %v566_v5 = vld [vmem:[%s694_s1 + $0x10] sm:$0xff] (!%p140_p2)  }
   0x7   : > { %p165_p3 = scmp.lt.s32.totalorder (!%p140_p2), %s164_s16, 48  ;;  %498 = vmatpush3.bf16.msra.mxu0 (!%p140_p2), %v562_v1  ;;  %545 = vmatpush3.bf16.msra.mxu1 (!%p140_p2), %v562_v1  ;;  %v567_v6 = vld [vmem:[%s694_s1 + $0x58] sm:$0xff] (!%p140_p2)   ;;  %v569_v8 = vld [vmem:[%s694_s1 + $0x60] sm:$0xff] (!%p140_p2)   ;;  %v571_v10 = vld [vmem:[%s694_s1 + $0x68] sm:$0xff] (!%p140_p2)  }
   0x8   : > { %499 = vmatprep.subr.bf16.mxu0 (!%p140_p2), %v563_v2  ;;  %538 = vmatprep.subr.bf16.mxu1 (!%p140_p2), %v563_v2  ;;  %v568_v7 = vld [vmem:[%s694_s1 + $0x18] sm:$0xff] (!%p140_p2)   ;;  %v570_v9 = vld [vmem:[%s694_s1 + $0x20] sm:$0xff] (!%p140_p2)   ;;  %v572_v17 = vld [vmem:[%s694_s1 + $0x28] sm:$0xff] (!%p140_p2)  }
   0x9   : > { %v573_v18 = vld [vmem:[%s694_s1 + $0x70] sm:$0xff] (!%p140_p2)   ;;  %v575_v20 = vld [vmem:[%s694_s1 + $0x78] sm:$0xff] (!%p140_p2)   ;;  %v477_v40 = vld [vmem:[%s695_s2] ss:$0 sm:$0xff] (!%p140_p2) }
   0xa   : > { %v574_v19 = vld [vmem:[%s694_s1 + $0x30] sm:$0xff] (!%p140_p2)   ;;  %v576_v21 = vld [vmem:[%s694_s1 + $0x38] sm:$0xff] (!%p140_p2)  }
   0xb   : > { %500 = vmatpush3.bf16.msra.mxu0 (!%p140_p2), %v564_v3  ;;  %546 = vmatpush3.bf16.msra.mxu1 (!%p140_p2), %v564_v3 }
   0xc   : > { %501 = vmatprep.subr.bf16.mxu0 (!%p140_p2), %v565_v4  ;;  %539 = vmatprep.subr.bf16.mxu1 (!%p140_p2), %v565_v4 }
   0xd   : > { %s698_s16 = smov (!%p165_p3, %s164_s16), 48 }
   0xe   : > { %s496_s29 = sshll.u32 %s698_s16, 4  ;;  %s476_s28 = sshll.u32 %s698_s16, 3 }
   0xf   : > { %502 = vmatpush3.bf16.msra.mxu0 %v566_v5  ;;  %547 = vmatpush3.bf16.msra.mxu1 %v566_v5  ;;  %s646_s9 = scalar_lea.vmem %s693_s0, %s496_s29  ;;  %s175_s4 = scalar_lea.vmem %s696_s3, %s476_s28 }
  0x10   : > { %503 = vmatprep.subr.bf16.mxu0 %v567_v6  ;;  %540 = vmatprep.subr.bf16.mxu1 %v567_v6  ;;  %v179_v11 = vld [vmem:[%s646_s9 + $0x8] sm:$0xff]  ;;  %v181_v12 = vld [vmem:[%s646_s9 + $0x18] sm:$0xff]  ;;  %v178_v22 = vld [vmem:[%s646_s9] sm:$0xff] }
  0x11   : > { %v187_v13 = vld [vmem:[%s646_s9 + $0x48] sm:$0xff]  ;;  %v193_v14 = vpack.c.bf16 %v181_v12, %v179_v11  ;;  %v189_v15 = vld [vmem:[%s646_s9 + $0x58] sm:$0xff]  ;;  %v180_v23 = vld [vmem:[%s646_s9 + $0x10] sm:$0xff] }
  0x12   : > { %v197_v16 = vpack.c.bf16 %v189_v15, %v187_v13  ;;  %v186_v24 = vld [vmem:[%s646_s9 + $0x40] sm:$0xff]  ;;  %v188_v25 = vld [vmem:[%s646_s9 + $0x50] sm:$0xff]  ;;  %v183_v26 = vld [vmem:[%s646_s9 + $0x28] sm:$0xff]  ;;  %v192_v29 = vpack.c.bf16 %v180_v23, %v178_v22 }
  0x13   : > { %504 = vmatpush3.bf16.msra.mxu0 %v568_v7  ;;  %548 = vmatpush3.bf16.msra.mxu1 %v568_v7  ;;  %v185_v27 = vld [vmem:[%s646_s9 + $0x38] sm:$0xff]  ;;  %v191_v28 = vld [vmem:[%s646_s9 + $0x68] sm:$0xff]  ;;  %v196_v30 = vpack.c.bf16 %v188_v25, %v186_v24  ;;  %v182_v33 = vld [vmem:[%s646_s9 + $0x20] sm:$0xff] }
  0x14   : > { %505 = vmatprep.subr.bf16.mxu0 %v569_v8  ;;  %541 = vmatprep.subr.bf16.mxu1 %v569_v8  ;;  %v195_v31 = vpack.c.bf16 %v185_v27, %v183_v26  ;;  %v199_v32 = vpack.c.bf16 %v191_v28, %v191_v28  ;;  %v184_v34 = vld [vmem:[%s646_s9 + $0x30] sm:$0xff]  ;;  %v190_v35 = vld [vmem:[%s646_s9 + $0x60] sm:$0xff] }
  0x15   : > { %367 = vmatprep.mubr.bf16.mxu0 %v193_v14  ;;  %383 = vmatprep.mubr.bf16.mxu1 %v197_v16  ;;  %v194_v36 = vpack.c.bf16 %v184_v34, %v182_v33  ;;  %v198_v37 = vpack.c.bf16 %v190_v35, %v190_v35 }
  0x17   : > { %506 = vmatpush3.bf16.msra.mxu0 %v570_v9  ;;  %549 = vmatpush3.bf16.msra.mxu1 %v570_v9 }
  0x18   : > { %507 = vmatprep.subr.bf16.mxu0 %v571_v10  ;;  %542 = vmatprep.subr.bf16.mxu1 %v571_v10 }
  0x1b   : > { %508 = vmatpush3.bf16.msra.mxu0 %v572_v17  ;;  %550 = vmatpush3.bf16.msra.mxu1 %v572_v17 }
  0x1c   : > { %509 = vmatprep.subr.bf16.mxu0 %v573_v18  ;;  %543 = vmatprep.subr.bf16.mxu1 %v573_v18 }
  0x1f   : > { %510 = vmatpush3.bf16.msra.mxu0 %v574_v19  ;;  %551 = vmatpush3.bf16.msra.mxu1 %v574_v19 }
  0x20   : > { %511 = vmatprep.subr.bf16.mxu0 %v575_v20  ;;  %544 = vmatprep.subr.bf16.mxu1 %v575_v20 }
  0x23   : > { %512 = vmatpush3.bf16.msra.mxu0 %v576_v21  ;;  %552 = vmatpush3.bf16.msra.mxu1 %v576_v21 }
  0x26   : > { %368 = vmatmul.mubr.bf16.vlgmr.msra.gmra.mrb[0].mxu0 %v192_v29  ;;  %384 = vmatmul.mubr.bf16.vlgmr.msra.gmra.mrb[0].mxu1 %v196_v30 }
  0x27   : > { %375 = vmatprep.mubr.bf16.mxu0 %v195_v31  ;;  %391 = vmatprep.mubr.bf16.mxu1 %v199_v32 }
  0x2e   : > { %376 = vmatmul.mubr.bf16.gmra.mrb[4].mxu0 %v194_v36  ;;  %392 = vmatmul.mubr.bf16.gmra.mrb[4].mxu1 %v198_v37 }
  0xf9   : > { %v513_v38 = vpop.f32.mrb[0].mxu0  ;;  %v525_v39 = vpop.f32.mrb[0].mxu1 }
  0xfa   : > { %v514_v41 = vpop.f32.mrb[1].mxu0  ;;  %v526_v42 = vpop.f32.mrb[1].mxu1 }
  0xfb   : > { %v515_v43 = vadd.f32 %v514_v41, %v513_v38  ;;  %v527_v44 = vadd.f32 %v526_v42, %v525_v39  ;;  %v516_v45 = vpop.f32.mrb[2].mxu0  ;;  %v528_v46 = vpop.f32.mrb[2].mxu1 }
  0xfc   : > { %v517_v47 = vpop.f32.mrb[3].mxu0  ;;  %v529_v48 = vpop.f32.mrb[3].mxu1 }
  0xfd   : > { %v370_v49 = vadd.f32 %v515_v43, %v477_v40  ;;  %v386_v50 = vadd.f32 %v527_v44, %v477_v40  ;;  %v518_v51 = vadd.f32 %v517_v47, %v516_v45  ;;  %v530_v52 = vadd.f32 %v529_v48, %v528_v46 }
  0xff   : > { %v399_v53 = vmax.f32 %v370_v49, 0.0  ;;  %v403_v54 = vmax.f32 %v386_v50, 0.0  ;;  %v373_v55 = vadd.f32 %v518_v51, %v477_v40  ;;  %v389_v56 = vadd.f32 %v530_v52, %v477_v40 }
 0x101   : > { %406 = vst [vmem:[%s175_s4] sm:$0xff] %v399_v53  ;;  %410 = vst [vmem:[%s175_s4 + $0x20] sm:$0xff] %v403_v54  ;;  %v400_v57 = vmax.f32 %v373_v55, 0.0  ;;  %v404_v58 = vmax.f32 %v389_v56, 0.0  ;;  %v519_v59 = vpop.f32.mrb[4].mxu0  ;;  %v531_v60 = vpop.f32.mrb[4].mxu1 }
 0x102   : > { %v520_v61 = vpop.f32.mrb[5].mxu0  ;;  %v532_v62 = vpop.f32.mrb[5].mxu1 }
 0x103   : > { %407 = vst [vmem:[%s175_s4 + $0x8] sm:$0xff] %v400_v57  ;;  %411 = vst [vmem:[%s175_s4 + $0x28] sm:$0xff] %v404_v58  ;;  %v521_v63 = vadd.f32 %v520_v61, %v519_v59  ;;  %v533_v0 = vadd.f32 %v532_v62, %v531_v60  ;;  %v522_v1 = vpop.f32.mrb[6].mxu0  ;;  %v534_v2 = vpop.f32.mrb[6].mxu1 }
 0x104   : > { %v523_v3 = vpop.f32.mrb[7].mxu0  ;;  %v535_v4 = vpop.f32.mrb[7].mxu1 }
 0x105   : > { %v378_v5 = vadd.f32 %v521_v63, %v477_v40  ;;  %v394_v6 = vadd.f32 %v533_v0, %v477_v40  ;;  %v524_v7 = vadd.f32 %v523_v3, %v522_v1 }
 0x107   : > { %v401_v8 = vmax.f32 %v378_v5, 0.0  ;;  %v405_v9 = vmax.f32 %v394_v6, 0.0  ;;  %v381_v10 = vadd.f32 %v524_v7, %v477_v40 }
 0x109   : > { %408 = vst [vmem:[%s175_s4 + $0x10] sm:$0xff] %v401_v8  ;;  %412 = vst [vmem:[%s175_s4 + $0x30] sm:$0xff] %v405_v9  ;;  %v402_v11 = vmax.f32 %v381_v10, 0.0 }
 0x10b   : > { %409 = vst [vmem:[%s175_s4 + $0x18] sm:$0xff] %v402_v11 }
 0x10c PF: > { %s13_s12 = sadd.s32 1, %s583_s12  }
 0x10d   : > { %p10_p4 = scmp.ge.s32.totalorder %s13_s12, 9  }
 0x10f   :  { %12 = sbr.rel (!%p10_p4) target bundleno = 1 (0x1), region = 62 }

// kernel: doom_forward.5
= control target key start
LH: loop header
LB: loop body
LE: loop exit
PB: predicated region body
PF: predicated region fallthrough
CT: control target
= control target key end

     0   :  { %s3451_s1 = inlined_call_operand.vmem [shape: bf16[2048,128], index: 1, kind: input, shape index: {}]   ;;  %s3452_s0 = inlined_call_operand.vmem [shape: f32[72,2048], index: 0, kind: input, shape index: {}]   ;;  %s3453_s2 = inlined_call_operand.vmem [shape: f32[1,128], index: 2, kind: input, shape index: {}]   ;;  %s3454_s3 = inlined_call_operand.vmem [shape: f32[72,128], index: 3, kind: output, shape index: {}]  }
   0x1   :  { %v2365_v0 = vld [vmem:[%s3451_s1 + $0x40] sm:$0xff]   ;;  %v2369_v4 = vld [vmem:[%s3451_s1 + $0x48] sm:$0xff]   ;;  %v2373_v8 = vld [vmem:[%s3451_s1 + $0x50] sm:$0xff]  }
   0x2   :  { %v2366_v1 = vld [vmem:[%s3451_s1 + $0xc0] sm:$0xff]   ;;  %1997 = vmatprep.subr.bf16.mxu0 %v2365_v0  ;;  %v2370_v5 = vld [vmem:[%s3451_s1 + $0xc8] sm:$0xff]   ;;  %v2374_v9 = vld [vmem:[%s3451_s1 + $0xd0] sm:$0xff]  }
   0x3   :  { %v2367_v2 = vld [vmem:[%s3451_s1] sm:$0xff]   ;;  %2043 = vmatprep.subr.bf16.mxu1 %v2366_v1  ;;  %v2371_v6 = vld [vmem:[%s3451_s1 + $0x8] sm:$0xff]   ;;  %v2375_v10 = vld [vmem:[%s3451_s1 + $0x10] sm:$0xff]  }
   0x4   :  { %v2368_v3 = vld [vmem:[%s3451_s1 + $0x80] sm:$0xff]   ;;  %1998 = vmatpush3.bf16.msra.mxu0 %v2367_v2  ;;  %v2372_v7 = vld [vmem:[%s3451_s1 + $0x88] sm:$0xff]   ;;  %v2376_v11 = vld [vmem:[%s3451_s1 + $0x90] sm:$0xff]  }
   0x5   :  { %2044 = vmatpush3.bf16.msra.mxu1 %v2368_v3  ;;  %1999 = vmatprep.subr.bf16.mxu0 %v2369_v4  ;;  %v2377_v12 = vld [vmem:[%s3451_s1 + $0x58] sm:$0xff]   ;;  %v2381_v16 = vld [vmem:[%s3451_s1 + $0x60] sm:$0xff]   ;;  %v2385_v20 = vld [vmem:[%s3451_s1 + $0x68] sm:$0xff]  }
   0x6   :  { %2045 = vmatprep.subr.bf16.mxu1 %v2370_v5  ;;  %v2378_v13 = vld [vmem:[%s3451_s1 + $0xd8] sm:$0xff]   ;;  %v2382_v17 = vld [vmem:[%s3451_s1 + $0xe0] sm:$0xff]   ;;  %v2386_v21 = vld [vmem:[%s3451_s1 + $0xe8] sm:$0xff]  }
   0x7   :  { %v2379_v14 = vld [vmem:[%s3451_s1 + $0x18] sm:$0xff]   ;;  %v2383_v18 = vld [vmem:[%s3451_s1 + $0x20] sm:$0xff]   ;;  %v2387_v22 = vld [vmem:[%s3451_s1 + $0x28] sm:$0xff]  }
   0x8   :  { %2000 = vmatpush3.bf16.msra.mxu0 %v2371_v6  ;;  %v2380_v15 = vld [vmem:[%s3451_s1 + $0x98] sm:$0xff]   ;;  %v2384_v19 = vld [vmem:[%s3451_s1 + $0xa0] sm:$0xff]   ;;  %v2388_v23 = vld [vmem:[%s3451_s1 + $0xa8] sm:$0xff]  }
   0x9   :  { %2046 = vmatpush3.bf16.msra.mxu1 %v2372_v7  ;;  %2001 = vmatprep.subr.bf16.mxu0 %v2373_v8  ;;  %v2389_v24 = vld [vmem:[%s3451_s1 + $0x70] sm:$0xff]   ;;  %v2393_v28 = vld [vmem:[%s3451_s1 + $0x78] sm:$0xff]   ;;  %v16_v32 = vld [vmem:[%s3452_s0 + $0x8] sm:$0xff] }
   0xa   :  { %2047 = vmatprep.subr.bf16.mxu1 %v2374_v9  ;;  %v2390_v25 = vld [vmem:[%s3451_s1 + $0xf0] sm:$0xff]   ;;  %v2394_v29 = vld [vmem:[%s3451_s1 + $0xf8] sm:$0xff]   ;;  %v32_v33 = vld [vmem:[%s3452_s0 + $0x88] sm:$0xff] }
   0xb   :  { %v2391_v26 = vld [vmem:[%s3451_s1 + $0x30] sm:$0xff]   ;;  %v2395_v30 = vld [vmem:[%s3451_s1 + $0x38] sm:$0xff]   ;;  %v160_v35 = vpack.c.bf16 %v32_v33, %v16_v32  ;;  %v15_v37 = vld [vmem:[%s3452_s0] sm:$0xff] }
   0xc   :  { %2002 = vmatpush3.bf16.msra.mxu0 %v2375_v10  ;;  %v2392_v27 = vld [vmem:[%s3451_s1 + $0xb0] sm:$0xff]   ;;  %v2396_v31 = vld [vmem:[%s3451_s1 + $0xb8] sm:$0xff]   ;;  %v31_v38 = vld [vmem:[%s3452_s0 + $0x80] sm:$0xff] }
   0xd   :  { %2048 = vmatpush3.bf16.msra.mxu1 %v2376_v11  ;;  %2003 = vmatprep.subr.bf16.mxu0 %v2377_v12  ;;  %v18_v34 = vld [vmem:[%s3452_s0 + $0x18] sm:$0xff]  ;;  %v159_v40 = vpack.c.bf16 %v31_v38, %v15_v37  ;;  %v17_v41 = vld [vmem:[%s3452_s0 + $0x10] sm:$0xff]  ;;  %v2397_v44 = vld [vmem:[%s3451_s1 + $0x140] sm:$0xff]  }
   0xe   :  { %2049 = vmatprep.subr.bf16.mxu1 %v2378_v13  ;;  %v34_v36 = vld [vmem:[%s3452_s0 + $0x98] sm:$0xff]  ;;  %v33_v42 = vld [vmem:[%s3452_s0 + $0x90] sm:$0xff]  ;;  %1302 = vmatprep.mubr.bf16.mxu0 %v160_v35  ;;  %v2398_v45 = vld [vmem:[%s3451_s1 + $0x100] sm:$0xff]  }
   0xf   :  { %v162_v39 = vpack.c.bf16 %v34_v36, %v18_v34  ;;  %v161_v43 = vpack.c.bf16 %v33_v42, %v17_v41  ;;  %v2399_v46 = vld [vmem:[%s3451_s1 + $0x1c0] sm:$0xff]   ;;  %v2401_v48 = vld [vmem:[%s3451_s1 + $0x148] sm:$0xff]   ;;  %v50_v52 = vld [vmem:[%s3452_s0 + $0x118] sm:$0xff] }
  0x10   :  { %2004 = vmatpush3.bf16.msra.mxu0 %v2379_v14  ;;  %v2400_v47 = vld [vmem:[%s3451_s1 + $0x180] sm:$0xff]   ;;  %v2402_v49 = vld [vmem:[%s3451_s1 + $0x108] sm:$0xff]   ;;  %v66_v53 = vld [vmem:[%s3452_s0 + $0x198] sm:$0xff] }
  0x11   :  { %2050 = vmatpush3.bf16.msra.mxu1 %v2380_v15  ;;  %2005 = vmatprep.subr.bf16.mxu0 %v2381_v16  ;;  %v48_v50 = vld [vmem:[%s3452_s0 + $0x108] sm:$0xff]  ;;  %v178_v55 = vpack.c.bf16 %v66_v53, %v50_v52  ;;  %v47_v57 = vld [vmem:[%s3452_s0 + $0x100] sm:$0xff]  ;;  %v49_v59 = vld [vmem:[%s3452_s0 + $0x110] sm:$0xff] }
  0x12   :  { %2051 = vmatprep.subr.bf16.mxu1 %v2382_v17  ;;  %1374 = vmatprep.mubr.bf16.mxu1 %v162_v39  ;;  %v64_v51 = vld [vmem:[%s3452_s0 + $0x188] sm:$0xff]  ;;  %v63_v58 = vld [vmem:[%s3452_s0 + $0x180] sm:$0xff]  ;;  %v65_v61 = vld [vmem:[%s3452_s0 + $0x190] sm:$0xff] }
  0x13   :  { %v176_v54 = vpack.c.bf16 %v64_v51, %v48_v50  ;;  %v2403_v56 = vld [vmem:[%s3451_s1 + $0x1c8] sm:$0xff]   ;;  %v175_v60 = vpack.c.bf16 %v63_v58, %v47_v57  ;;  %v177_v62 = vpack.c.bf16 %v65_v61, %v49_v59  ;;  %v2405_v0 = vld [vmem:[%s3451_s1 + $0x150] sm:$0xff]   ;;  %v82_v7 = vld [vmem:[%s3452_s0 + $0x218] sm:$0xff] }
  0x14   :  { %2006 = vmatpush3.bf16.msra.mxu0 %v2383_v18  ;;  %v2404_v63 = vld [vmem:[%s3451_s1 + $0x188] sm:$0xff]   ;;  %v2406_v1 = vld [vmem:[%s3451_s1 + $0x110] sm:$0xff]   ;;  %v98_v8 = vld [vmem:[%s3452_s0 + $0x298] sm:$0xff] }
  0x15   :  { %2052 = vmatpush3.bf16.msra.mxu1 %v2384_v19  ;;  %2007 = vmatprep.subr.bf16.mxu0 %v2385_v20  ;;  %v2407_v2 = vld [vmem:[%s3451_s1 + $0x1d0] sm:$0xff]   ;;  %v80_v4 = vld [vmem:[%s3452_s0 + $0x208] sm:$0xff]  ;;  %v194_v9 = vpack.c.bf16 %v98_v8, %v82_v7  ;;  %v2409_v10 = vld [vmem:[%s3451_s1 + $0x158] sm:$0xff]  }
  0x16   :  { %2053 = vmatprep.subr.bf16.mxu1 %v2386_v21  ;;  %v2408_v3 = vld [vmem:[%s3451_s1 + $0x190] sm:$0xff]   ;;  %v96_v5 = vld [vmem:[%s3452_s0 + $0x288] sm:$0xff]  ;;  %v79_v11 = vld [vmem:[%s3452_s0 + $0x200] sm:$0xff] }
  0x17   :  { %v192_v6 = vpack.c.bf16 %v96_v5, %v80_v4  ;;  %v95_v12 = vld [vmem:[%s3452_s0 + $0x280] sm:$0xff]  ;;  %v81_v13 = vld [vmem:[%s3452_s0 + $0x210] sm:$0xff]  ;;  %v2410_v17 = vld [vmem:[%s3451_s1 + $0x118] sm:$0xff]  }
  0x18   :  { %2008 = vmatpush3.bf16.msra.mxu0 %v2387_v22  ;;  %v97_v14 = vld [vmem:[%s3452_s0 + $0x290] sm:$0xff]  ;;  %v191_v15 = vpack.c.bf16 %v95_v12, %v79_v11  ;;  %v2411_v18 = vld [vmem:[%s3451_s1 + $0x1d8] sm:$0xff]   ;;  %v2413_v20 = vld [vmem:[%s3451_s1 + $0x160] sm:$0xff]  }
  0x19   :  { %2054 = vmatpush3.bf16.msra.mxu1 %v2388_v23  ;;  %2009 = vmatprep.subr.bf16.mxu0 %v2389_v24  ;;  %v193_v16 = vpack.c.bf16 %v97_v14, %v81_v13  ;;  %v2412_v19 = vld [vmem:[%s3451_s1 + $0x198] sm:$0xff]   ;;  %v2414_v21 = vld [vmem:[%s3451_s1 + $0x120] sm:$0xff]   ;;  %v112_v23 = vld [vmem:[%s3452_s0 + $0x308] sm:$0xff] }
  0x1a   :  { %2055 = vmatprep.subr.bf16.mxu1 %v2390_v25  ;;  %v2415_v22 = vld [vmem:[%s3451_s1 + $0x1e0] sm:$0xff]   ;;  %v128_v24 = vld [vmem:[%s3452_s0 + $0x388] sm:$0xff]  ;;  %v114_v25 = vld [vmem:[%s3452_s0 + $0x318] sm:$0xff] }
  0x1b   :  { %v113_v33 = vld [vmem:[%s3452_s0 + $0x310] sm:$0xff]  ;;  %v2417_v36 = vld [vmem:[%s3451_s1 + $0x168] sm:$0xff]   ;;  %v2425_v52 = vld [vmem:[%s3451_s1 + $0x178] sm:$0xff]  }
  0x1c   :  { %2010 = vmatpush3.bf16.msra.mxu0 %v2391_v26  ;;  %v208_v26 = vpack.c.bf16 %v128_v24, %v112_v23  ;;  %v129_v34 = vld [vmem:[%s3452_s0 + $0x390] sm:$0xff]  ;;  %v2418_v37 = vld [vmem:[%s3451_s1 + $0x128] sm:$0xff]   ;;  %v2426_v53 = vld [vmem:[%s3451_s1 + $0x138] sm:$0xff]  }
  0x1d   :  { %2056 = vmatpush3.bf16.msra.mxu1 %v2392_v27  ;;  %2011 = vmatprep.subr.bf16.mxu0 %v2393_v28  ;;  %v130_v27 = vld [vmem:[%s3452_s0 + $0x398] sm:$0xff]  ;;  %v209_v35 = vpack.c.bf16 %v129_v34, %v113_v33  ;;  %v2419_v38 = vld [vmem:[%s3451_s1 + $0x1e8] sm:$0xff]   ;;  %v2423_v50 = vld [vmem:[%s3451_s1 + $0x1f0] sm:$0xff]  }
  0x1e   :  { %2057 = vmatprep.subr.bf16.mxu1 %v2394_v29  ;;  %v210_v28 = vpack.c.bf16 %v130_v27, %v114_v25  ;;  %v2416_v29 = vld [vmem:[%s3451_s1 + $0x1a0] sm:$0xff]   ;;  %v2420_v39 = vld [vmem:[%s3451_s1 + $0x1a8] sm:$0xff]   ;;  %v2424_v51 = vld [vmem:[%s3451_s1 + $0x1b0] sm:$0xff]  }
  0x1f   :  { %v144_v41 = vld [vmem:[%s3452_s0 + $0x408] sm:$0xff]  ;;  %v22_v58 = vld [vmem:[%s3452_s0 + $0x38] sm:$0xff]  ;;  %v19_v61 = vld [vmem:[%s3452_s0 + $0x20] sm:$0xff] }
  0x20   :  { %2012 = vmatpush3.bf16.msra.mxu0 %v2395_v30  ;;  %v111_v30 = vld [vmem:[%s3452_s0 + $0x300] sm:$0xff]  ;;  %v224_v42 = vpack.c.bf16 %v144_v41, %v144_v41  ;;  %v36_v57 = vld [vmem:[%s3452_s0 + $0xa8] sm:$0xff]  ;;  %v54_v12 = vld [vmem:[%s3452_s0 + $0x138] sm:$0xff] }
  0x21   :  { %2058 = vmatpush3.bf16.msra.mxu1 %v2396_v31  ;;  %2089 = vmatprep.subr.bf16.mxu0 %v2397_v44  ;;  %v127_v31 = vld [vmem:[%s3452_s0 + $0x380] sm:$0xff]  ;;  %v2433_v8 = vld [vmem:[%s3451_s1 + $0x248] sm:$0xff]   ;;  %v70_v13 = vld [vmem:[%s3452_s0 + $0x1b8] sm:$0xff] }
  0x22   :  { %2135 = vmatprep.subr.bf16.mxu1 %v2399_v46  ;;  %v207_v32 = vpack.c.bf16 %v127_v31, %v111_v30  ;;  %v143_v46 = vld [vmem:[%s3452_s0 + $0x400] sm:$0xff]  ;;  %v68_v11 = vld [vmem:[%s3452_s0 + $0x1a8] sm:$0xff]  ;;  %v2437_v24 = vld [vmem:[%s3451_s1 + $0x250] sm:$0xff]  }
  0x23   :  { %1303 = vmatmul.mubr.bf16.vlgmr.msra.gmra.mrb[0].mxu0 %v159_v40  ;;  %v2421_v40 = vld [vmem:[%s3451_s1 + $0x170] sm:$0xff]   ;;  %v2429_v4 = vld [vmem:[%s3451_s1 + $0x240] sm:$0xff]   ;;  %v2436_v23 = vld [vmem:[%s3451_s1 + $0x288] sm:$0xff]  }
  0x24   :  { %1375 = vmatmul.mubr.bf16.vlgmr.msra.gmra.mrb[0].mxu1 %v161_v43  ;;  %2090 = vmatpush3.bf16.msra.mxu0 %v2398_v45  ;;  %v146_v43 = vld [vmem:[%s3452_s0 + $0x418] sm:$0xff]  ;;  %v2422_v45 = vld [vmem:[%s3451_s1 + $0x130] sm:$0xff]   ;;  %v2430_v5 = vld [vmem:[%s3451_s1 + $0x200] sm:$0xff]  }
  0x25   :  { %2136 = vmatpush3.bf16.msra.mxu1 %v2400_v47  ;;  %2091 = vmatprep.subr.bf16.mxu0 %v2401_v48  ;;  %v226_v44 = vpack.c.bf16 %v146_v43, %v146_v43  ;;  %v145_v47 = vld [vmem:[%s3452_s0 + $0x410] sm:$0xff]  ;;  %v223_v48 = vpack.c.bf16 %v143_v46, %v143_v46  ;;  %v2432_v7 = vld [vmem:[%s3451_s1 + $0x280] sm:$0xff]   ;;  %v86_v31 = vld [vmem:[%s3452_s0 + $0x238] sm:$0xff] }
  0x26   :  { %1310 = vmatprep.mubr.bf16.mxu0 %v176_v54  ;;  %1382 = vmatprep.mubr.bf16.mxu1 %v178_v55  ;;  %v2427_v54 = vld [vmem:[%s3451_s1 + $0x1f8] sm:$0xff]   ;;  %v2438_v25 = vld [vmem:[%s3451_s1 + $0x210] sm:$0xff]   ;;  %v2447_v46 = vld [vmem:[%s3451_s1 + $0x2e0] sm:$0xff]  }
  0x27   :  { %2137 = vmatprep.subr.bf16.mxu1 %v2403_v56  ;;  %v2428_v55 = vld [vmem:[%s3451_s1 + $0x1b8] sm:$0xff]   ;;  %v20_v56 = vld [vmem:[%s3452_s0 + $0x28] sm:$0xff]  ;;  %v2440_v27 = vld [vmem:[%s3451_s1 + $0x290] sm:$0xff]  }
  0x28   :  { %2092 = vmatpush3.bf16.msra.mxu0 %v2402_v49  ;;  %v225_v49 = vpack.c.bf16 %v145_v47, %v145_v47  ;;  %v164_v59 = vpack.c.bf16 %v36_v57, %v20_v56  ;;  %v2441_v34 = vld [vmem:[%s3451_s1 + $0x258] sm:$0xff]   ;;  %v116_v47 = vld [vmem:[%s3452_s0 + $0x328] sm:$0xff]  ;;  %v117_v57 = vld [vmem:[%s3452_s0 + $0x330] sm:$0xff] }
  0x29   :  { %2138 = vmatpush3.bf16.msra.mxu1 %v2404_v63  ;;  %2093 = vmatprep.subr.bf16.mxu0 %v2405_v0  ;;  %v2442_v41 = vld [vmem:[%s3451_s1 + $0x218] sm:$0xff]  }
  0x2a   :  { %2139 = vmatprep.subr.bf16.mxu1 %v2407_v2  ;;  %v37_v2 = vld [vmem:[%s3452_s0 + $0xb0] sm:$0xff]  ;;  %v2444_v43 = vld [vmem:[%s3451_s1 + $0x298] sm:$0xff]  }
  0x2b   :  { %1311 = vmatmul.mubr.bf16.gmra.mrb[4].mxu0 %v175_v60  ;;  %v38_v60 = vld [vmem:[%s3452_s0 + $0xb8] sm:$0xff] }
  0x2c   :  { %1383 = vmatmul.mubr.bf16.gmra.mrb[4].mxu1 %v177_v62  ;;  %2094 = vmatpush3.bf16.msra.mxu0 %v2406_v1  ;;  %v35_v62 = vld [vmem:[%s3452_s0 + $0xa0] sm:$0xff]  ;;  %v166_v63 = vpack.c.bf16 %v38_v60, %v22_v58  ;;  %v21_v1 = vld [vmem:[%s3452_s0 + $0x30] sm:$0xff]  ;;  %v2449_v60 = vld [vmem:[%s3451_s1 + $0x268] sm:$0xff]  }
  0x2d   :  { %2140 = vmatpush3.bf16.msra.mxu1 %v2408_v3  ;;  %1318 = vmatprep.mubr.bf16.mxu0 %v192_v6  ;;  %v163_v0 = vpack.c.bf16 %v35_v62, %v19_v61  ;;  %v165_v3 = vpack.c.bf16 %v37_v2, %v21_v1  ;;  %v2431_v6 = vld [vmem:[%s3451_s1 + $0x2c0] sm:$0xff]   ;;  %v133_v58 = vld [vmem:[%s3452_s0 + $0x3b0] sm:$0xff]  ;;  %v2450_v61 = vld [vmem:[%s3451_s1 + $0x228] sm:$0xff]  }
  0x2e   :  { %1390 = vmatprep.mubr.bf16.mxu1 %v194_v9  ;;  %2095 = vmatprep.subr.bf16.mxu0 %v2409_v10  ;;  %v2434_v9 = vld [vmem:[%s3451_s1 + $0x208] sm:$0xff]  }
  0x2f   :  { %2141 = vmatprep.subr.bf16.mxu1 %v2411_v18  ;;  %v52_v10 = vld [vmem:[%s3452_s0 + $0x128] sm:$0xff]  ;;  %v67_v18 = vld [vmem:[%s3452_s0 + $0x1a0] sm:$0xff] }
  0x30   :  { %2096 = vmatpush3.bf16.msra.mxu0 %v2410_v17  ;;  %v180_v14 = vpack.c.bf16 %v68_v11, %v52_v10  ;;  %v51_v17 = vld [vmem:[%s3452_s0 + $0x120] sm:$0xff]  ;;  %v2451_v62 = vld [vmem:[%s3451_s1 + $0x2e8] sm:$0xff]   ;;  %v2455_v10 = vld [vmem:[%s3451_s1 + $0x2f0] sm:$0xff]  }
  0x31   :  { %2142 = vmatpush3.bf16.msra.mxu1 %v2412_v19  ;;  %2097 = vmatprep.subr.bf16.mxu0 %v2413_v20  ;;  %v53_v19 = vld [vmem:[%s3452_s0 + $0x130] sm:$0xff]  ;;  %v179_v20 = vpack.c.bf16 %v67_v18, %v51_v17  ;;  %v148_v1 = vld [vmem:[%s3452_s0 + $0x428] sm:$0xff]  ;;  %v26_v18 = vld [vmem:[%s3452_s0 + $0x58] sm:$0xff] }
  0x32   :  { %2143 = vmatprep.subr.bf16.mxu1 %v2415_v22  ;;  %v228_v2 = vpack.c.bf16 %v148_v1, %v148_v1  ;;  %v2456_v11 = vld [vmem:[%s3451_s1 + $0x2b0] sm:$0xff]   ;;  %v40_v17 = vld [vmem:[%s3452_s0 + $0xc8] sm:$0xff]  ;;  %v2474_v1 = vld [vmem:[%s3451_s1 + $0x318] sm:$0xff]  }
  0x33   :  { %1319 = vmatmul.mubr.bf16.gmra.mrb[8].mxu0 %v191_v15  ;;  %v182_v15 = vpack.c.bf16 %v70_v13, %v54_v12  ;;  %v2457_v12 = vld [vmem:[%s3451_s1 + $0x278] sm:$0xff]  }
  0x34   :  { %1391 = vmatmul.mubr.bf16.gmra.mrb[8].mxu1 %v193_v16  ;;  %2098 = vmatpush3.bf16.msra.mxu0 %v2414_v21  ;;  %v2435_v16 = vld [vmem:[%s3451_s1 + $0x2c8] sm:$0xff]   ;;  %v69_v21 = vld [vmem:[%s3452_s0 + $0x1b0] sm:$0xff]  ;;  %v2458_v13 = vld [vmem:[%s3451_s1 + $0x238] sm:$0xff]  }
  0x35   :  { %1326 = vmatprep.mubr.bf16.mxu0 %v208_v26  ;;  %1398 = vmatprep.mubr.bf16.mxu1 %v210_v28  ;;  %v181_v22 = vpack.c.bf16 %v69_v21, %v53_v19  ;;  %v2439_v26 = vld [vmem:[%s3451_s1 + $0x2d0] sm:$0xff]   ;;  %v84_v28 = vld [vmem:[%s3452_s0 + $0x228] sm:$0xff]  ;;  %v23_v21 = vld [vmem:[%s3452_s0 + $0x40] sm:$0xff] }
  0x36   :  { %2144 = vmatpush3.bf16.msra.mxu1 %v2416_v29  ;;  %2099 = vmatprep.subr.bf16.mxu0 %v2417_v36  ;;  %v100_v29 = vld [vmem:[%s3452_s0 + $0x2a8] sm:$0xff]  ;;  %v99_v36 = vld [vmem:[%s3452_s0 + $0x2a0] sm:$0xff] }
  0x37   :  { %2145 = vmatprep.subr.bf16.mxu1 %v2419_v38  ;;  %v196_v30 = vpack.c.bf16 %v100_v29, %v84_v28  ;;  %v101_v38 = vld [vmem:[%s3452_s0 + $0x2b0] sm:$0xff]  ;;  %v2461_v28 = vld [vmem:[%s3451_s1 + $0x340] sm:$0xff]  }
  0x38   :  { %2100 = vmatpush3.bf16.msra.mxu0 %v2418_v37  ;;  %v85_v37 = vld [vmem:[%s3452_s0 + $0x230] sm:$0xff]  ;;  %v2462_v29 = vld [vmem:[%s3451_s1 + $0x300] sm:$0xff]  }
  0x39   :  { %2101 = vmatprep.subr.bf16.mxu0 %v2421_v40  ;;  %v197_v40 = vpack.c.bf16 %v101_v38, %v85_v37  ;;  %v74_v37 = vld [vmem:[%s3452_s0 + $0x1d8] sm:$0xff] }
  0x3a   :  { %2146 = vmatpush3.bf16.msra.mxu1 %v2420_v39 }
  0x3b   :  { %1327 = vmatmul.mubr.bf16.gmra.mrb[12].mxu0 %v207_v32  ;;  %2147 = vmatprep.subr.bf16.mxu1 %v2423_v50  ;;  %v102_v32 = vld [vmem:[%s3452_s0 + $0x2b8] sm:$0xff] }
  0x3c   :  { %1399 = vmatmul.mubr.bf16.gmra.mrb[12].mxu1 %v209_v35  ;;  %1334 = vmatprep.mubr.bf16.mxu0 %v224_v42  ;;  %v198_v33 = vpack.c.bf16 %v102_v32, %v86_v31  ;;  %v83_v35 = vld [vmem:[%s3452_s0 + $0x220] sm:$0xff]  ;;  %v2443_v42 = vld [vmem:[%s3451_s1 + $0x2d8] sm:$0xff]   ;;  %v2465_v32 = vld [vmem:[%s3451_s1 + $0x348] sm:$0xff]  }
  0x3d   :  { %1406 = vmatprep.mubr.bf16.mxu1 %v226_v44  ;;  %2102 = vmatpush3.bf16.msra.mxu0 %v2422_v45  ;;  %v195_v39 = vpack.c.bf16 %v99_v36, %v83_v35  ;;  %v2445_v44 = vld [vmem:[%s3451_s1 + $0x260] sm:$0xff]   ;;  %v72_v35 = vld [vmem:[%s3452_s0 + $0x1c8] sm:$0xff]  ;;  %v58_v36 = vld [vmem:[%s3452_s0 + $0x158] sm:$0xff] }
  0x3e   :  { %2148 = vmatpush3.bf16.msra.mxu1 %v2424_v51  ;;  %2103 = vmatprep.subr.bf16.mxu0 %v2425_v52  ;;  %v2446_v45 = vld [vmem:[%s3451_s1 + $0x220] sm:$0xff]   ;;  %v134_v51 = vld [vmem:[%s3452_s0 + $0x3b8] sm:$0xff] }
  0x3f   :  { %2149 = vmatprep.subr.bf16.mxu1 %v2427_v54  ;;  %v115_v54 = vld [vmem:[%s3452_s0 + $0x320] sm:$0xff] }
  0x40   :  { %v2464_v31 = vld [vmem:[%s3451_s1 + $0x380] sm:$0xff]  }
  0x41   :  { %2104 = vmatpush3.bf16.msra.mxu0 %v2426_v53  ;;  %v2448_v53 = vld [vmem:[%s3451_s1 + $0x2a0] sm:$0xff]  }
  0x42   :  { %2150 = vmatpush3.bf16.msra.mxu1 %v2428_v55  ;;  %2181 = vmatprep.subr.bf16.mxu0 %v2429_v4  ;;  %v131_v55 = vld [vmem:[%s3452_s0 + $0x3a0] sm:$0xff] }
  0x43   :  { %1335 = vmatmul.mubr.bf16.gmra.mrb[16].mxu0 %v223_v48  ;;  %2227 = vmatprep.subr.bf16.mxu1 %v2431_v6  ;;  %v132_v48 = vld [vmem:[%s3452_s0 + $0x3a8] sm:$0xff]  ;;  %v211_v56 = vpack.c.bf16 %v131_v55, %v115_v54  ;;  %v147_v6 = vld [vmem:[%s3452_s0 + $0x420] sm:$0xff]  ;;  %v90_v55 = vld [vmem:[%s3452_s0 + $0x258] sm:$0xff] }
  0x44   :  { %1407 = vmatmul.mubr.bf16.gmra.mrb[16].mxu1 %v225_v49  ;;  %1446 = vmatprep.mubr.bf16.mxu0 %v164_v59  ;;  %v118_v49 = vld [vmem:[%s3452_s0 + $0x338] sm:$0xff]  ;;  %v212_v50 = vpack.c.bf16 %v132_v48, %v116_v47  ;;  %v213_v59 = vpack.c.bf16 %v133_v58, %v117_v57  ;;  %v2468_v47 = vld [vmem:[%s3451_s1 + $0x388] sm:$0xff]   ;;  %v2469_v48 = vld [vmem:[%s3451_s1 + $0x350] sm:$0xff]  }
  0x45   :  { %1518 = vmatprep.mubr.bf16.mxu1 %v166_v63  ;;  %v214_v52 = vpack.c.bf16 %v134_v51, %v118_v49  ;;  %v2452_v63 = vld [vmem:[%s3451_s1 + $0x2a8] sm:$0xff]   ;;  %v2470_v49 = vld [vmem:[%s3451_s1 + $0x310] sm:$0xff]   ;;  %v2473_v58 = vld [vmem:[%s3451_s1 + $0x358] sm:$0xff]  }
  0x46   :  { %v2472_v51 = vld [vmem:[%s3451_s1 + $0x390] sm:$0xff]  }
  0x4b   :  { %1447 = vmatmul.mubr.bf16.vlgmr.msra.gmra.mrb[20].mxu0 %v163_v0  ;;  %v2453_v0 = vld [vmem:[%s3451_s1 + $0x270] sm:$0xff]  }
  0x4c   :  { %1519 = vmatmul.mubr.bf16.vlgmr.msra.gmra.mrb[20].mxu1 %v165_v3  ;;  %2182 = vmatpush3.bf16.msra.mxu0 %v2430_v5  ;;  %v150_v3 = vld [vmem:[%s3452_s0 + $0x438] sm:$0xff]  ;;  %v2454_v5 = vld [vmem:[%s3451_s1 + $0x230] sm:$0xff]  }
  0x4d   :  { %2228 = vmatpush3.bf16.msra.mxu1 %v2432_v7  ;;  %2183 = vmatprep.subr.bf16.mxu0 %v2433_v8  ;;  %v230_v4 = vpack.c.bf16 %v150_v3, %v150_v3  ;;  %v149_v7 = vld [vmem:[%s3452_s0 + $0x430] sm:$0xff]  ;;  %v227_v8 = vpack.c.bf16 %v147_v6, %v147_v6  ;;  %v2476_v3 = vld [vmem:[%s3451_s1 + $0x398] sm:$0xff]   ;;  %v2479_v6 = vld [vmem:[%s3451_s1 + $0x3e0] sm:$0xff]  }
  0x4e   :  { %1454 = vmatprep.mubr.bf16.mxu0 %v180_v14  ;;  %1526 = vmatprep.mubr.bf16.mxu1 %v182_v15  ;;  %v2459_v14 = vld [vmem:[%s3451_s1 + $0x2f8] sm:$0xff]  }
  0x4f   :  { %2229 = vmatprep.subr.bf16.mxu1 %v2435_v16  ;;  %v2460_v15 = vld [vmem:[%s3451_s1 + $0x2b8] sm:$0xff]   ;;  %v24_v16 = vld [vmem:[%s3452_s0 + $0x48] sm:$0xff] }
  0x50   :  { %2184 = vmatpush3.bf16.msra.mxu0 %v2434_v9  ;;  %v229_v9 = vpack.c.bf16 %v149_v7, %v149_v7  ;;  %v168_v19 = vpack.c.bf16 %v40_v17, %v24_v16  ;;  %v120_v7 = vld [vmem:[%s3452_s0 + $0x348] sm:$0xff]  ;;  %v121_v17 = vld [vmem:[%s3452_s0 + $0x350] sm:$0xff] }
  0x51   :  { %2230 = vmatpush3.bf16.msra.mxu1 %v2436_v23  ;;  %2185 = vmatprep.subr.bf16.mxu0 %v2437_v24 }
  0x52   :  { %2231 = vmatprep.subr.bf16.mxu1 %v2439_v26  ;;  %v41_v26 = vld [vmem:[%s3452_s0 + $0xd0] sm:$0xff] }
  0x53   :  { %1455 = vmatmul.mubr.bf16.gmra.mrb[24].mxu0 %v179_v20  ;;  %v42_v20 = vld [vmem:[%s3452_s0 + $0xd8] sm:$0xff] }
  0x54   :  { %1527 = vmatmul.mubr.bf16.gmra.mrb[24].mxu1 %v181_v22  ;;  %2186 = vmatpush3.bf16.msra.mxu0 %v2438_v25  ;;  %v39_v22 = vld [vmem:[%s3452_s0 + $0xc0] sm:$0xff]  ;;  %v170_v23 = vpack.c.bf16 %v42_v20, %v26_v18  ;;  %v25_v25 = vld [vmem:[%s3452_s0 + $0x50] sm:$0xff]  ;;  %v2481_v20 = vld [vmem:[%s3451_s1 + $0x368] sm:$0xff]  }
  0x55   :  { %2232 = vmatpush3.bf16.msra.mxu1 %v2440_v27  ;;  %1462 = vmatprep.mubr.bf16.mxu0 %v196_v30  ;;  %v167_v24 = vpack.c.bf16 %v39_v22, %v23_v21  ;;  %v169_v27 = vpack.c.bf16 %v41_v26, %v25_v25  ;;  %v2463_v30 = vld [vmem:[%s3451_s1 + $0x3c0] sm:$0xff]   ;;  %v137_v18 = vld [vmem:[%s3452_s0 + $0x3d0] sm:$0xff]  ;;  %v2482_v21 = vld [vmem:[%s3451_s1 + $0x328] sm:$0xff]  }
  0x56   :  { %1534 = vmatprep.mubr.bf16.mxu1 %v198_v33  ;;  %2187 = vmatprep.subr.bf16.mxu0 %v2441_v34  ;;  %v2466_v33 = vld [vmem:[%s3451_s1 + $0x308] sm:$0xff]  }
  0x57   :  { %2233 = vmatprep.subr.bf16.mxu1 %v2443_v42  ;;  %v56_v34 = vld [vmem:[%s3452_s0 + $0x148] sm:$0xff]  ;;  %v71_v42 = vld [vmem:[%s3452_s0 + $0x1c0] sm:$0xff] }
  0x58   :  { %2188 = vmatpush3.bf16.msra.mxu0 %v2442_v41  ;;  %v184_v38 = vpack.c.bf16 %v72_v35, %v56_v34  ;;  %v55_v41 = vld [vmem:[%s3452_s0 + $0x140] sm:$0xff]  ;;  %v2483_v22 = vld [vmem:[%s3451_s1 + $0x3e8] sm:$0xff]   ;;  %v2487_v34 = vld [vmem:[%s3451_s1 + $0x3f0] sm:$0xff]  }
  0x59   :  { %2234 = vmatpush3.bf16.msra.mxu1 %v2444_v43  ;;  %2189 = vmatprep.subr.bf16.mxu0 %v2445_v44  ;;  %v57_v43 = vld [vmem:[%s3452_s0 + $0x150] sm:$0xff]  ;;  %v183_v44 = vpack.c.bf16 %v71_v42, %v55_v41  ;;  %v152_v25 = vld [vmem:[%s3452_s0 + $0x448] sm:$0xff]  ;;  %v30_v42 = vld [vmem:[%s3452_s0 + $0x78] sm:$0xff] }
  0x5a   :  { %2235 = vmatprep.subr.bf16.mxu1 %v2447_v46  ;;  %v232_v26 = vpack.c.bf16 %v152_v25, %v152_v25  ;;  %v2488_v35 = vld [vmem:[%s3451_s1 + $0x3b0] sm:$0xff]   ;;  %v44_v41 = vld [vmem:[%s3452_s0 + $0xe8] sm:$0xff] }
  0x5b   :  { %1463 = vmatmul.mubr.bf16.gmra.mrb[28].mxu0 %v195_v39  ;;  %v186_v39 = vpack.c.bf16 %v74_v37, %v58_v36  ;;  %v2489_v36 = vld [vmem:[%s3451_s1 + $0x378] sm:$0xff]  }
  0x5c   :  { %1535 = vmatmul.mubr.bf16.gmra.mrb[28].mxu1 %v197_v40  ;;  %2190 = vmatpush3.bf16.msra.mxu0 %v2446_v45  ;;  %v2467_v40 = vld [vmem:[%s3451_s1 + $0x3c8] sm:$0xff]   ;;  %v73_v45 = vld [vmem:[%s3452_s0 + $0x1d0] sm:$0xff]  ;;  %v2490_v37 = vld [vmem:[%s3451_s1 + $0x338] sm:$0xff]  }
  0x5d   :  { %1470 = vmatprep.mubr.bf16.mxu0 %v212_v50  ;;  %1542 = vmatprep.mubr.bf16.mxu1 %v214_v52  ;;  %v185_v46 = vpack.c.bf16 %v73_v45, %v57_v43  ;;  %v2471_v50 = vld [vmem:[%s3451_s1 + $0x3d0] sm:$0xff]   ;;  %v88_v52 = vld [vmem:[%s3452_s0 + $0x248] sm:$0xff]  ;;  %v27_v45 = vld [vmem:[%s3452_s0 + $0x60] sm:$0xff] }
  0x5e   :  { %2236 = vmatpush3.bf16.msra.mxu1 %v2448_v53  ;;  %2191 = vmatprep.subr.bf16.mxu0 %v2449_v60  ;;  %v104_v53 = vld [vmem:[%s3452_s0 + $0x2c8] sm:$0xff]  ;;  %v103_v60 = vld [vmem:[%s3452_s0 + $0x2c0] sm:$0xff] }
  0x5f   :  { %2237 = vmatprep.subr.bf16.mxu1 %v2451_v62  ;;  %v200_v54 = vpack.c.bf16 %v104_v53, %v88_v52  ;;  %v105_v62 = vld [vmem:[%s3452_s0 + $0x2d0] sm:$0xff]  ;;  %v76_v53 = vld [vmem:[%s3452_s0 + $0x1e8] sm:$0xff] }
  0x60   :  { %2192 = vmatpush3.bf16.msra.mxu0 %v2450_v61  ;;  %v89_v61 = vld [vmem:[%s3452_s0 + $0x250] sm:$0xff] }
  0x61   :  { %2193 = vmatprep.subr.bf16.mxu0 %v2453_v0  ;;  %v201_v0 = vpack.c.bf16 %v105_v62, %v89_v61  ;;  %v77_v61 = vld [vmem:[%s3452_s0 + $0x1f0] sm:$0xff]  ;;  %v92_v62 = vld [vmem:[%s3452_s0 + $0x268] sm:$0xff] }
  0x62   :  { %2238 = vmatpush3.bf16.msra.mxu1 %v2452_v63 }
  0x63   :  { %1471 = vmatmul.mubr.bf16.gmra.mrb[32].mxu0 %v211_v56  ;;  %2239 = vmatprep.subr.bf16.mxu1 %v2455_v10  ;;  %v106_v56 = vld [vmem:[%s3452_s0 + $0x2d8] sm:$0xff] }
  0x64   :  { %1543 = vmatmul.mubr.bf16.gmra.mrb[32].mxu1 %v213_v59  ;;  %1478 = vmatprep.mubr.bf16.mxu0 %v228_v2  ;;  %v202_v57 = vpack.c.bf16 %v106_v56, %v90_v55  ;;  %v87_v59 = vld [vmem:[%s3452_s0 + $0x240] sm:$0xff]  ;;  %v2475_v2 = vld [vmem:[%s3451_s1 + $0x3d8] sm:$0xff]  }
  0x65   :  { %1550 = vmatprep.mubr.bf16.mxu1 %v230_v4  ;;  %2194 = vmatpush3.bf16.msra.mxu0 %v2454_v5  ;;  %v199_v63 = vpack.c.bf16 %v103_v60, %v87_v59  ;;  %v2477_v4 = vld [vmem:[%s3451_s1 + $0x360] sm:$0xff]   ;;  %v78_v55 = vld [vmem:[%s3452_s0 + $0x1f8] sm:$0xff]  ;;  %v61_v60 = vld [vmem:[%s3452_s0 + $0x170] sm:$0xff] }
  0x66   :  { %2240 = vmatpush3.bf16.msra.mxu1 %v2456_v11  ;;  %2195 = vmatprep.subr.bf16.mxu0 %v2457_v12  ;;  %v2478_v5 = vld [vmem:[%s3451_s1 + $0x320] sm:$0xff]   ;;  %v138_v11 = vld [vmem:[%s3452_s0 + $0x3d8] sm:$0xff] }
  0x67   :  { %2241 = vmatprep.subr.bf16.mxu1 %v2459_v14  ;;  %v119_v14 = vld [vmem:[%s3452_s0 + $0x340] sm:$0xff] }
  0x68   :  { %v75_v59 = vld [vmem:[%s3452_s0 + $0x1e0] sm:$0xff] }
  0x69   :  { %2196 = vmatpush3.bf16.msra.mxu0 %v2458_v13  ;;  %v2480_v13 = vld [vmem:[%s3451_s1 + $0x3a0] sm:$0xff]  }
  0x6a   :  { %2242 = vmatpush3.bf16.msra.mxu1 %v2460_v15  ;;  %2273 = vmatprep.subr.bf16.mxu0 %v2461_v28  ;;  %v135_v15 = vld [vmem:[%s3452_s0 + $0x3c0] sm:$0xff] }
  0x6b   :  { %1479 = vmatmul.mubr.bf16.gmra.mrb[36].mxu0 %v227_v8  ;;  %2319 = vmatprep.subr.bf16.mxu1 %v2463_v30  ;;  %v136_v8 = vld [vmem:[%s3452_s0 + $0x3c8] sm:$0xff]  ;;  %v215_v16 = vpack.c.bf16 %v135_v15, %v119_v14  ;;  %v151_v30 = vld [vmem:[%s3452_s0 + $0x440] sm:$0xff] }
  0x6c   :  { %1551 = vmatmul.mubr.bf16.gmra.mrb[36].mxu1 %v229_v9  ;;  %1590 = vmatprep.mubr.bf16.mxu0 %v168_v19  ;;  %v122_v9 = vld [vmem:[%s3452_s0 + $0x358] sm:$0xff]  ;;  %v216_v10 = vpack.c.bf16 %v136_v8, %v120_v7  ;;  %v217_v19 = vpack.c.bf16 %v137_v18, %v121_v17  ;;  %v107_v7 = vld [vmem:[%s3452_s0 + $0x2e0] sm:$0xff]  ;;  %v93_v8 = vld [vmem:[%s3452_s0 + $0x270] sm:$0xff] }
  0x6d   :  { %1662 = vmatprep.mubr.bf16.mxu1 %v170_v23  ;;  %v218_v12 = vpack.c.bf16 %v138_v11, %v122_v9  ;;  %v2484_v23 = vld [vmem:[%s3451_s1 + $0x3a8] sm:$0xff]   ;;  %v109_v9 = vld [vmem:[%s3452_s0 + $0x2f0] sm:$0xff]  ;;  %v123_v18 = vld [vmem:[%s3452_s0 + $0x360] sm:$0xff] }
  0x6e   :  { %v140_v11 = vld [vmem:[%s3452_s0 + $0x3e8] sm:$0xff]  ;;  %v205_v15 = vpack.c.bf16 %v109_v9, %v93_v8 }
  0x73   :  { %1591 = vmatmul.mubr.bf16.vlgmr.msra.gmra.mrb[40].mxu0 %v167_v24  ;;  %v2485_v24 = vld [vmem:[%s3451_s1 + $0x370] sm:$0xff]  }
  0x74   :  { %1663 = vmatmul.mubr.bf16.vlgmr.msra.gmra.mrb[40].mxu1 %v169_v27  ;;  %2274 = vmatpush3.bf16.msra.mxu0 %v2462_v29  ;;  %v154_v27 = vld [vmem:[%s3452_s0 + $0x458] sm:$0xff]  ;;  %v2486_v29 = vld [vmem:[%s3451_s1 + $0x330] sm:$0xff]  }
  0x75   :  { %2320 = vmatpush3.bf16.msra.mxu1 %v2464_v31  ;;  %2275 = vmatprep.subr.bf16.mxu0 %v2465_v32  ;;  %v234_v28 = vpack.c.bf16 %v154_v27, %v154_v27  ;;  %v153_v31 = vld [vmem:[%s3452_s0 + $0x450] sm:$0xff]  ;;  %v231_v32 = vpack.c.bf16 %v151_v30, %v151_v30 }
  0x76   :  { %1598 = vmatprep.mubr.bf16.mxu0 %v184_v38  ;;  %1670 = vmatprep.mubr.bf16.mxu1 %v186_v39  ;;  %v2491_v38 = vld [vmem:[%s3451_s1 + $0x3f8] sm:$0xff]  }
  0x77   :  { %2321 = vmatprep.subr.bf16.mxu1 %v2467_v40  ;;  %v2492_v39 = vld [vmem:[%s3451_s1 + $0x3b8] sm:$0xff]   ;;  %v28_v40 = vld [vmem:[%s3452_s0 + $0x68] sm:$0xff] }
  0x78   :  { %2276 = vmatpush3.bf16.msra.mxu0 %v2466_v33  ;;  %v233_v33 = vpack.c.bf16 %v153_v31, %v153_v31  ;;  %v172_v43 = vpack.c.bf16 %v44_v41, %v28_v40 }
  0x79   :  { %2322 = vmatpush3.bf16.msra.mxu1 %v2468_v47  ;;  %2277 = vmatprep.subr.bf16.mxu0 %v2469_v48 }
  0x7a   :  { %2323 = vmatprep.subr.bf16.mxu1 %v2471_v50  ;;  %v45_v50 = vld [vmem:[%s3452_s0 + $0xf0] sm:$0xff] }
  0x7b   :  { %1599 = vmatmul.mubr.bf16.gmra.mrb[44].mxu0 %v183_v44  ;;  %v46_v44 = vld [vmem:[%s3452_s0 + $0xf8] sm:$0xff] }
  0x7c   :  { %1671 = vmatmul.mubr.bf16.gmra.mrb[44].mxu1 %v185_v46  ;;  %2278 = vmatpush3.bf16.msra.mxu0 %v2470_v49  ;;  %v43_v46 = vld [vmem:[%s3452_s0 + $0xe0] sm:$0xff]  ;;  %v174_v47 = vpack.c.bf16 %v46_v44, %v30_v42  ;;  %v29_v49 = vld [vmem:[%s3452_s0 + $0x70] sm:$0xff] }
  0x7d   :  { %2324 = vmatpush3.bf16.msra.mxu1 %v2472_v51  ;;  %1606 = vmatprep.mubr.bf16.mxu0 %v200_v54  ;;  %v171_v48 = vpack.c.bf16 %v43_v46, %v27_v45  ;;  %v60_v51 = vld [vmem:[%s3452_s0 + $0x168] sm:$0xff]  ;;  %v173_v52 = vpack.c.bf16 %v45_v50, %v29_v49  ;;  %v62_v54 = vld [vmem:[%s3452_s0 + $0x178] sm:$0xff] }
  0x7e   :  { %1678 = vmatprep.mubr.bf16.mxu1 %v202_v57  ;;  %2279 = vmatprep.subr.bf16.mxu0 %v2473_v58  ;;  %v188_v56 = vpack.c.bf16 %v76_v53, %v60_v51  ;;  %v190_v57 = vpack.c.bf16 %v78_v55, %v62_v54  ;;  %v59_v58 = vld [vmem:[%s3452_s0 + $0x160] sm:$0xff] }
  0x7f   :  { %2325 = vmatprep.subr.bf16.mxu1 %v2475_v2  ;;  %v187_v2 = vpack.c.bf16 %v75_v59, %v59_v58 }
  0x80   :  { %2280 = vmatpush3.bf16.msra.mxu0 %v2474_v1  ;;  %v110_v1 = vld [vmem:[%s3452_s0 + $0x2f8] sm:$0xff] }
  0x81   :  { %2326 = vmatpush3.bf16.msra.mxu1 %v2476_v3  ;;  %2281 = vmatprep.subr.bf16.mxu0 %v2477_v4  ;;  %v189_v3 = vpack.c.bf16 %v77_v61, %v61_v60 }
  0x82   :  { %2327 = vmatprep.subr.bf16.mxu1 %v2479_v6  ;;  %v91_v6 = vld [vmem:[%s3452_s0 + $0x260] sm:$0xff] }
  0x83   :  { %1607 = vmatmul.mubr.bf16.gmra.mrb[48].mxu0 %v199_v63  ;;  %v108_v63 = vld [vmem:[%s3452_s0 + $0x2e8] sm:$0xff]  ;;  %v203_v14 = vpack.c.bf16 %v107_v7, %v91_v6 }
  0x84   :  { %1679 = vmatmul.mubr.bf16.gmra.mrb[48].mxu1 %v201_v0  ;;  %2282 = vmatpush3.bf16.msra.mxu0 %v2478_v5  ;;  %v94_v0 = vld [vmem:[%s3452_s0 + $0x278] sm:$0xff]  ;;  %v204_v4 = vpack.c.bf16 %v108_v63, %v92_v62 }
  0x85   :  { %1614 = vmatprep.mubr.bf16.mxu0 %v216_v10  ;;  %1686 = vmatprep.mubr.bf16.mxu1 %v218_v12  ;;  %v206_v5 = vpack.c.bf16 %v110_v1, %v94_v0  ;;  %v124_v10 = vld [vmem:[%s3452_s0 + $0x368] sm:$0xff]  ;;  %v126_v12 = vld [vmem:[%s3452_s0 + $0x378] sm:$0xff] }
  0x86   :  { %2328 = vmatpush3.bf16.msra.mxu1 %v2480_v13  ;;  %2283 = vmatprep.subr.bf16.mxu0 %v2481_v20  ;;  %v142_v13 = vld [vmem:[%s3452_s0 + $0x3f8] sm:$0xff]  ;;  %v125_v20 = vld [vmem:[%s3452_s0 + $0x370] sm:$0xff] }
  0x87   :  { %2329 = vmatprep.subr.bf16.mxu1 %v2483_v22  ;;  %v222_v17 = vpack.c.bf16 %v142_v13, %v126_v12  ;;  %v156_v22 = vld [vmem:[%s3452_s0 + $0x468] sm:$0xff] }
  0x88   :  { %2284 = vmatpush3.bf16.msra.mxu0 %v2482_v21  ;;  %v141_v21 = vld [vmem:[%s3452_s0 + $0x3f0] sm:$0xff] }
  0x89   :  { %2285 = vmatprep.subr.bf16.mxu0 %v2485_v24  ;;  %v221_v25 = vpack.c.bf16 %v141_v21, %v125_v20 }
  0x8a   :  { %2330 = vmatpush3.bf16.msra.mxu1 %v2484_v23  ;;  %v158_v23 = vld [vmem:[%s3452_s0 + $0x478] sm:$0xff] }
  0x8b   :  { %1615 = vmatmul.mubr.bf16.gmra.mrb[52].mxu0 %v215_v16  ;;  %2331 = vmatprep.subr.bf16.mxu1 %v2487_v34  ;;  %v220_v16 = vpack.c.bf16 %v140_v11, %v124_v10  ;;  %v238_v27 = vpack.c.bf16 %v158_v23, %v158_v23  ;;  %v3332_v34 = vld [vmem:[%s3453_s2] ss:$0 sm:$0xff] }
  0x8c   :  { %1687 = vmatmul.mubr.bf16.gmra.mrb[52].mxu1 %v217_v19  ;;  %1622 = vmatprep.mubr.bf16.mxu0 %v232_v26  ;;  %v139_v19 = vld [vmem:[%s3452_s0 + $0x3e0] sm:$0xff]  ;;  %v236_v26 = vpack.c.bf16 %v156_v22, %v156_v22 }
  0x8d   :  { %1694 = vmatprep.mubr.bf16.mxu1 %v234_v28  ;;  %2286 = vmatpush3.bf16.msra.mxu0 %v2486_v29  ;;  %v219_v24 = vpack.c.bf16 %v139_v19, %v123_v18  ;;  %v155_v28 = vld [vmem:[%s3452_s0 + $0x460] sm:$0xff]  ;;  %v157_v29 = vld [vmem:[%s3452_s0 + $0x470] sm:$0xff] }
  0x8e   :  { %2332 = vmatpush3.bf16.msra.mxu1 %v2488_v35  ;;  %2287 = vmatprep.subr.bf16.mxu0 %v2489_v36  ;;  %v235_v30 = vpack.c.bf16 %v155_v28, %v155_v28  ;;  %v237_v31 = vpack.c.bf16 %v157_v29, %v157_v29 }
  0x8f   :  { %2333 = vmatprep.subr.bf16.mxu1 %v2491_v38 }
  0x91   :  { %2288 = vmatpush3.bf16.msra.mxu0 %v2490_v37 }
  0x92   :  { %2334 = vmatpush3.bf16.msra.mxu1 %v2492_v39 }
  0x93   :  { %1623 = vmatmul.mubr.bf16.gmra.mrb[56].mxu0 %v231_v32 }
  0x94   :  { %1695 = vmatmul.mubr.bf16.gmra.mrb[56].mxu1 %v233_v33  ;;  %1734 = vmatprep.mubr.bf16.mxu0 %v172_v43 }
  0x95   :  { %1806 = vmatprep.mubr.bf16.mxu1 %v174_v47 }
  0x9b   :  { %1735 = vmatmul.mubr.bf16.vlgmr.msra.gmra.mrb[60].mxu0 %v171_v48 }
  0x9c   :  { %1807 = vmatmul.mubr.bf16.vlgmr.msra.gmra.mrb[60].mxu1 %v173_v52  ;;  %1742 = vmatprep.mubr.bf16.mxu0 %v188_v56 }
  0x9d   :  { %1814 = vmatprep.mubr.bf16.mxu1 %v190_v57 }
  0xa3   :  { %1743 = vmatmul.mubr.bf16.gmra.mrb[64].mxu0 %v187_v2 }
  0xa4   :  { %1815 = vmatmul.mubr.bf16.gmra.mrb[64].mxu1 %v189_v3  ;;  %1750 = vmatprep.mubr.bf16.mxu0 %v204_v4 }
  0xa5   :  { %1822 = vmatprep.mubr.bf16.mxu1 %v206_v5 }
  0xab   :  { %1751 = vmatmul.mubr.bf16.gmra.mrb[68].mxu0 %v203_v14 }
  0xac   :  { %1823 = vmatmul.mubr.bf16.gmra.mrb[68].mxu1 %v205_v15  ;;  %1758 = vmatprep.mubr.bf16.mxu0 %v220_v16 }
  0xad   :  { %1830 = vmatprep.mubr.bf16.mxu1 %v222_v17 }
  0xb3   :  { %1759 = vmatmul.mubr.bf16.gmra.mrb[72].mxu0 %v219_v24 }
  0xb4   :  { %1831 = vmatmul.mubr.bf16.gmra.mrb[72].mxu1 %v221_v25  ;;  %1766 = vmatprep.mubr.bf16.mxu0 %v236_v26 }
  0xb5   :  { %1838 = vmatprep.mubr.bf16.mxu1 %v238_v27 }
  0xbb   :  { %1767 = vmatmul.mubr.bf16.gmra.mrb[76].mxu0 %v235_v30 }
  0xbc   :  { %1839 = vmatmul.mubr.bf16.gmra.mrb[76].mxu1 %v237_v31 }
  0xf6   :  { %v2013_v32 = vpop.f32.mrb[0].mxu0 }
  0xf7   :  { %v2059_v33 = vpop.f32.mrb[0].mxu1  ;;  %v2014_v35 = vpop.f32.mrb[1].mxu0 }
  0xf8   :  { %v2015_v36 = vadd.f32 %v2014_v35, %v2013_v32  ;;  %v2060_v37 = vpop.f32.mrb[1].mxu1  ;;  %v2016_v38 = vpop.f32.mrb[2].mxu0 }
  0xf9   :  { %v2061_v39 = vadd.f32 %v2060_v37, %v2059_v33  ;;  %v2062_v40 = vpop.f32.mrb[2].mxu1  ;;  %v2017_v41 = vpop.f32.mrb[3].mxu0 }
  0xfa   :  { %v1305_v42 = vadd.f32 %v2015_v36, %v3332_v34  ;;  %v2018_v43 = vadd.f32 %v2017_v41, %v2016_v38  ;;  %v2063_v44 = vpop.f32.mrb[3].mxu1 }
  0xfb   :  { %v2064_v45 = vadd.f32 %v2063_v44, %v2062_v40 }
  0xfc   :  { %v3335_v46 = vadd.f32 %v2061_v39, %v1305_v42  ;;  %v1308_v47 = vadd.f32 %v2018_v43, %v3332_v34 }
  0xfe   :  { %v3338_v48 = vadd.f32 %v2064_v45, %v1308_v47  ;;  %v2019_v49 = vpop.f32.mrb[4].mxu0 }
  0xff   :  { %v2065_v50 = vpop.f32.mrb[4].mxu1  ;;  %v2020_v51 = vpop.f32.mrb[5].mxu0 }
 0x100   :  { %v2021_v52 = vadd.f32 %v2020_v51, %v2019_v49  ;;  %v2066_v53 = vpop.f32.mrb[5].mxu1  ;;  %v2022_v54 = vpop.f32.mrb[6].mxu0 }
 0x101   :  { %v2067_v55 = vadd.f32 %v2066_v53, %v2065_v50  ;;  %v2068_v56 = vpop.f32.mrb[6].mxu1  ;;  %v2023_v57 = vpop.f32.mrb[7].mxu0 }
 0x102   :  { %v1313_v58 = vadd.f32 %v2021_v52, %v3332_v34  ;;  %v2024_v59 = vadd.f32 %v2023_v57, %v2022_v54  ;;  %v2069_v60 = vpop.f32.mrb[7].mxu1 }
 0x103   :  { %v2070_v61 = vadd.f32 %v2069_v60, %v2068_v56 }
 0x104   :  { %v3341_v62 = vadd.f32 %v2067_v55, %v1313_v58  ;;  %v1316_v63 = vadd.f32 %v2024_v59, %v3332_v34 }
 0x106   :  { %v3344_v0 = vadd.f32 %v2070_v61, %v1316_v63  ;;  %v2025_v1 = vpop.f32.mrb[8].mxu0 }
 0x107   :  { %v2071_v2 = vpop.f32.mrb[8].mxu1  ;;  %v2026_v3 = vpop.f32.mrb[9].mxu0 }
 0x108   :  { %v2072_v4 = vpop.f32.mrb[9].mxu1  ;;  %v2027_v5 = vadd.f32 %v2026_v3, %v2025_v1  ;;  %v2028_v7 = vpop.f32.mrb[10].mxu0 }
 0x109   :  { %v2073_v6 = vadd.f32 %v2072_v4, %v2071_v2  ;;  %v2074_v8 = vpop.f32.mrb[10].mxu1  ;;  %v2029_v9 = vpop.f32.mrb[11].mxu0 }
 0x10a   :  { %v2075_v10 = vpop.f32.mrb[11].mxu1  ;;  %v1321_v11 = vadd.f32 %v2027_v5, %v3332_v34  ;;  %v2030_v12 = vadd.f32 %v2029_v9, %v2028_v7 }
 0x10b   :  { %v2076_v13 = vadd.f32 %v2075_v10, %v2074_v8 }
 0x10c   :  { %v3347_v14 = vadd.f32 %v2073_v6, %v1321_v11  ;;  %v1324_v15 = vadd.f32 %v2030_v12, %v3332_v34 }
 0x10e   :  { %v3350_v16 = vadd.f32 %v2076_v13, %v1324_v15  ;;  %v2031_v17 = vpop.f32.mrb[12].mxu0 }
 0x10f   :  { %v2077_v18 = vpop.f32.mrb[12].mxu1  ;;  %v2032_v19 = vpop.f32.mrb[13].mxu0 }
 0x110   :  { %v2033_v20 = vadd.f32 %v2032_v19, %v2031_v17  ;;  %v2078_v21 = vpop.f32.mrb[13].mxu1  ;;  %v2034_v22 = vpop.f32.mrb[14].mxu0 }
 0x111   :  { %v2079_v23 = vadd.f32 %v2078_v21, %v2077_v18  ;;  %v2080_v24 = vpop.f32.mrb[14].mxu1  ;;  %v2035_v25 = vpop.f32.mrb[15].mxu0 }
 0x112   :  { %v1329_v26 = vadd.f32 %v2033_v20, %v3332_v34  ;;  %v2036_v27 = vadd.f32 %v2035_v25, %v2034_v22  ;;  %v2081_v28 = vpop.f32.mrb[15].mxu1 }
 0x113   :  { %v2082_v29 = vadd.f32 %v2081_v28, %v2080_v24 }
 0x114   :  { %v3353_v30 = vadd.f32 %v2079_v23, %v1329_v26  ;;  %v1332_v31 = vadd.f32 %v2036_v27, %v3332_v34 }
 0x116   :  { %v3356_v32 = vadd.f32 %v2082_v29, %v1332_v31  ;;  %v2037_v33 = vpop.f32.mrb[16].mxu0 }
 0x117   :  { %v2083_v35 = vpop.f32.mrb[16].mxu1  ;;  %v2038_v36 = vpop.f32.mrb[17].mxu0 }
 0x118   :  { %v2039_v37 = vadd.f32 %v2038_v36, %v2037_v33  ;;  %v2084_v38 = vpop.f32.mrb[17].mxu1  ;;  %v2040_v39 = vpop.f32.mrb[18].mxu0 }
 0x119   :  { %v2085_v40 = vadd.f32 %v2084_v38, %v2083_v35  ;;  %v2086_v41 = vpop.f32.mrb[18].mxu1  ;;  %v2041_v42 = vpop.f32.mrb[19].mxu0 }
 0x11a   :  { %v1337_v43 = vadd.f32 %v2039_v37, %v3332_v34  ;;  %v2087_v44 = vpop.f32.mrb[19].mxu1 }
 0x11c   :  { %v3359_v45 = vadd.f32 %v2085_v40, %v1337_v43 }
 0x11e   :  { %v2105_v47 = vpop.f32.mrb[20].mxu0 }
 0x11f   :  { %v2151_v49 = vpop.f32.mrb[20].mxu1  ;;  %v2106_v50 = vpop.f32.mrb[21].mxu0 }
 0x120   :  { %v2107_v51 = vadd.f32 %v2106_v50, %v2105_v47  ;;  %v2152_v52 = vpop.f32.mrb[21].mxu1  ;;  %v2108_v53 = vpop.f32.mrb[22].mxu0 }
 0x121   :  { %v2153_v54 = vadd.f32 %v2152_v52, %v2151_v49  ;;  %v2154_v55 = vpop.f32.mrb[22].mxu1  ;;  %v2109_v56 = vpop.f32.mrb[23].mxu0 }
 0x122   :  { %v1449_v57 = vadd.f32 %v2107_v51, %v3335_v46  ;;  %v2110_v58 = vadd.f32 %v2109_v56, %v2108_v53  ;;  %v2155_v59 = vpop.f32.mrb[23].mxu1 }
 0x123   :  { %v2156_v60 = vadd.f32 %v2155_v59, %v2154_v55 }
 0x124   :  { %v3362_v61 = vadd.f32 %v2153_v54, %v1449_v57  ;;  %v1452_v34 = vadd.f32 %v2110_v58, %v3338_v48 }
 0x126   :  { %v3365_v63 = vadd.f32 %v2156_v60, %v1452_v34  ;;  %v2111_v1 = vpop.f32.mrb[24].mxu0 }
 0x127   :  { %v2157_v2 = vpop.f32.mrb[24].mxu1  ;;  %v2112_v3 = vpop.f32.mrb[25].mxu0 }
 0x128   :  { %v2113_v4 = vadd.f32 %v2112_v3, %v2111_v1  ;;  %v2158_v5 = vpop.f32.mrb[25].mxu1  ;;  %v2114_v6 = vpop.f32.mrb[26].mxu0 }
 0x129   :  { %v2159_v7 = vadd.f32 %v2158_v5, %v2157_v2  ;;  %v2160_v8 = vpop.f32.mrb[26].mxu1  ;;  %v2115_v9 = vpop.f32.mrb[27].mxu0 }
 0x12a   :  { %v1457_v46 = vadd.f32 %v2113_v4, %v3341_v62  ;;  %v2116_v10 = vadd.f32 %v2115_v9, %v2114_v6  ;;  %v2161_v11 = vpop.f32.mrb[27].mxu1 }
 0x12b   :  { %v2162_v12 = vadd.f32 %v2161_v11, %v2160_v8 }
 0x12c   :  { %v3368_v13 = vadd.f32 %v2159_v7, %v1457_v46  ;;  %v1460_v48 = vadd.f32 %v2116_v10, %v3344_v0 }
 0x12e   :  { %v3371_v15 = vadd.f32 %v2162_v12, %v1460_v48  ;;  %v2117_v17 = vpop.f32.mrb[28].mxu0 }
 0x12f   :  { %v2163_v18 = vpop.f32.mrb[28].mxu1  ;;  %v2118_v19 = vpop.f32.mrb[29].mxu0 }
 0x130   :  { %v2164_v20 = vpop.f32.mrb[29].mxu1  ;;  %v2119_v21 = vadd.f32 %v2118_v19, %v2117_v17  ;;  %v2120_v23 = vpop.f32.mrb[30].mxu0 }
 0x131   :  { %v2165_v22 = vadd.f32 %v2164_v20, %v2163_v18  ;;  %v2166_v24 = vpop.f32.mrb[30].mxu1  ;;  %v2121_v25 = vpop.f32.mrb[31].mxu0 }
 0x132   :  { %v2167_v26 = vpop.f32.mrb[31].mxu1  ;;  %v1465_v62 = vadd.f32 %v2119_v21, %v3347_v14  ;;  %v2122_v27 = vadd.f32 %v2121_v25, %v2120_v23 }
 0x133   :  { %v2168_v28 = vadd.f32 %v2167_v26, %v2166_v24 }
 0x134   :  { %v3374_v29 = vadd.f32 %v2165_v22, %v1465_v62  ;;  %v1468_v0 = vadd.f32 %v2122_v27, %v3350_v16 }
 0x136   :  { %v3377_v31 = vadd.f32 %v2168_v28, %v1468_v0  ;;  %v2123_v33 = vpop.f32.mrb[32].mxu0 }
 0x137   :  { %v2169_v35 = vpop.f32.mrb[32].mxu1  ;;  %v2124_v36 = vpop.f32.mrb[33].mxu0 }
 0x138   :  { %v2125_v37 = vadd.f32 %v2124_v36, %v2123_v33  ;;  %v2170_v38 = vpop.f32.mrb[33].mxu1  ;;  %v2126_v39 = vpop.f32.mrb[34].mxu0 }
 0x139   :  { %v2171_v40 = vadd.f32 %v2170_v38, %v2169_v35  ;;  %v2172_v41 = vpop.f32.mrb[34].mxu1  ;;  %v2127_v42 = vpop.f32.mrb[35].mxu0 }
 0x13a   :  { %v1473_v43 = vadd.f32 %v2125_v37, %v3353_v30  ;;  %v2128_v14 = vadd.f32 %v2127_v42, %v2126_v39  ;;  %v2173_v44 = vpop.f32.mrb[35].mxu1 }
 0x13b   :  { %v2174_v47 = vadd.f32 %v2173_v44, %v2172_v41 }
 0x13c   :  { %v3380_v49 = vadd.f32 %v2171_v40, %v1473_v43  ;;  %v1476_v16 = vadd.f32 %v2128_v14, %v3356_v32 }
 0x13e   :  { %v3383_v50 = vadd.f32 %v2174_v47, %v1476_v16  ;;  %v2129_v51 = vpop.f32.mrb[36].mxu0 }
 0x13f   :  { %v2175_v52 = vpop.f32.mrb[36].mxu1  ;;  %v2130_v53 = vpop.f32.mrb[37].mxu0 }
 0x140   :  { %v2131_v54 = vadd.f32 %v2130_v53, %v2129_v51  ;;  %v2176_v55 = vpop.f32.mrb[37].mxu1  ;;  %v2132_v56 = vpop.f32.mrb[38].mxu0 }
 0x141   :  { %v2177_v57 = vadd.f32 %v2176_v55, %v2175_v52  ;;  %v2178_v58 = vpop.f32.mrb[38].mxu1  ;;  %v2133_v59 = vpop.f32.mrb[39].mxu0 }
 0x142   :  { %v1481_v30 = vadd.f32 %v2131_v54, %v3359_v45  ;;  %v2179_v60 = vpop.f32.mrb[39].mxu1 }
 0x144   :  { %v3386_v34 = vadd.f32 %v2177_v57, %v1481_v30 }
 0x146   :  { %v2197_v1 = vpop.f32.mrb[40].mxu0 }
 0x147   :  { %v2243_v2 = vpop.f32.mrb[40].mxu1  ;;  %v2198_v3 = vpop.f32.mrb[41].mxu0 }
 0x148   :  { %v2199_v32 = vadd.f32 %v2198_v3, %v2197_v1  ;;  %v2244_v4 = vpop.f32.mrb[41].mxu1  ;;  %v2200_v5 = vpop.f32.mrb[42].mxu0 }
 0x149   :  { %v2245_v6 = vadd.f32 %v2244_v4, %v2243_v2  ;;  %v2246_v7 = vpop.f32.mrb[42].mxu1  ;;  %v2201_v8 = vpop.f32.mrb[43].mxu0 }
 0x14a   :  { %v1593_v9 = vadd.f32 %v2199_v32, %v3362_v61  ;;  %v2202_v46 = vadd.f32 %v2201_v8, %v2200_v5  ;;  %v2247_v10 = vpop.f32.mrb[43].mxu1 }
 0x14b   :  { %v2248_v11 = vadd.f32 %v2247_v10, %v2246_v7 }
 0x14c   :  { %v3389_v12 = vadd.f32 %v2245_v6, %v1593_v9  ;;  %v1596_v45 = vadd.f32 %v2202_v46, %v3365_v63 }
 0x14e   :  { %v3392_v48 = vadd.f32 %v2248_v11, %v1596_v45  ;;  %v2203_v17 = vpop.f32.mrb[44].mxu0 }
 0x14f   :  { %v2249_v18 = vpop.f32.mrb[44].mxu1  ;;  %v2204_v19 = vpop.f32.mrb[45].mxu0 }
 0x150   :  { %v2205_v20 = vadd.f32 %v2204_v19, %v2203_v17  ;;  %v2250_v21 = vpop.f32.mrb[45].mxu1  ;;  %v2206_v22 = vpop.f32.mrb[46].mxu0 }
 0x151   :  { %v2251_v23 = vadd.f32 %v2250_v21, %v2249_v18  ;;  %v2252_v24 = vpop.f32.mrb[46].mxu1  ;;  %v2207_v25 = vpop.f32.mrb[47].mxu0 }
 0x152   :  { %v1601_v61 = vadd.f32 %v2205_v20, %v3368_v13  ;;  %v2208_v26 = vadd.f32 %v2207_v25, %v2206_v22  ;;  %v2253_v62 = vpop.f32.mrb[47].mxu1 }
 0x153   :  { %v2254_v27 = vadd.f32 %v2253_v62, %v2252_v24 }
 0x154   :  { %v3395_v28 = vadd.f32 %v2251_v23, %v1601_v61  ;;  %v1604_v63 = vadd.f32 %v2208_v26, %v3371_v15 }
 0x156   :  { %v3398_v0 = vadd.f32 %v2254_v27, %v1604_v63  ;;  %v2209_v33 = vpop.f32.mrb[48].mxu0 }
 0x157   :  { %v2255_v35 = vpop.f32.mrb[48].mxu1  ;;  %v2210_v36 = vpop.f32.mrb[49].mxu0 }
 0x158   :  { %v2256_v37 = vpop.f32.mrb[49].mxu1  ;;  %v2211_v38 = vadd.f32 %v2210_v36, %v2209_v33  ;;  %v2212_v40 = vpop.f32.mrb[50].mxu0 }
 0x159   :  { %v2257_v39 = vadd.f32 %v2256_v37, %v2255_v35  ;;  %v2258_v41 = vpop.f32.mrb[50].mxu1  ;;  %v2213_v42 = vpop.f32.mrb[51].mxu0 }
 0x15a   :  { %v2259_v43 = vpop.f32.mrb[51].mxu1  ;;  %v1609_v13 = vadd.f32 %v2211_v38, %v3374_v29  ;;  %v2214_v14 = vadd.f32 %v2213_v42, %v2212_v40 }
 0x15b   :  { %v2260_v44 = vadd.f32 %v2259_v43, %v2258_v41 }
 0x15c   :  { %v3401_v47 = vadd.f32 %v2257_v39, %v1609_v13  ;;  %v1612_v15 = vadd.f32 %v2214_v14, %v3377_v31 }
 0x15e   :  { %v3404_v16 = vadd.f32 %v2260_v44, %v1612_v15  ;;  %v2215_v51 = vpop.f32.mrb[52].mxu0 }
 0x15f   :  { %v2261_v52 = vpop.f32.mrb[52].mxu1  ;;  %v2216_v53 = vpop.f32.mrb[53].mxu0 }
 0x160   :  { %v2217_v54 = vadd.f32 %v2216_v53, %v2215_v51  ;;  %v2262_v55 = vpop.f32.mrb[53].mxu1  ;;  %v2218_v56 = vpop.f32.mrb[54].mxu0 }
 0x161   :  { %v2263_v57 = vadd.f32 %v2262_v55, %v2261_v52  ;;  %v2264_v58 = vpop.f32.mrb[54].mxu1  ;;  %v2219_v59 = vpop.f32.mrb[55].mxu0 }
 0x162   :  { %v1617_v30 = vadd.f32 %v2217_v54, %v3380_v49  ;;  %v2220_v29 = vadd.f32 %v2219_v59, %v2218_v56  ;;  %v2265_v60 = vpop.f32.mrb[55].mxu1 }
 0x163   :  { %v2266_v1 = vadd.f32 %v2265_v60, %v2264_v58 }
 0x164   :  { %v3407_v2 = vadd.f32 %v2263_v57, %v1617_v30  ;;  %v1620_v31 = vadd.f32 %v2220_v29, %v3383_v50 }
 0x166   :  { %v3410_v3 = vadd.f32 %v2266_v1, %v1620_v31  ;;  %v2221_v32 = vpop.f32.mrb[56].mxu0 }
 0x167   :  { %v2267_v4 = vpop.f32.mrb[56].mxu1  ;;  %v2222_v5 = vpop.f32.mrb[57].mxu0 }
 0x168   :  { %v2223_v6 = vadd.f32 %v2222_v5, %v2221_v32  ;;  %v2268_v7 = vpop.f32.mrb[57].mxu1  ;;  %v2224_v8 = vpop.f32.mrb[58].mxu0 }
 0x169   :  { %v2269_v9 = vadd.f32 %v2268_v7, %v2267_v4  ;;  %v2270_v46 = vpop.f32.mrb[58].mxu1  ;;  %v2225_v10 = vpop.f32.mrb[59].mxu0 }
 0x16a   :  { %v1625_v49 = vadd.f32 %v2223_v6, %v3386_v34  ;;  %v2271_v11 = vpop.f32.mrb[59].mxu1 }
 0x16c   :  { %v3413_v45 = vadd.f32 %v2269_v9, %v1625_v49 }
 0x16e   :  { %v2289_v17 = vpop.f32.mrb[60].mxu0 }
 0x16f   :  { %v2335_v18 = vpop.f32.mrb[60].mxu1  ;;  %v2290_v19 = vpop.f32.mrb[61].mxu0 }
 0x170   :  { %v2291_v50 = vadd.f32 %v2290_v19, %v2289_v17  ;;  %v2336_v20 = vpop.f32.mrb[61].mxu1  ;;  %v2292_v21 = vpop.f32.mrb[62].mxu0 }
 0x171   :  { %v2337_v22 = vadd.f32 %v2336_v20, %v2335_v18  ;;  %v2338_v23 = vpop.f32.mrb[62].mxu1  ;;  %v2293_v24 = vpop.f32.mrb[63].mxu0 }
 0x172   :  { %v1737_v25 = vadd.f32 %v2291_v50, %v3389_v12  ;;  %v2294_v61 = vadd.f32 %v2293_v24, %v2292_v21  ;;  %v2339_v26 = vpop.f32.mrb[63].mxu1 }
 0x173   :  { %v2340_v62 = vadd.f32 %v2339_v26, %v2338_v23 }
 0x174   :  { %v1809_v27 = vadd.f32 %v2337_v22, %v1737_v25  ;;  %v1740_v34 = vadd.f32 %v2294_v61, %v3392_v48 }
 0x176   :  { %v1846_v63 = vmax.f32 %v1809_v27, 0.0  ;;  %v1812_v33 = vadd.f32 %v2340_v62, %v1740_v34  ;;  %v2295_v35 = vpop.f32.mrb[64].mxu0 }
 0x177   :  { %v2341_v36 = vpop.f32.mrb[64].mxu1  ;;  %v2296_v37 = vpop.f32.mrb[65].mxu0 }
 0x178   :  { %1855 = vst [vmem:[%s3454_s3] sm:$0xff] %v1846_v63  ;;  %v1847_v38 = vmax.f32 %v1812_v33, 0.0  ;;  %v2297_v39 = vadd.f32 %v2296_v37, %v2295_v35  ;;  %v2342_v40 = vpop.f32.mrb[65].mxu1  ;;  %v2298_v41 = vpop.f32.mrb[66].mxu0 }
 0x179   :  { %v2343_v12 = vadd.f32 %v2342_v40, %v2341_v36  ;;  %v2344_v42 = vpop.f32.mrb[66].mxu1  ;;  %v2299_v43 = vpop.f32.mrb[67].mxu0 }
 0x17a   :  { %1856 = vst [vmem:[%s3454_s3 + $0x8] sm:$0xff] %v1847_v38  ;;  %v1745_v48 = vadd.f32 %v2297_v39, %v3395_v28  ;;  %v2300_v13 = vadd.f32 %v2299_v43, %v2298_v41  ;;  %v2345_v14 = vpop.f32.mrb[67].mxu1 }
 0x17b   :  { %v2346_v44 = vadd.f32 %v2345_v14, %v2344_v42 }
 0x17c   :  { %v1817_v15 = vadd.f32 %v2343_v12, %v1745_v48  ;;  %v1748_v51 = vadd.f32 %v2300_v13, %v3398_v0 }
 0x17e   :  { %v1848_v52 = vmax.f32 %v1817_v15, 0.0  ;;  %v1820_v53 = vadd.f32 %v2346_v44, %v1748_v51  ;;  %v2301_v54 = vpop.f32.mrb[68].mxu0 }
 0x17f   :  { %v2347_v55 = vpop.f32.mrb[68].mxu1  ;;  %v2302_v56 = vpop.f32.mrb[69].mxu0 }
 0x180   :  { %1857 = vst [vmem:[%s3454_s3 + $0x10] sm:$0xff] %v1848_v52  ;;  %v1849_v57 = vmax.f32 %v1820_v53, 0.0  ;;  %v2303_v58 = vadd.f32 %v2302_v56, %v2301_v54  ;;  %v2348_v59 = vpop.f32.mrb[69].mxu1  ;;  %v2304_v30 = vpop.f32.mrb[70].mxu0 }
 0x181   :  { %v2349_v28 = vadd.f32 %v2348_v59, %v2347_v55  ;;  %v2350_v29 = vpop.f32.mrb[70].mxu1  ;;  %v2305_v60 = vpop.f32.mrb[71].mxu0 }
 0x182   :  { %1858 = vst [vmem:[%s3454_s3 + $0x18] sm:$0xff] %v1849_v57  ;;  %v1753_v0 = vadd.f32 %v2303_v58, %v3401_v47  ;;  %v2306_v1 = vadd.f32 %v2305_v60, %v2304_v30  ;;  %v2351_v31 = vpop.f32.mrb[71].mxu1 }
 0x183   :  { %v2352_v32 = vadd.f32 %v2351_v31, %v2350_v29 }
 0x184   :  { %v1825_v4 = vadd.f32 %v2349_v28, %v1753_v0  ;;  %v1756_v5 = vadd.f32 %v2306_v1, %v3404_v16 }
 0x186   :  { %v1850_v6 = vmax.f32 %v1825_v4, 0.0  ;;  %v1828_v7 = vadd.f32 %v2352_v32, %v1756_v5  ;;  %v2307_v8 = vpop.f32.mrb[72].mxu0 }
 0x187   :  { %v2353_v9 = vpop.f32.mrb[72].mxu1  ;;  %v2308_v46 = vpop.f32.mrb[73].mxu0 }
 0x188   :  { %1859 = vst [vmem:[%s3454_s3 + $0x20] sm:$0xff] %v1850_v6  ;;  %v1851_v10 = vmax.f32 %v1828_v7, 0.0  ;;  %v2309_v49 = vadd.f32 %v2308_v46, %v2307_v8  ;;  %v2354_v11 = vpop.f32.mrb[73].mxu1  ;;  %v2310_v17 = vpop.f32.mrb[74].mxu0 }
 0x189   :  { %v2355_v47 = vadd.f32 %v2354_v11, %v2353_v9  ;;  %v2356_v18 = vpop.f32.mrb[74].mxu1  ;;  %v2311_v19 = vpop.f32.mrb[75].mxu0 }
 0x18a   :  { %1860 = vst [vmem:[%s3454_s3 + $0x28] sm:$0xff] %v1851_v10  ;;  %v1761_v16 = vadd.f32 %v2309_v49, %v3407_v2  ;;  %v2312_v50 = vadd.f32 %v2311_v19, %v2310_v17  ;;  %v2357_v20 = vpop.f32.mrb[75].mxu1 }
 0x18b   :  { %v2358_v21 = vadd.f32 %v2357_v20, %v2356_v18 }
 0x18c   :  { %v1833_v22 = vadd.f32 %v2355_v47, %v1761_v16  ;;  %v1764_v23 = vadd.f32 %v2312_v50, %v3410_v3 }
 0x18e   :  { %v1852_v24 = vmax.f32 %v1833_v22, 0.0  ;;  %v1836_v25 = vadd.f32 %v2358_v21, %v1764_v23  ;;  %v2313_v61 = vpop.f32.mrb[76].mxu0 }
 0x18f   :  { %v2359_v26 = vpop.f32.mrb[76].mxu1  ;;  %v2314_v62 = vpop.f32.mrb[77].mxu0 }
 0x190   :  { %1861 = vst [vmem:[%s3454_s3 + $0x30] sm:$0xff] %v1852_v24  ;;  %v1853_v27 = vmax.f32 %v1836_v25, 0.0  ;;  %v2315_v34 = vadd.f32 %v2314_v62, %v2313_v61  ;;  %v2360_v63 = vpop.f32.mrb[77].mxu1  ;;  %v2316_v33 = vpop.f32.mrb[78].mxu0 }
 0x191   :  { %v2361_v2 = vadd.f32 %v2360_v63, %v2359_v26  ;;  %v2362_v35 = vpop.f32.mrb[78].mxu1  ;;  %v2317_v36 = vpop.f32.mrb[79].mxu0 }
 0x192   :  { %1862 = vst [vmem:[%s3454_s3 + $0x38] sm:$0xff] %v1853_v27  ;;  %v1769_v3 = vadd.f32 %v2315_v34, %v3413_v45  ;;  %v2363_v37 = vpop.f32.mrb[79].mxu1 }
 0x194   :  { %v1841_v38 = vadd.f32 %v2361_v2, %v1769_v3 }
 0x196   :  { %v1854_v39 = vmax.f32 %v1841_v38, 0.0 }
 0x198   :  { %1863 = vst [vmem:[%s3454_s3 + $0x40] sm:$0xff] %v1854_v39 }

// kernel: doom_forward.6
= control target key start
LH: loop header
LB: loop body
LE: loop exit
PB: predicated region body
PF: predicated region fallthrough
CT: control target
= control target key end

     0   :  { %s1555_s1 = inlined_call_operand.vmem [shape: bf16[1152,128], index: 1, kind: input, shape index: {}]   ;;  %s1556_s0 = inlined_call_operand.vmem [shape: f32[32,1152], index: 0, kind: input, shape index: {}]   ;;  %s1557_s2 = inlined_call_operand.vmem [shape: f32[1,128], index: 2, kind: input, shape index: {}]   ;;  %s1558_s3 = inlined_call_operand.vmem [shape: f32[32,128], index: 3, kind: output, shape index: {}]  }
   0x1   :  { %v1124_v0 = vld [vmem:[%s1555_s1 + $0x40] sm:$0xff]   ;;  %v1128_v4 = vld [vmem:[%s1555_s1 + $0x48] sm:$0xff]   ;;  %v1132_v8 = vld [vmem:[%s1555_s1 + $0x50] sm:$0xff]  }
   0x2   :  { %v1125_v1 = vld [vmem:[%s1555_s1] sm:$0xff]   ;;  %982 = vmatprep.subr.bf16.mxu0 %v1124_v0  ;;  %v1129_v5 = vld [vmem:[%s1555_s1 + $0x8] sm:$0xff]   ;;  %v1133_v9 = vld [vmem:[%s1555_s1 + $0x10] sm:$0xff]  }
   0x3   :  { %v1126_v2 = vld [vmem:[%s1555_s1 + $0xc0] sm:$0xff]   ;;  %983 = vmatpush3.bf16.msra.mxu0 %v1125_v1  ;;  %v1130_v6 = vld [vmem:[%s1555_s1 + $0xc8] sm:$0xff]   ;;  %v1134_v10 = vld [vmem:[%s1555_s1 + $0xd0] sm:$0xff]  }
   0x4   :  { %v1127_v3 = vld [vmem:[%s1555_s1 + $0x80] sm:$0xff]   ;;  %1010 = vmatprep.subr.bf16.mxu1 %v1126_v2  ;;  %984 = vmatprep.subr.bf16.mxu0 %v1128_v4  ;;  %v1131_v7 = vld [vmem:[%s1555_s1 + $0x88] sm:$0xff]   ;;  %v1135_v11 = vld [vmem:[%s1555_s1 + $0x90] sm:$0xff]  }
   0x5   :  { %1011 = vmatpush3.bf16.msra.mxu1 %v1127_v3  ;;  %v1136_v12 = vld [vmem:[%s1555_s1 + $0x58] sm:$0xff]   ;;  %v1140_v16 = vld [vmem:[%s1555_s1 + $0x60] sm:$0xff]   ;;  %v1144_v20 = vld [vmem:[%s1555_s1 + $0x68] sm:$0xff]  }
   0x6   :  { %1012 = vmatprep.subr.bf16.mxu1 %v1130_v6  ;;  %v1137_v13 = vld [vmem:[%s1555_s1 + $0x18] sm:$0xff]   ;;  %v1141_v17 = vld [vmem:[%s1555_s1 + $0x20] sm:$0xff]   ;;  %v1145_v21 = vld [vmem:[%s1555_s1 + $0x28] sm:$0xff]  }
   0x7   :  { %985 = vmatpush3.bf16.msra.mxu0 %v1129_v5  ;;  %v1138_v14 = vld [vmem:[%s1555_s1 + $0xd8] sm:$0xff]   ;;  %v1142_v18 = vld [vmem:[%s1555_s1 + $0xe0] sm:$0xff]   ;;  %v1146_v22 = vld [vmem:[%s1555_s1 + $0xe8] sm:$0xff]  }
   0x8   :  { %986 = vmatprep.subr.bf16.mxu0 %v1132_v8  ;;  %v1139_v15 = vld [vmem:[%s1555_s1 + $0x98] sm:$0xff]   ;;  %v1143_v19 = vld [vmem:[%s1555_s1 + $0xa0] sm:$0xff]   ;;  %v1147_v23 = vld [vmem:[%s1555_s1 + $0xa8] sm:$0xff]  }
   0x9   :  { %1013 = vmatpush3.bf16.msra.mxu1 %v1131_v7  ;;  %v1148_v24 = vld [vmem:[%s1555_s1 + $0x70] sm:$0xff]   ;;  %v1152_v28 = vld [vmem:[%s1555_s1 + $0x78] sm:$0xff]   ;;  %v16_v31 = vld [vmem:[%s1556_s0 + $0x8] sm:$0xff] }
   0xa   :  { %1014 = vmatprep.subr.bf16.mxu1 %v1134_v10  ;;  %v1149_v25 = vld [vmem:[%s1555_s1 + $0x30] sm:$0xff]   ;;  %v1153_v29 = vld [vmem:[%s1555_s1 + $0x38] sm:$0xff]   ;;  %v15_v35 = vld [vmem:[%s1556_s0] sm:$0xff] }
   0xb   :  { %987 = vmatpush3.bf16.msra.mxu0 %v1133_v9  ;;  %v1150_v26 = vld [vmem:[%s1555_s1 + $0xf0] sm:$0xff]   ;;  %v1154_v30 = vld [vmem:[%s1555_s1 + $0xf8] sm:$0xff]   ;;  %v24_v36 = vld [vmem:[%s1556_s0 + $0x48] sm:$0xff] }
   0xc   :  { %988 = vmatprep.subr.bf16.mxu0 %v1136_v12  ;;  %v1151_v27 = vld [vmem:[%s1555_s1 + $0xb0] sm:$0xff]   ;;  %v1155_v34 = vld [vmem:[%s1555_s1 + $0xb8] sm:$0xff]   ;;  %v51_v37 = vpack.c.bf16 %v24_v36, %v15_v35  ;;  %v1156_v38 = vld [vmem:[%s1555_s1 + $0x140] sm:$0xff]  }
   0xd   :  { %1015 = vmatpush3.bf16.msra.mxu1 %v1135_v11  ;;  %v25_v32 = vld [vmem:[%s1556_s0 + $0x50] sm:$0xff]  ;;  %v18_v39 = vld [vmem:[%s1556_s0 + $0x18] sm:$0xff]  ;;  %v27_v40 = vld [vmem:[%s1556_s0 + $0x60] sm:$0xff] }
   0xe   :  { %1016 = vmatprep.subr.bf16.mxu1 %v1138_v14  ;;  %v52_v33 = vpack.c.bf16 %v25_v32, %v16_v31  ;;  %v54_v41 = vpack.c.bf16 %v27_v40, %v18_v39  ;;  %v1157_v42 = vld [vmem:[%s1555_s1 + $0x100] sm:$0xff]   ;;  %v17_v43 = vld [vmem:[%s1556_s0 + $0x10] sm:$0xff]  ;;  %v26_v44 = vld [vmem:[%s1556_s0 + $0x58] sm:$0xff] }
   0xf   :  { %989 = vmatpush3.bf16.msra.mxu0 %v1137_v13  ;;  %v53_v45 = vpack.c.bf16 %v26_v44, %v17_v43  ;;  %v1158_v46 = vld [vmem:[%s1555_s1 + $0x1c0] sm:$0xff]   ;;  %v1160_v48 = vld [vmem:[%s1555_s1 + $0x148] sm:$0xff]   ;;  %v1164_v52 = vld [vmem:[%s1555_s1 + $0x150] sm:$0xff]  }
  0x10   :  { %990 = vmatprep.subr.bf16.mxu0 %v1140_v16  ;;  %684 = vmatprep.mubr.bf16.mxu0 %v52_v33  ;;  %v1159_v47 = vld [vmem:[%s1555_s1 + $0x180] sm:$0xff]   ;;  %v1161_v49 = vld [vmem:[%s1555_s1 + $0x108] sm:$0xff]   ;;  %v1165_v53 = vld [vmem:[%s1555_s1 + $0x110] sm:$0xff]  }
  0x11   :  { %1017 = vmatpush3.bf16.msra.mxu1 %v1139_v15  ;;  %733 = vmatprep.mubr.bf16.mxu1 %v54_v41  ;;  %v1162_v50 = vld [vmem:[%s1555_s1 + $0x1c8] sm:$0xff]   ;;  %v1166_v54 = vld [vmem:[%s1555_s1 + $0x1d0] sm:$0xff]   ;;  %v1168_v56 = vld [vmem:[%s1555_s1 + $0x158] sm:$0xff]  }
  0x12   :  { %1018 = vmatprep.subr.bf16.mxu1 %v1142_v18  ;;  %v1163_v51 = vld [vmem:[%s1555_s1 + $0x188] sm:$0xff]   ;;  %v1167_v55 = vld [vmem:[%s1555_s1 + $0x190] sm:$0xff]   ;;  %v1169_v57 = vld [vmem:[%s1555_s1 + $0x118] sm:$0xff]  }
  0x13   :  { %991 = vmatpush3.bf16.msra.mxu0 %v1141_v17  ;;  %v1170_v58 = vld [vmem:[%s1555_s1 + $0x1d8] sm:$0xff]   ;;  %v1172_v60 = vld [vmem:[%s1555_s1 + $0x160] sm:$0xff]   ;;  %v1176_v0 = vld [vmem:[%s1555_s1 + $0x168] sm:$0xff]  }
  0x14   :  { %992 = vmatprep.subr.bf16.mxu0 %v1144_v20  ;;  %v1171_v59 = vld [vmem:[%s1555_s1 + $0x198] sm:$0xff]   ;;  %v1173_v61 = vld [vmem:[%s1555_s1 + $0x120] sm:$0xff]   ;;  %v1177_v4 = vld [vmem:[%s1555_s1 + $0x128] sm:$0xff]  }
  0x15   :  { %1019 = vmatpush3.bf16.msra.mxu1 %v1143_v19  ;;  %v1174_v62 = vld [vmem:[%s1555_s1 + $0x1e0] sm:$0xff]   ;;  %v34_v1 = vld [vmem:[%s1556_s0 + $0x98] sm:$0xff]  ;;  %v33_v5 = vld [vmem:[%s1556_s0 + $0x90] sm:$0xff] }
  0x16   :  { %1020 = vmatprep.subr.bf16.mxu1 %v1146_v22  ;;  %v1175_v63 = vld [vmem:[%s1555_s1 + $0x1a0] sm:$0xff]   ;;  %v42_v6 = vld [vmem:[%s1556_s0 + $0xd8] sm:$0xff]  ;;  %v1178_v8 = vld [vmem:[%s1555_s1 + $0x1e8] sm:$0xff]  }
  0x17   :  { %993 = vmatpush3.bf16.msra.mxu0 %v1145_v21  ;;  %v43_v2 = vld [vmem:[%s1556_s0 + $0xe0] sm:$0xff]  ;;  %v60_v7 = vpack.c.bf16 %v42_v6, %v33_v5  ;;  %v36_v9 = vld [vmem:[%s1556_s0 + $0xa8] sm:$0xff]  ;;  %v45_v10 = vld [vmem:[%s1556_s0 + $0xf0] sm:$0xff] }
  0x18   :  { %994 = vmatprep.subr.bf16.mxu0 %v1148_v24  ;;  %v61_v3 = vpack.c.bf16 %v43_v2, %v34_v1  ;;  %v63_v11 = vpack.c.bf16 %v45_v10, %v36_v9  ;;  %v1179_v12 = vld [vmem:[%s1555_s1 + $0x1a8] sm:$0xff]   ;;  %v35_v13 = vld [vmem:[%s1556_s0 + $0xa0] sm:$0xff]  ;;  %v1180_v16 = vld [vmem:[%s1555_s1 + $0x170] sm:$0xff]  }
  0x19   :  { %1021 = vmatpush3.bf16.msra.mxu1 %v1147_v23  ;;  %v44_v14 = vld [vmem:[%s1556_s0 + $0xe8] sm:$0xff]  ;;  %v1181_v17 = vld [vmem:[%s1555_s1 + $0x130] sm:$0xff]   ;;  %v1184_v20 = vld [vmem:[%s1555_s1 + $0x178] sm:$0xff]  }
  0x1a   :  { %1022 = vmatprep.subr.bf16.mxu1 %v1150_v26  ;;  %v62_v15 = vpack.c.bf16 %v44_v14, %v35_v13  ;;  %v1182_v18 = vld [vmem:[%s1555_s1 + $0x1f0] sm:$0xff]   ;;  %v1185_v21 = vld [vmem:[%s1555_s1 + $0x138] sm:$0xff]   ;;  %v20_v23 = vld [vmem:[%s1556_s0 + $0x28] sm:$0xff] }
  0x1b   :  { %995 = vmatpush3.bf16.msra.mxu0 %v1149_v25  ;;  %v1183_v19 = vld [vmem:[%s1555_s1 + $0x1b0] sm:$0xff]   ;;  %v1186_v22 = vld [vmem:[%s1555_s1 + $0x1f8] sm:$0xff]   ;;  %v31_v32 = vld [vmem:[%s1556_s0 + $0x80] sm:$0xff] }
  0x1c   :  { %996 = vmatprep.subr.bf16.mxu0 %v1152_v28  ;;  %v29_v24 = vld [vmem:[%s1556_s0 + $0x70] sm:$0xff]  ;;  %v1187_v26 = vld [vmem:[%s1555_s1 + $0x1b8] sm:$0xff]   ;;  %v28_v28 = vld [vmem:[%s1556_s0 + $0x68] sm:$0xff] }
  0x1d   :  { %1023 = vmatpush3.bf16.msra.mxu1 %v1151_v27  ;;  %v56_v25 = vpack.c.bf16 %v29_v24, %v20_v23  ;;  %v19_v27 = vld [vmem:[%s1556_s0 + $0x20] sm:$0xff]  ;;  %v22_v31 = vld [vmem:[%s1556_s0 + $0x38] sm:$0xff]  ;;  %v21_v33 = vld [vmem:[%s1556_s0 + $0x30] sm:$0xff] }
  0x1e   :  { %1024 = vmatprep.subr.bf16.mxu1 %v1154_v30  ;;  %v1188_v30 = vld [vmem:[%s1555_s1 + $0x200] sm:$0xff]   ;;  %v58_v35 = vpack.c.bf16 %v31_v32, %v22_v31  ;;  %v37_v40 = vld [vmem:[%s1556_s0 + $0xb0] sm:$0xff]  ;;  %v40_v44 = vld [vmem:[%s1556_s0 + $0xc8] sm:$0xff] }
  0x1f   :  { %997 = vmatpush3.bf16.msra.mxu0 %v1153_v29  ;;  %v55_v29 = vpack.c.bf16 %v28_v28, %v19_v27  ;;  %v47_v39 = vld [vmem:[%s1556_s0 + $0x100] sm:$0xff]  ;;  %v1190_v43 = vld [vmem:[%s1555_s1 + $0x210] sm:$0xff]  }
  0x20   :  { %1038 = vmatprep.subr.bf16.mxu0 %v1156_v38  ;;  %v38_v38 = vld [vmem:[%s1556_s0 + $0xb8] sm:$0xff] }
  0x21   :  { %1025 = vmatpush3.bf16.msra.mxu1 %v1155_v34  ;;  %v30_v34 = vld [vmem:[%s1556_s0 + $0x78] sm:$0xff]  ;;  %v65_v41 = vpack.c.bf16 %v47_v39, %v38_v38 }
  0x22   :  { %685 = vmatmul.mubr.bf16.vlgmr.msra.gmra.mrb[0].mxu0 %v51_v37  ;;  %1066 = vmatprep.subr.bf16.mxu1 %v1158_v46  ;;  %v57_v36 = vpack.c.bf16 %v30_v34, %v21_v33  ;;  %v1189_v37 = vld [vmem:[%s1555_s1 + $0x208] sm:$0xff]  }
  0x23   :  { %1039 = vmatpush3.bf16.msra.mxu0 %v1157_v42  ;;  %692 = vmatprep.mubr.bf16.mxu0 %v61_v3  ;;  %v46_v42 = vld [vmem:[%s1556_s0 + $0xf8] sm:$0xff] }
  0x24   :  { %734 = vmatmul.mubr.bf16.vlgmr.msra.gmra.mrb[0].mxu1 %v53_v45  ;;  %1040 = vmatprep.subr.bf16.mxu0 %v1160_v48  ;;  %v49_v45 = vld [vmem:[%s1556_s0 + $0x110] sm:$0xff]  ;;  %v64_v46 = vpack.c.bf16 %v46_v42, %v37_v40  ;;  %v39_v48 = vld [vmem:[%s1556_s0 + $0xc0] sm:$0xff] }
  0x25   :  { %1067 = vmatpush3.bf16.msra.mxu1 %v1159_v47  ;;  %741 = vmatprep.mubr.bf16.mxu1 %v63_v11  ;;  %v67_v47 = vpack.c.bf16 %v49_v45, %v40_v44 }
  0x26   :  { %1068 = vmatprep.subr.bf16.mxu1 %v1162_v50  ;;  %v1191_v50 = vld [vmem:[%s1555_s1 + $0x218] sm:$0xff]  }
  0x27   :  { %1041 = vmatpush3.bf16.msra.mxu0 %v1161_v49  ;;  %v48_v49 = vld [vmem:[%s1556_s0 + $0x108] sm:$0xff] }
  0x28   :  { %1042 = vmatprep.subr.bf16.mxu0 %v1164_v52  ;;  %v23_v52 = vld [vmem:[%s1556_s0 + $0x40] sm:$0xff] }
  0x29   :  { %1069 = vmatpush3.bf16.msra.mxu1 %v1163_v51  ;;  %v66_v51 = vpack.c.bf16 %v48_v49, %v39_v48 }
  0x2a   :  { %1070 = vmatprep.subr.bf16.mxu1 %v1166_v54  ;;  %693 = vmatmul.mubr.bf16.gmra.mrb[4].mxu0 %v60_v7  ;;  %v32_v54 = vld [vmem:[%s1556_s0 + $0x88] sm:$0xff] }
  0x2b   :  { %1043 = vmatpush3.bf16.msra.mxu0 %v1165_v53  ;;  %782 = vmatprep.mubr.bf16.mxu0 %v56_v25  ;;  %v1192_v53 = vld [vmem:[%s1555_s1 + $0x220] sm:$0xff]  }
  0x2c   :  { %1044 = vmatprep.subr.bf16.mxu0 %v1168_v56  ;;  %742 = vmatmul.mubr.bf16.gmra.mrb[4].mxu1 %v62_v15  ;;  %v1193_v56 = vld [vmem:[%s1555_s1 + $0x228] sm:$0xff]  }
  0x2d   :  { %1071 = vmatpush3.bf16.msra.mxu1 %v1167_v55  ;;  %831 = vmatprep.mubr.bf16.mxu1 %v58_v35  ;;  %v59_v55 = vpack.c.bf16 %v32_v54, %v23_v52 }
  0x2e   :  { %1072 = vmatprep.subr.bf16.mxu1 %v1170_v58  ;;  %v1195_v58 = vld [vmem:[%s1555_s1 + $0x238] sm:$0xff]  }
  0x2f   :  { %1045 = vmatpush3.bf16.msra.mxu0 %v1169_v57  ;;  %v1194_v57 = vld [vmem:[%s1555_s1 + $0x230] sm:$0xff]  }
  0x30   :  { %1046 = vmatprep.subr.bf16.mxu0 %v1172_v60  ;;  %v50_v60 = vld [vmem:[%s1556_s0 + $0x118] sm:$0xff] }
  0x31   :  { %1073 = vmatpush3.bf16.msra.mxu1 %v1171_v59  ;;  %v41_v59 = vld [vmem:[%s1556_s0 + $0xd0] sm:$0xff] }
  0x32   :  { %1074 = vmatprep.subr.bf16.mxu1 %v1174_v62 }
  0x33   :  { %1047 = vmatpush3.bf16.msra.mxu0 %v1173_v61  ;;  %v68_v61 = vpack.c.bf16 %v50_v60, %v41_v59 }
  0x34   :  { %1048 = vmatprep.subr.bf16.mxu0 %v1176_v0 }
  0x35   :  { %1075 = vmatpush3.bf16.msra.mxu1 %v1175_v63  ;;  %v909_v63 = vld [vmem:[%s1557_s2] ss:$0 sm:$0xff] }
  0x36   :  { %1076 = vmatprep.subr.bf16.mxu1 %v1178_v8 }
  0x37   :  { %1049 = vmatpush3.bf16.msra.mxu0 %v1177_v4 }
  0x38   :  { %1050 = vmatprep.subr.bf16.mxu0 %v1180_v16 }
  0x39   :  { %1077 = vmatpush3.bf16.msra.mxu1 %v1179_v12 }
  0x3a   :  { %1078 = vmatprep.subr.bf16.mxu1 %v1182_v18 }
  0x3b   :  { %1051 = vmatpush3.bf16.msra.mxu0 %v1181_v17 }
  0x3c   :  { %1052 = vmatprep.subr.bf16.mxu0 %v1184_v20 }
  0x3d   :  { %1079 = vmatpush3.bf16.msra.mxu1 %v1183_v19 }
  0x3e   :  { %1080 = vmatprep.subr.bf16.mxu1 %v1186_v22 }
  0x3f   :  { %1053 = vmatpush3.bf16.msra.mxu0 %v1185_v21 }
  0x40   :  { %1104 = vmatprep.subr.bf16.mxu0 %v1188_v30 }
  0x41   :  { %1081 = vmatpush3.bf16.msra.mxu1 %v1187_v26 }
  0x42   :  { %783 = vmatmul.mubr.bf16.vlgmr.msra.gmra.mrb[8].mxu0 %v55_v29 }
  0x43   :  { %1105 = vmatpush3.bf16.msra.mxu0 %v1188_v30  ;;  %790 = vmatprep.mubr.bf16.mxu0 %v65_v41 }
  0x44   :  { %1106 = vmatprep.subr.bf16.mxu0 %v1189_v37  ;;  %832 = vmatmul.mubr.bf16.vlgmr.msra.gmra.mrb[8].mxu1 %v57_v36 }
  0x45   :  { %839 = vmatprep.mubr.bf16.mxu1 %v67_v47 }
  0x47   :  { %1107 = vmatpush3.bf16.msra.mxu0 %v1189_v37 }
  0x48   :  { %1108 = vmatprep.subr.bf16.mxu0 %v1190_v43 }
  0x4a   :  { %791 = vmatmul.mubr.bf16.gmra.mrb[12].mxu0 %v64_v46 }
  0x4b   :  { %1109 = vmatpush3.bf16.msra.mxu0 %v1190_v43  ;;  %1120 = vmatprep.mubr.bf16.mxu0 %v59_v55 }
  0x4c   :  { %1110 = vmatprep.subr.bf16.mxu0 %v1191_v50  ;;  %840 = vmatmul.mubr.bf16.gmra.mrb[12].mxu1 %v66_v51 }
  0x4f   :  { %1111 = vmatpush3.bf16.msra.mxu0 %v1191_v50 }
  0x50   :  { %1112 = vmatprep.subr.bf16.mxu0 %v1192_v53 }
  0x53   :  { %1113 = vmatpush3.bf16.msra.mxu0 %v1192_v53 }
  0x54   :  { %1114 = vmatprep.subr.bf16.mxu0 %v1193_v56 }
  0x57   :  { %1115 = vmatpush3.bf16.msra.mxu0 %v1193_v56 }
  0x58   :  { %1116 = vmatprep.subr.bf16.mxu0 %v1194_v57 }
  0x5b   :  { %1117 = vmatpush3.bf16.msra.mxu0 %v1194_v57 }
  0x5c   :  { %1118 = vmatprep.subr.bf16.mxu0 %v1195_v58 }
  0x5f   :  { %1119 = vmatpush3.bf16.msra.mxu0 %v1195_v58 }
  0x62   :  { %1121 = vmatmul.mubr.bf16.vlgmr.msra.gmra.mrb[16].mxu0 %v68_v61 }
  0xf5   :  { %v998_v62 = vpop.f32.mrb[0].mxu0 }
  0xf6   :  { %v999_v0 = vpop.f32.mrb[1].mxu0 }
  0xf7   :  { %v1000_v1 = vadd.f32 %v999_v0, %v998_v62  ;;  %v1001_v2 = vpop.f32.mrb[2].mxu0  ;;  %v1026_v3 = vpop.f32.mrb[0].mxu1 }
  0xf8   :  { %v1002_v4 = vpop.f32.mrb[3].mxu0  ;;  %v1027_v7 = vpop.f32.mrb[1].mxu1 }
  0xf9   :  { %v687_v5 = vadd.f32 %v1000_v1, %v909_v63  ;;  %v1003_v6 = vadd.f32 %v1002_v4, %v1001_v2  ;;  %v1028_v8 = vadd.f32 %v1027_v7, %v1026_v3  ;;  %v1029_v9 = vpop.f32.mrb[2].mxu1 }
  0xfa   :  { %v1030_v11 = vpop.f32.mrb[3].mxu1 }
  0xfb   :  { %v690_v10 = vadd.f32 %v1003_v6, %v909_v63  ;;  %v736_v12 = vadd.f32 %v1028_v8, %v687_v5  ;;  %v1031_v13 = vadd.f32 %v1030_v11, %v1029_v9 }
  0xfd   :  { %v739_v14 = vadd.f32 %v1031_v13, %v690_v10  ;;  %v1004_v15 = vpop.f32.mrb[4].mxu0 }
  0xfe   :  { %v1005_v16 = vpop.f32.mrb[5].mxu0 }
  0xff   :  { %v1006_v17 = vadd.f32 %v1005_v16, %v1004_v15  ;;  %v1007_v18 = vpop.f32.mrb[6].mxu0  ;;  %v1032_v21 = vpop.f32.mrb[4].mxu1 }
 0x100   :  { %v1008_v19 = vpop.f32.mrb[7].mxu0  ;;  %v1033_v23 = vpop.f32.mrb[5].mxu1 }
 0x101   :  { %v695_v20 = vadd.f32 %v1006_v17, %v909_v63  ;;  %v1009_v22 = vadd.f32 %v1008_v19, %v1007_v18  ;;  %v1034_v25 = vadd.f32 %v1033_v23, %v1032_v21  ;;  %v1035_v26 = vpop.f32.mrb[6].mxu1 }
 0x102   :  { %v1036_v27 = vpop.f32.mrb[7].mxu1 }
 0x103   :  { %v698_v24 = vadd.f32 %v1009_v22, %v909_v63  ;;  %v744_v28 = vadd.f32 %v1034_v25, %v695_v20  ;;  %v1037_v29 = vadd.f32 %v1036_v27, %v1035_v26 }
 0x105   :  { %v747_v30 = vadd.f32 %v1037_v29, %v698_v24 }
 0x115   :  { %v1054_v31 = vpop.f32.mrb[8].mxu0 }
 0x116   :  { %v1055_v32 = vpop.f32.mrb[9].mxu0 }
 0x117   :  { %v1056_v33 = vadd.f32 %v1055_v32, %v1054_v31  ;;  %v1057_v34 = vpop.f32.mrb[10].mxu0  ;;  %v1082_v35 = vpop.f32.mrb[8].mxu1 }
 0x118   :  { %v1058_v36 = vpop.f32.mrb[11].mxu0  ;;  %v1083_v39 = vpop.f32.mrb[9].mxu1 }
 0x119   :  { %v785_v37 = vadd.f32 %v1056_v33, %v736_v12  ;;  %v1059_v38 = vadd.f32 %v1058_v36, %v1057_v34  ;;  %v1084_v40 = vadd.f32 %v1083_v39, %v1082_v35  ;;  %v1085_v41 = vpop.f32.mrb[10].mxu1 }
 0x11a   :  { %v1086_v43 = vpop.f32.mrb[11].mxu1 }
 0x11b   :  { %v788_v42 = vadd.f32 %v1059_v38, %v739_v14  ;;  %v1087_v44 = vadd.f32 %v1086_v43, %v1085_v41  ;;  %v834_v45 = vadd.f32 %v1084_v40, %v785_v37 }
 0x11d   :  { %v1060_v46 = vpop.f32.mrb[12].mxu0  ;;  %v837_v48 = vadd.f32 %v1087_v44, %v788_v42 }
 0x11e   :  { %v1061_v47 = vpop.f32.mrb[13].mxu0 }
 0x11f   :  { %v1062_v49 = vadd.f32 %v1061_v47, %v1060_v46  ;;  %v1063_v50 = vpop.f32.mrb[14].mxu0  ;;  %v1088_v51 = vpop.f32.mrb[12].mxu1 }
 0x120   :  { %v1064_v52 = vpop.f32.mrb[15].mxu0  ;;  %v1089_v55 = vpop.f32.mrb[13].mxu1 }
 0x121   :  { %v793_v53 = vadd.f32 %v1062_v49, %v744_v28  ;;  %v1065_v54 = vadd.f32 %v1064_v52, %v1063_v50  ;;  %v1090_v56 = vadd.f32 %v1089_v55, %v1088_v51  ;;  %v1091_v57 = vpop.f32.mrb[14].mxu1 }
 0x122   :  { %v1092_v59 = vpop.f32.mrb[15].mxu1 }
 0x123   :  { %v796_v58 = vadd.f32 %v1065_v54, %v747_v30  ;;  %v1093_v60 = vadd.f32 %v1092_v59, %v1091_v57  ;;  %v842_v61 = vadd.f32 %v1090_v56, %v793_v53 }
 0x125   :  { %v845_v62 = vadd.f32 %v1093_v60, %v796_v58 }
 0x135   :  { %v1122_v63 = vpop.f32.mrb[16].mxu0 }
 0x136   :  { %v891_v0 = vadd.f32 %v1122_v63, %v842_v61  ;;  %v882_v1 = vpop.f32.mrb[17].mxu0 }
 0x137   :  { %v883_v2 = vadd.f32 %v882_v1, %v834_v45  ;;  %v1123_v3 = vpop.f32.mrb[18].mxu0 }
 0x138   :  { %v899_v4 = vmax.f32 %v891_v0, 0.0  ;;  %v894_v5 = vadd.f32 %v1123_v3, %v845_v62  ;;  %v885_v6 = vpop.f32.mrb[19].mxu0 }
 0x139   :  { %v897_v7 = vmax.f32 %v883_v2, 0.0  ;;  %v886_v8 = vadd.f32 %v885_v6, %v837_v48 }
 0x13a   :  { %903 = vst [vmem:[%s1558_s3 + $0x10] sm:$0xff] %v899_v4  ;;  %v900_v9 = vmax.f32 %v894_v5, 0.0 }
 0x13b   :  { %901 = vst [vmem:[%s1558_s3] sm:$0xff] %v897_v7  ;;  %v898_v10 = vmax.f32 %v886_v8, 0.0 }
 0x13c   :  { %904 = vst [vmem:[%s1558_s3 + $0x18] sm:$0xff] %v900_v9 }
 0x13d   :  { %902 = vst [vmem:[%s1558_s3 + $0x8] sm:$0xff] %v898_v10 }

// kernel: doom_forward.7
= control target key start
LH: loop header
LB: loop body
LE: loop exit
PB: predicated region body
PF: predicated region fallthrough
CT: control target
= control target key end

     0   :  { %v5725_v36 = vmov 1983009808   ;;  %v34_v38 = vlaneseq  ;;  %s7493_s0 = inlined_call_operand.vmem [shape: f32[2,2048], index: 0, kind: input, shape index: {}]   ;;  %s7494_s1 = inlined_call_operand.vmem [shape: bf16[2048,512], index: 1, kind: input, shape index: {}]   ;;  %s7495_s2 = inlined_call_operand.vmem [shape: f32[1,512], index: 2, kind: input, shape index: {}]   ;;  %s7496_s3 = inlined_call_operand.vmem [shape: bf16[512,128], index: 3, kind: input, shape index: {}]   ;;  %s7497_s4 = inlined_call_operand.vmem [shape: f32[1,128], index: 4, kind: input, shape index: {}]   ;;  %s7498_s5 = inlined_call_operand.hbm [shape: f32[2,128], index: 5, kind: output, shape index: {}]  }
   0x1   :  { %v4897_v0 = vld [vmem:[%s7494_s1 + $0x4] ss:$16 sps:$4 sm:$0xff]   ;;  %v4899_v1 = vld [vmem:[%s7494_s1 + $0xc] ss:$16 sps:$4 sm:$0xff]   ;;  %v4901_v2 = vld [vmem:[%s7494_s1] ss:$16 sps:$4 sm:$0xff]   ;;  %v32_v37 = vunpack.c.l.s4 %v5725_v36 }
   0x2   :  { %3224 = vmatprep.subr.bf16.mxu0 %v4897_v0  ;;  %v4902_v3 = vld [vmem:[%s7494_s1 + $0x8] ss:$16 sps:$4 sm:$0xff]   ;;  %3552 = vmatprep.subr.bf16.mxu1 %v4899_v1  ;;  %v4903_v4 = vld [vmem:[%s7494_s1 + $0x24] ss:$16 sps:$4 sm:$0xff]   ;;  %v4905_v5 = vld [vmem:[%s7494_s1 + $0x2c] ss:$16 sps:$4 sm:$0xff]  }
   0x3   :  { %3225 = vmatpush1.bf16.msra.mxu0 %v4901_v2  ;;  %3553 = vmatpush1.bf16.msra.mxu1 %v4902_v3  ;;  %v4907_v6 = vld [vmem:[%s7494_s1 + $0x20] ss:$16 sps:$4 sm:$0xff]   ;;  %v4908_v7 = vld [vmem:[%s7494_s1 + $0x28] ss:$16 sps:$4 sm:$0xff]   ;;  %v4909_v8 = vld [vmem:[%s7494_s1 + $0x44] ss:$16 sps:$4 sm:$0xff]   ;;  %v33_v42 = vunpack.c.0.s8 %v32_v37 }
   0x4   :  { %3226 = vmatprep.subr.bf16.mxu0 %v4903_v4  ;;  %3554 = vmatprep.subr.bf16.mxu1 %v4905_v5  ;;  %v4911_v9 = vld [vmem:[%s7494_s1 + $0x4c] ss:$16 sps:$4 sm:$0xff]   ;;  %v4913_v10 = vld [vmem:[%s7494_s1 + $0x40] ss:$16 sps:$4 sm:$0xff]   ;;  %v4914_v11 = vld [vmem:[%s7494_s1 + $0x48] ss:$16 sps:$4 sm:$0xff]  }
   0x5   :  { %v4915_v12 = vld [vmem:[%s7494_s1 + $0x64] ss:$16 sps:$4 sm:$0xff]   ;;  %v4917_v13 = vld [vmem:[%s7494_s1 + $0x6c] ss:$16 sps:$4 sm:$0xff]   ;;  %v4919_v14 = vld [vmem:[%s7494_s1 + $0x60] ss:$16 sps:$4 sm:$0xff]  }
   0x6   :  { %v4920_v15 = vld [vmem:[%s7494_s1 + $0x68] ss:$16 sps:$4 sm:$0xff]   ;;  %v4921_v16 = vld [vmem:[%s7494_s1 + $0x84] ss:$16 sps:$4 sm:$0xff]   ;;  %v4923_v17 = vld [vmem:[%s7494_s1 + $0x8c] ss:$16 sps:$4 sm:$0xff]  }
   0x7   :  { %3227 = vmatpush1.bf16.msra.mxu0 %v4907_v6  ;;  %3555 = vmatpush1.bf16.msra.mxu1 %v4908_v7  ;;  %v4925_v18 = vld [vmem:[%s7494_s1 + $0x80] ss:$16 sps:$4 sm:$0xff]   ;;  %v4926_v19 = vld [vmem:[%s7494_s1 + $0x88] ss:$16 sps:$4 sm:$0xff]   ;;  %v4927_v20 = vld [vmem:[%s7494_s1 + $0xa4] ss:$16 sps:$4 sm:$0xff]  }
   0x8   :  { %3228 = vmatprep.subr.bf16.mxu0 %v4909_v8  ;;  %3556 = vmatprep.subr.bf16.mxu1 %v4911_v9  ;;  %v4929_v21 = vld [vmem:[%s7494_s1 + $0xac] ss:$16 sps:$4 sm:$0xff]   ;;  %v4931_v22 = vld [vmem:[%s7494_s1 + $0xa0] ss:$16 sps:$4 sm:$0xff]   ;;  %v4932_v23 = vld [vmem:[%s7494_s1 + $0xa8] ss:$16 sps:$4 sm:$0xff]  }
   0x9   :  { %v4933_v24 = vld [vmem:[%s7494_s1 + $0xc4] ss:$16 sps:$4 sm:$0xff]   ;;  %v4935_v25 = vld [vmem:[%s7494_s1 + $0xcc] ss:$16 sps:$4 sm:$0xff]   ;;  %v4937_v26 = vld [vmem:[%s7494_s1 + $0xc0] ss:$16 sps:$4 sm:$0xff]  }
   0xa   :  { %v4938_v27 = vld [vmem:[%s7494_s1 + $0xc8] ss:$16 sps:$4 sm:$0xff]   ;;  %v4939_v28 = vld [vmem:[%s7494_s1 + $0xe4] ss:$16 sps:$4 sm:$0xff]   ;;  %v4941_v29 = vld [vmem:[%s7494_s1 + $0xec] ss:$16 sps:$4 sm:$0xff]  }
   0xb   :  { %3229 = vmatpush1.bf16.msra.mxu0 %v4913_v10  ;;  %3557 = vmatpush1.bf16.msra.mxu1 %v4914_v11  ;;  %v4943_v30 = vld [vmem:[%s7494_s1 + $0xe0] ss:$16 sps:$4 sm:$0xff]   ;;  %v4944_v31 = vld [vmem:[%s7494_s1 + $0xe8] ss:$16 sps:$4 sm:$0xff]   ;;  %v4945_v32 = vld [vmem:[%s7494_s1 + $0x104] ss:$16 sps:$4 sm:$0xff]  }
   0xc   :  { %3230 = vmatprep.subr.bf16.mxu0 %v4915_v12  ;;  %3558 = vmatprep.subr.bf16.mxu1 %v4917_v13  ;;  %v4947_v33 = vld [vmem:[%s7494_s1 + $0x10c] ss:$16 sps:$4 sm:$0xff]   ;;  %v4949_v34 = vld [vmem:[%s7494_s1 + $0x100] ss:$16 sps:$4 sm:$0xff]   ;;  %v4950_v35 = vld [vmem:[%s7494_s1 + $0x108] ss:$16 sps:$4 sm:$0xff]  }
   0xd   :  { %v4951_v39 = vld [vmem:[%s7494_s1 + $0x124] ss:$16 sps:$4 sm:$0xff]   ;;  %v4953_v40 = vld [vmem:[%s7494_s1 + $0x12c] ss:$16 sps:$4 sm:$0xff]   ;;  %v4955_v41 = vld [vmem:[%s7494_s1 + $0x120] ss:$16 sps:$4 sm:$0xff]  }
   0xe   :  { %v5874_v43 = vshrl.u32 %v34_v38, 7  ;;  %v4956_v44 = vld [vmem:[%s7494_s1 + $0x128] ss:$16 sps:$4 sm:$0xff]   ;;  %v4957_v45 = vld [vmem:[%s7494_s1 + $0x144] ss:$16 sps:$4 sm:$0xff]  }
   0xf   :  { %3231 = vmatpush1.bf16.msra.mxu0 %v4919_v14  ;;  %3559 = vmatpush1.bf16.msra.mxu1 %v4920_v15  ;;  %v4959_v46 = vld [vmem:[%s7494_s1 + $0x14c] ss:$16 sps:$4 sm:$0xff]   ;;  %v4961_v47 = vld [vmem:[%s7494_s1 + $0x140] ss:$16 sps:$4 sm:$0xff]   ;;  %v4962_v48 = vld [vmem:[%s7494_s1 + $0x148] ss:$16 sps:$4 sm:$0xff]  }
  0x10   :  { %3232 = vmatprep.subr.bf16.mxu0 %v4921_v16  ;;  %3560 = vmatprep.subr.bf16.mxu1 %v4923_v17  ;;  %v5892_v49 = vsub.s32 %v33_v42, %v5874_v43  ;;  %v4963_v50 = vld [vmem:[%s7494_s1 + $0x164] ss:$16 sps:$4 sm:$0xff]   ;;  %v4965_v51 = vld [vmem:[%s7494_s1 + $0x16c] ss:$16 sps:$4 sm:$0xff]   ;;  %v4967_v53 = vld [vmem:[%s7494_s1 + $0x160] ss:$16 sps:$4 sm:$0xff]  }
  0x11   :  { %v22_v52 = vld [vmem:[%s7493_s0] sm:$0xff]  ;;  %v4968_v55 = vld [vmem:[%s7494_s1 + $0x168] ss:$16 sps:$4 sm:$0xff]   ;;  %v4971_v57 = vld [vmem:[%s7494_s1 + $0x18c] ss:$16 sps:$4 sm:$0xff]  }
  0x12   :  { %v37_v54 = vrot.slane %v22_v52, %v5892_v49  ;;  %v4969_v56 = vld [vmem:[%s7494_s1 + $0x184] ss:$16 sps:$4 sm:$0xff]   ;;  %v4973_v59 = vld [vmem:[%s7494_s1 + $0x180] ss:$16 sps:$4 sm:$0xff]   ;;  %v4974_v61 = vld [vmem:[%s7494_s1 + $0x188] ss:$16 sps:$4 sm:$0xff]   ;;  %v30_v4 = vcombine.high %v22_v52, %v22_v52 }
  0x13   :  { %3233 = vmatpush1.bf16.msra.mxu0 %v4925_v18  ;;  %3561 = vmatpush1.bf16.msra.mxu1 %v4926_v19  ;;  %v4975_v62 = vld [vmem:[%s7494_s1 + $0x1a4] ss:$16 sps:$4 sm:$0xff]   ;;  %v4977_v63 = vld [vmem:[%s7494_s1 + $0x1ac] ss:$16 sps:$4 sm:$0xff]   ;;  %v4979_v0 = vld [vmem:[%s7494_s1 + $0x1a0] ss:$16 sps:$4 sm:$0xff]  }
  0x14   :  { %3234 = vmatprep.subr.bf16.mxu0 %v4927_v20  ;;  %3562 = vmatprep.subr.bf16.mxu1 %v4929_v21  ;;  %v45_v58 = vcombine.high %v37_v54, %v37_v54  ;;  %v4980_v1 = vld [vmem:[%s7494_s1 + $0x1a8] ss:$16 sps:$4 sm:$0xff]   ;;  %v4981_v2 = vld [vmem:[%s7494_s1 + $0x1c4] ss:$16 sps:$4 sm:$0xff]   ;;  %v4983_v3 = vld [vmem:[%s7494_s1 + $0x1cc] ss:$16 sps:$4 sm:$0xff]   ;;  %v5953_v9 = vrot.slane %v30_v4, %v5892_v49  ;;  %v114_v16 = vpack.c.bf16 %v37_v54, %v37_v54 }
  0x15   :  { %v4985_v5 = vld [vmem:[%s7494_s1 + $0x1c0] ss:$16 sps:$4 sm:$0xff]   ;;  %v4986_v6 = vld [vmem:[%s7494_s1 + $0x1c8] ss:$16 sps:$4 sm:$0xff]   ;;  %v4987_v7 = vld [vmem:[%s7494_s1 + $0x1e4] ss:$16 sps:$4 sm:$0xff]  }
  0x16   :  { %v115_v60 = vpack.c.bf16 %v45_v58, %v45_v58  ;;  %v4989_v8 = vld [vmem:[%s7494_s1 + $0x1ec] ss:$16 sps:$4 sm:$0xff]   ;;  %v4991_v10 = vld [vmem:[%s7494_s1 + $0x1e0] ss:$16 sps:$4 sm:$0xff]   ;;  %v4992_v11 = vld [vmem:[%s7494_s1 + $0x1e8] ss:$16 sps:$4 sm:$0xff]   ;;  %v46_v14 = vcombine.high %v5953_v9, %v5953_v9 }
  0x17   :  { %3235 = vmatpush1.bf16.msra.mxu0 %v4931_v22  ;;  %3563 = vmatpush1.bf16.msra.mxu1 %v4932_v23  ;;  %v4996_v12 = vld [vmem:[%s7494_s1 + $0x204] ss:$16 sps:$4 sm:$0xff]   ;;  %v4999_v13 = vld [vmem:[%s7494_s1 + $0x20c] ss:$16 sps:$4 sm:$0xff]   ;;  %v4994_v15 = vld [vmem:[%s7494_s1 + $0x200] ss:$16 sps:$4 sm:$0xff]  }
  0x18   :  { %3236 = vmatprep.subr.bf16.mxu0 %v4933_v24  ;;  %3564 = vmatprep.subr.bf16.mxu1 %v4935_v25  ;;  %v4997_v17 = vld [vmem:[%s7494_s1 + $0x208] ss:$16 sps:$4 sm:$0xff]   ;;  %v5002_v18 = vld [vmem:[%s7494_s1 + $0x224] ss:$16 sps:$4 sm:$0xff]   ;;  %v5005_v19 = vld [vmem:[%s7494_s1 + $0x22c] ss:$16 sps:$4 sm:$0xff]   ;;  %v117_v20 = vpack.c.bf16 %v46_v14, %v46_v14 }
  0x19   :  { %3256 = vmatprep.mubr.bf16.mxu0 %v115_v60  ;;  %3584 = vmatprep.mubr.bf16.mxu1 %v115_v60  ;;  %v5000_v21 = vld [vmem:[%s7494_s1 + $0x220] ss:$16 sps:$4 sm:$0xff]   ;;  %v5003_v22 = vld [vmem:[%s7494_s1 + $0x228] ss:$16 sps:$4 sm:$0xff]   ;;  %v5008_v23 = vld [vmem:[%s7494_s1 + $0x244] ss:$16 sps:$4 sm:$0xff]  }
  0x1a   :  { %v5011_v24 = vld [vmem:[%s7494_s1 + $0x24c] ss:$16 sps:$4 sm:$0xff]   ;;  %v5006_v25 = vld [vmem:[%s7494_s1 + $0x240] ss:$16 sps:$4 sm:$0xff]   ;;  %v5027_v38 = vld [vmem:[%s7494_s1 + $0x2a8] ss:$16 sps:$4 sm:$0xff]  }
  0x1b   :  { %3237 = vmatpush1.bf16.msra.mxu0 %v4937_v26  ;;  %3565 = vmatpush1.bf16.msra.mxu1 %v4938_v27  ;;  %v5009_v26 = vld [vmem:[%s7494_s1 + $0x248] ss:$16 sps:$4 sm:$0xff]   ;;  %v5014_v27 = vld [vmem:[%s7494_s1 + $0x264] ss:$16 sps:$4 sm:$0xff]   ;;  %v5029_v36 = vld [vmem:[%s7494_s1 + $0x2ac] ss:$16 sps:$4 sm:$0xff]  }
  0x1c   :  { %3238 = vmatprep.subr.bf16.mxu0 %v4939_v28  ;;  %3566 = vmatprep.subr.bf16.mxu1 %v4941_v29  ;;  %v5017_v28 = vld [vmem:[%s7494_s1 + $0x26c] ss:$16 sps:$4 sm:$0xff]   ;;  %v5012_v29 = vld [vmem:[%s7494_s1 + $0x260] ss:$16 sps:$4 sm:$0xff]   ;;  %v5033_v42 = vld [vmem:[%s7494_s1 + $0x2c8] ss:$16 sps:$4 sm:$0xff]  }
  0x1d   :  { %v5024_v37 = vld [vmem:[%s7494_s1 + $0x2a0] ss:$16 sps:$4 sm:$0xff]   ;;  %v5045_v52 = vld [vmem:[%s7494_s1 + $0x308] ss:$16 sps:$4 sm:$0xff]   ;;  %v5053_v54 = vld [vmem:[%s7494_s1 + $0x32c] ss:$16 sps:$4 sm:$0xff]  }
  0x1e   :  { %v5059_v58 = vld [vmem:[%s7494_s1 + $0x34c] ss:$16 sps:$4 sm:$0xff]   ;;  %v5057_v60 = vld [vmem:[%s7494_s1 + $0x348] ss:$16 sps:$4 sm:$0xff]   ;;  %v5086_v14 = vld [vmem:[%s7494_s1 + $0x3e4] ss:$16 sps:$4 sm:$0xff]  }
  0x1f   :  { %3239 = vmatpush1.bf16.msra.mxu0 %v4943_v30  ;;  %3567 = vmatpush1.bf16.msra.mxu1 %v4944_v31  ;;  %v5015_v30 = vld [vmem:[%s7494_s1 + $0x268] ss:$16 sps:$4 sm:$0xff]   ;;  %v5020_v31 = vld [vmem:[%s7494_s1 + $0x284] ss:$16 sps:$4 sm:$0xff]  }
  0x20   :  { %3240 = vmatprep.subr.bf16.mxu0 %v4945_v32  ;;  %3568 = vmatprep.subr.bf16.mxu1 %v4947_v33  ;;  %v5023_v32 = vld [vmem:[%s7494_s1 + $0x28c] ss:$16 sps:$4 sm:$0xff]   ;;  %v5018_v33 = vld [vmem:[%s7494_s1 + $0x280] ss:$16 sps:$4 sm:$0xff]   ;;  %v5069_v4 = vld [vmem:[%s7494_s1 + $0x388] ss:$16 sps:$4 sm:$0xff]  }
  0x23   :  { %3241 = vmatpush1.bf16.msra.mxu0 %v4949_v34  ;;  %3569 = vmatpush1.bf16.msra.mxu1 %v4950_v35  ;;  %v5021_v34 = vld [vmem:[%s7494_s1 + $0x288] ss:$16 sps:$4 sm:$0xff]   ;;  %v5026_v35 = vld [vmem:[%s7494_s1 + $0x2a4] ss:$16 sps:$4 sm:$0xff]  }
  0x24   :  { %3242 = vmatprep.subr.bf16.mxu0 %v4951_v39  ;;  %3570 = vmatprep.subr.bf16.mxu1 %v4953_v40  ;;  %v5032_v39 = vld [vmem:[%s7494_s1 + $0x2c4] ss:$16 sps:$4 sm:$0xff]   ;;  %v5035_v40 = vld [vmem:[%s7494_s1 + $0x2cc] ss:$16 sps:$4 sm:$0xff]  }
  0x27   :  { %3243 = vmatpush1.bf16.msra.mxu0 %v4955_v41  ;;  %3571 = vmatpush1.bf16.msra.mxu1 %v4956_v44  ;;  %v5030_v41 = vld [vmem:[%s7494_s1 + $0x2c0] ss:$16 sps:$4 sm:$0xff]   ;;  %v5038_v44 = vld [vmem:[%s7494_s1 + $0x2e4] ss:$16 sps:$4 sm:$0xff]  }
  0x28   :  { %3244 = vmatprep.subr.bf16.mxu0 %v4957_v45  ;;  %3572 = vmatprep.subr.bf16.mxu1 %v4959_v46  ;;  %v5041_v45 = vld [vmem:[%s7494_s1 + $0x2ec] ss:$16 sps:$4 sm:$0xff]   ;;  %v5036_v46 = vld [vmem:[%s7494_s1 + $0x2e0] ss:$16 sps:$4 sm:$0xff]  }
  0x2b   :  { %3245 = vmatpush1.bf16.msra.mxu0 %v4961_v47  ;;  %3573 = vmatpush1.bf16.msra.mxu1 %v4962_v48  ;;  %v5039_v47 = vld [vmem:[%s7494_s1 + $0x2e8] ss:$16 sps:$4 sm:$0xff]   ;;  %v5044_v48 = vld [vmem:[%s7494_s1 + $0x304] ss:$16 sps:$4 sm:$0xff]  }
  0x2c   :  { %3246 = vmatprep.subr.bf16.mxu0 %v4963_v50  ;;  %3574 = vmatprep.subr.bf16.mxu1 %v4965_v51  ;;  %v5047_v50 = vld [vmem:[%s7494_s1 + $0x30c] ss:$16 sps:$4 sm:$0xff]   ;;  %v5042_v51 = vld [vmem:[%s7494_s1 + $0x300] ss:$16 sps:$4 sm:$0xff]  }
  0x2f   :  { %3247 = vmatpush1.bf16.msra.mxu0 %v4967_v53  ;;  %3575 = vmatpush1.bf16.msra.mxu1 %v4968_v55  ;;  %v5050_v53 = vld [vmem:[%s7494_s1 + $0x324] ss:$16 sps:$4 sm:$0xff]   ;;  %v5048_v55 = vld [vmem:[%s7494_s1 + $0x320] ss:$16 sps:$4 sm:$0xff]  }
  0x30   :  { %3248 = vmatprep.subr.bf16.mxu0 %v4969_v56  ;;  %3576 = vmatprep.subr.bf16.mxu1 %v4971_v57  ;;  %v5051_v56 = vld [vmem:[%s7494_s1 + $0x328] ss:$16 sps:$4 sm:$0xff]   ;;  %v5056_v57 = vld [vmem:[%s7494_s1 + $0x344] ss:$16 sps:$4 sm:$0xff]  }
  0x33   :  { %3249 = vmatpush1.bf16.msra.mxu0 %v4973_v59  ;;  %3577 = vmatpush1.bf16.msra.mxu1 %v4974_v61  ;;  %v5054_v59 = vld [vmem:[%s7494_s1 + $0x340] ss:$16 sps:$4 sm:$0xff]   ;;  %v5062_v61 = vld [vmem:[%s7494_s1 + $0x364] ss:$16 sps:$4 sm:$0xff]  }
  0x34   :  { %3250 = vmatprep.subr.bf16.mxu0 %v4975_v62  ;;  %3578 = vmatprep.subr.bf16.mxu1 %v4977_v63  ;;  %v5065_v62 = vld [vmem:[%s7494_s1 + $0x36c] ss:$16 sps:$4 sm:$0xff]   ;;  %v5060_v63 = vld [vmem:[%s7494_s1 + $0x360] ss:$16 sps:$4 sm:$0xff]  }
  0x37   :  { %3251 = vmatpush1.bf16.msra.mxu0 %v4979_v0  ;;  %3579 = vmatpush1.bf16.msra.mxu1 %v4980_v1  ;;  %v5063_v0 = vld [vmem:[%s7494_s1 + $0x368] ss:$16 sps:$4 sm:$0xff]   ;;  %v5068_v1 = vld [vmem:[%s7494_s1 + $0x384] ss:$16 sps:$4 sm:$0xff]  }
  0x38   :  { %3252 = vmatprep.subr.bf16.mxu0 %v4981_v2  ;;  %3580 = vmatprep.subr.bf16.mxu1 %v4983_v3  ;;  %v5071_v2 = vld [vmem:[%s7494_s1 + $0x38c] ss:$16 sps:$4 sm:$0xff]   ;;  %v5066_v3 = vld [vmem:[%s7494_s1 + $0x380] ss:$16 sps:$4 sm:$0xff]  }
  0x3b   :  { %3253 = vmatpush1.bf16.msra.mxu0 %v4985_v5  ;;  %3581 = vmatpush1.bf16.msra.mxu1 %v4986_v6  ;;  %v5074_v5 = vld [vmem:[%s7494_s1 + $0x3a4] ss:$16 sps:$4 sm:$0xff]   ;;  %v5077_v6 = vld [vmem:[%s7494_s1 + $0x3ac] ss:$16 sps:$4 sm:$0xff]  }
  0x3c   :  { %3254 = vmatprep.subr.bf16.mxu0 %v4987_v7  ;;  %3582 = vmatprep.subr.bf16.mxu1 %v4989_v8  ;;  %v5072_v7 = vld [vmem:[%s7494_s1 + $0x3a0] ss:$16 sps:$4 sm:$0xff]   ;;  %v5075_v8 = vld [vmem:[%s7494_s1 + $0x3a8] ss:$16 sps:$4 sm:$0xff]  }
  0x3f   :  { %3255 = vmatpush1.bf16.msra.mxu0 %v4991_v10  ;;  %3583 = vmatpush1.bf16.msra.mxu1 %v4992_v11  ;;  %v5080_v10 = vld [vmem:[%s7494_s1 + $0x3c4] ss:$16 sps:$4 sm:$0xff]   ;;  %v5083_v11 = vld [vmem:[%s7494_s1 + $0x3cc] ss:$16 sps:$4 sm:$0xff]  }
  0x40   :  { %3265 = vmatprep.subr.bf16.mxu0 %v4996_v12  ;;  %3593 = vmatprep.subr.bf16.mxu1 %v4999_v13  ;;  %v5078_v12 = vld [vmem:[%s7494_s1 + $0x3c0] ss:$16 sps:$4 sm:$0xff]   ;;  %v5081_v13 = vld [vmem:[%s7494_s1 + $0x3c8] ss:$16 sps:$4 sm:$0xff]  }
  0x42   :  { %3257 = vmatmul.mubr.bf16.vlgmr.msra.gmra.mrb[0].mxu0 %v114_v16  ;;  %3585 = vmatmul.mubr.bf16.vlgmr.msra.gmra.mrb[0].mxu1 %v114_v16  ;;  %v5084_v16 = vld [vmem:[%s7494_s1 + $0x3e0] ss:$16 sps:$4 sm:$0xff]  }
  0x43   :  { %3266 = vmatpush1.bf16.msra.mxu0 %v4994_v15  ;;  %3594 = vmatpush1.bf16.msra.mxu1 %v4997_v17  ;;  %v5089_v15 = vld [vmem:[%s7494_s1 + $0x3ec] ss:$16 sps:$4 sm:$0xff]   ;;  %v5087_v17 = vld [vmem:[%s7494_s1 + $0x3e8] ss:$16 sps:$4 sm:$0xff]  }
  0x44   :  { %3267 = vmatprep.subr.bf16.mxu0 %v5002_v18  ;;  %3595 = vmatprep.subr.bf16.mxu1 %v5005_v19  ;;  %v5092_v18 = vld [vmem:[%s7494_s1 + $0x404] ss:$16 sps:$4 sm:$0xff]   ;;  %v5095_v19 = vld [vmem:[%s7494_s1 + $0x40c] ss:$16 sps:$4 sm:$0xff]  }
  0x45   :  { %3297 = vmatprep.mubr.bf16.mxu0 %v117_v20  ;;  %3625 = vmatprep.mubr.bf16.mxu1 %v117_v20  ;;  %v5090_v20 = vld [vmem:[%s7494_s1 + $0x400] ss:$16 sps:$4 sm:$0xff]  }
  0x47   :  { %3268 = vmatpush1.bf16.msra.mxu0 %v5000_v21  ;;  %3596 = vmatpush1.bf16.msra.mxu1 %v5003_v22  ;;  %v116_v21 = vpack.c.bf16 %v5953_v9, %v5953_v9  ;;  %v5093_v22 = vld [vmem:[%s7494_s1 + $0x408] ss:$16 sps:$4 sm:$0xff]   ;;  %v5101_v9 = vld [vmem:[%s7494_s1 + $0x42c] ss:$16 sps:$4 sm:$0xff]  }
  0x48   :  { %3269 = vmatprep.subr.bf16.mxu0 %v5008_v23  ;;  %3597 = vmatprep.subr.bf16.mxu1 %v5011_v24  ;;  %v6172_v23 = vld [vmem:[%s7493_s0 + $0x8] sm:$0xff]  ;;  %v5098_v24 = vld [vmem:[%s7494_s1 + $0x424] ss:$16 sps:$4 sm:$0xff]  }
  0x4b   :  { %3270 = vmatpush1.bf16.msra.mxu0 %v5006_v25  ;;  %3598 = vmatpush1.bf16.msra.mxu1 %v5009_v26  ;;  %v6182_v25 = vrot.slane %v6172_v23, %v5892_v49 }
  0x4c   :  { %3271 = vmatprep.subr.bf16.mxu0 %v5014_v27  ;;  %3599 = vmatprep.subr.bf16.mxu1 %v5017_v28  ;;  %v5096_v27 = vld [vmem:[%s7494_s1 + $0x420] ss:$16 sps:$4 sm:$0xff]   ;;  %v5099_v28 = vld [vmem:[%s7494_s1 + $0x428] ss:$16 sps:$4 sm:$0xff]  }
  0x4d   :  { %v62_v26 = vcombine.high %v6182_v25, %v6182_v25 }
  0x4f   :  { %3272 = vmatpush1.bf16.msra.mxu0 %v5012_v29  ;;  %3600 = vmatpush1.bf16.msra.mxu1 %v5015_v30  ;;  %v5104_v29 = vld [vmem:[%s7494_s1 + $0x444] ss:$16 sps:$4 sm:$0xff]   ;;  %v5107_v30 = vld [vmem:[%s7494_s1 + $0x44c] ss:$16 sps:$4 sm:$0xff]  }
  0x50   :  { %3273 = vmatprep.subr.bf16.mxu0 %v5020_v31  ;;  %3601 = vmatprep.subr.bf16.mxu1 %v5023_v32  ;;  %v119_v31 = vpack.c.bf16 %v62_v26, %v62_v26  ;;  %v5102_v32 = vld [vmem:[%s7494_s1 + $0x440] ss:$16 sps:$4 sm:$0xff]   ;;  %v5183_v26 = vld [vmem:[%s7494_s1 + $0x5e8] ss:$16 sps:$4 sm:$0xff]  }
  0x53   :  { %3274 = vmatpush1.bf16.msra.mxu0 %v5018_v33  ;;  %3602 = vmatpush1.bf16.msra.mxu1 %v5021_v34  ;;  %v5105_v33 = vld [vmem:[%s7494_s1 + $0x448] ss:$16 sps:$4 sm:$0xff]   ;;  %v5110_v34 = vld [vmem:[%s7494_s1 + $0x464] ss:$16 sps:$4 sm:$0xff]  }
  0x54   :  { %3275 = vmatprep.subr.bf16.mxu0 %v5026_v35  ;;  %3603 = vmatprep.subr.bf16.mxu1 %v5029_v36  ;;  %v5113_v35 = vld [vmem:[%s7494_s1 + $0x46c] ss:$16 sps:$4 sm:$0xff]   ;;  %v5108_v36 = vld [vmem:[%s7494_s1 + $0x460] ss:$16 sps:$4 sm:$0xff]  }
  0x57   :  { %3276 = vmatpush1.bf16.msra.mxu0 %v5024_v37  ;;  %3604 = vmatpush1.bf16.msra.mxu1 %v5027_v38  ;;  %v5111_v37 = vld [vmem:[%s7494_s1 + $0x468] ss:$16 sps:$4 sm:$0xff]   ;;  %v5116_v38 = vld [vmem:[%s7494_s1 + $0x484] ss:$16 sps:$4 sm:$0xff]  }
  0x58   :  { %3277 = vmatprep.subr.bf16.mxu0 %v5032_v39  ;;  %3605 = vmatprep.subr.bf16.mxu1 %v5035_v40  ;;  %v5119_v39 = vld [vmem:[%s7494_s1 + $0x48c] ss:$16 sps:$4 sm:$0xff]   ;;  %v5114_v40 = vld [vmem:[%s7494_s1 + $0x480] ss:$16 sps:$4 sm:$0xff]  }
  0x5b   :  { %3278 = vmatpush1.bf16.msra.mxu0 %v5030_v41  ;;  %3606 = vmatpush1.bf16.msra.mxu1 %v5033_v42  ;;  %v5117_v41 = vld [vmem:[%s7494_s1 + $0x488] ss:$16 sps:$4 sm:$0xff]   ;;  %v5122_v42 = vld [vmem:[%s7494_s1 + $0x4a4] ss:$16 sps:$4 sm:$0xff]  }
  0x5c   :  { %3279 = vmatprep.subr.bf16.mxu0 %v5038_v44  ;;  %3607 = vmatprep.subr.bf16.mxu1 %v5041_v45  ;;  %v5125_v44 = vld [vmem:[%s7494_s1 + $0x4ac] ss:$16 sps:$4 sm:$0xff]   ;;  %v5120_v45 = vld [vmem:[%s7494_s1 + $0x4a0] ss:$16 sps:$4 sm:$0xff]  }
  0x5f   :  { %3280 = vmatpush1.bf16.msra.mxu0 %v5036_v46  ;;  %3608 = vmatpush1.bf16.msra.mxu1 %v5039_v47  ;;  %v5123_v46 = vld [vmem:[%s7494_s1 + $0x4a8] ss:$16 sps:$4 sm:$0xff]   ;;  %v5128_v47 = vld [vmem:[%s7494_s1 + $0x4c4] ss:$16 sps:$4 sm:$0xff]  }
  0x60   :  { %3281 = vmatprep.subr.bf16.mxu0 %v5044_v48  ;;  %3609 = vmatprep.subr.bf16.mxu1 %v5047_v50  ;;  %v5131_v48 = vld [vmem:[%s7494_s1 + $0x4cc] ss:$16 sps:$4 sm:$0xff]   ;;  %v5126_v50 = vld [vmem:[%s7494_s1 + $0x4c0] ss:$16 sps:$4 sm:$0xff]  }
  0x63   :  { %3282 = vmatpush1.bf16.msra.mxu0 %v5042_v51  ;;  %3610 = vmatpush1.bf16.msra.mxu1 %v5045_v52  ;;  %v5129_v51 = vld [vmem:[%s7494_s1 + $0x4c8] ss:$16 sps:$4 sm:$0xff]   ;;  %v5134_v52 = vld [vmem:[%s7494_s1 + $0x4e4] ss:$16 sps:$4 sm:$0xff]  }
  0x64   :  { %3283 = vmatprep.subr.bf16.mxu0 %v5050_v53  ;;  %3611 = vmatprep.subr.bf16.mxu1 %v5053_v54  ;;  %v5137_v53 = vld [vmem:[%s7494_s1 + $0x4ec] ss:$16 sps:$4 sm:$0xff]   ;;  %v5132_v54 = vld [vmem:[%s7494_s1 + $0x4e0] ss:$16 sps:$4 sm:$0xff]  }
  0x67   :  { %3284 = vmatpush1.bf16.msra.mxu0 %v5048_v55  ;;  %3612 = vmatpush1.bf16.msra.mxu1 %v5051_v56  ;;  %v5135_v55 = vld [vmem:[%s7494_s1 + $0x4e8] ss:$16 sps:$4 sm:$0xff]   ;;  %v5140_v56 = vld [vmem:[%s7494_s1 + $0x504] ss:$16 sps:$4 sm:$0xff]  }
  0x68   :  { %3285 = vmatprep.subr.bf16.mxu0 %v5056_v57  ;;  %3613 = vmatprep.subr.bf16.mxu1 %v5059_v58  ;;  %v5143_v57 = vld [vmem:[%s7494_s1 + $0x50c] ss:$16 sps:$4 sm:$0xff]   ;;  %v5138_v58 = vld [vmem:[%s7494_s1 + $0x500] ss:$16 sps:$4 sm:$0xff]  }
  0x6b   :  { %3286 = vmatpush1.bf16.msra.mxu0 %v5054_v59  ;;  %3614 = vmatpush1.bf16.msra.mxu1 %v5057_v60  ;;  %v5141_v59 = vld [vmem:[%s7494_s1 + $0x508] ss:$16 sps:$4 sm:$0xff]   ;;  %v5146_v60 = vld [vmem:[%s7494_s1 + $0x524] ss:$16 sps:$4 sm:$0xff]  }
  0x6c   :  { %3287 = vmatprep.subr.bf16.mxu0 %v5062_v61  ;;  %3615 = vmatprep.subr.bf16.mxu1 %v5065_v62  ;;  %v5149_v61 = vld [vmem:[%s7494_s1 + $0x52c] ss:$16 sps:$4 sm:$0xff]   ;;  %v5144_v62 = vld [vmem:[%s7494_s1 + $0x520] ss:$16 sps:$4 sm:$0xff]  }
  0x6f   :  { %3288 = vmatpush1.bf16.msra.mxu0 %v5060_v63  ;;  %3616 = vmatpush1.bf16.msra.mxu1 %v5063_v0  ;;  %v5147_v63 = vld [vmem:[%s7494_s1 + $0x528] ss:$16 sps:$4 sm:$0xff]   ;;  %v5152_v0 = vld [vmem:[%s7494_s1 + $0x544] ss:$16 sps:$4 sm:$0xff]  }
  0x70   :  { %3289 = vmatprep.subr.bf16.mxu0 %v5068_v1  ;;  %3617 = vmatprep.subr.bf16.mxu1 %v5071_v2  ;;  %v5155_v1 = vld [vmem:[%s7494_s1 + $0x54c] ss:$16 sps:$4 sm:$0xff]   ;;  %v5150_v2 = vld [vmem:[%s7494_s1 + $0x540] ss:$16 sps:$4 sm:$0xff]  }
  0x73   :  { %3290 = vmatpush1.bf16.msra.mxu0 %v5066_v3  ;;  %3618 = vmatpush1.bf16.msra.mxu1 %v5069_v4  ;;  %v5153_v3 = vld [vmem:[%s7494_s1 + $0x548] ss:$16 sps:$4 sm:$0xff]   ;;  %v5158_v4 = vld [vmem:[%s7494_s1 + $0x564] ss:$16 sps:$4 sm:$0xff]  }
  0x74   :  { %3291 = vmatprep.subr.bf16.mxu0 %v5074_v5  ;;  %3619 = vmatprep.subr.bf16.mxu1 %v5077_v6  ;;  %v5161_v5 = vld [vmem:[%s7494_s1 + $0x56c] ss:$16 sps:$4 sm:$0xff]   ;;  %v5156_v6 = vld [vmem:[%s7494_s1 + $0x560] ss:$16 sps:$4 sm:$0xff]  }
  0x77   :  { %3292 = vmatpush1.bf16.msra.mxu0 %v5072_v7  ;;  %3620 = vmatpush1.bf16.msra.mxu1 %v5075_v8  ;;  %v5159_v7 = vld [vmem:[%s7494_s1 + $0x568] ss:$16 sps:$4 sm:$0xff]   ;;  %v5164_v8 = vld [vmem:[%s7494_s1 + $0x584] ss:$16 sps:$4 sm:$0xff]  }
  0x78   :  { %3293 = vmatprep.subr.bf16.mxu0 %v5080_v10  ;;  %3621 = vmatprep.subr.bf16.mxu1 %v5083_v11  ;;  %v5167_v10 = vld [vmem:[%s7494_s1 + $0x58c] ss:$16 sps:$4 sm:$0xff]   ;;  %v5162_v11 = vld [vmem:[%s7494_s1 + $0x580] ss:$16 sps:$4 sm:$0xff]  }
  0x7b   :  { %3294 = vmatpush1.bf16.msra.mxu0 %v5078_v12  ;;  %3622 = vmatpush1.bf16.msra.mxu1 %v5081_v13  ;;  %v5165_v12 = vld [vmem:[%s7494_s1 + $0x588] ss:$16 sps:$4 sm:$0xff]   ;;  %v5170_v13 = vld [vmem:[%s7494_s1 + $0x5a4] ss:$16 sps:$4 sm:$0xff]  }
  0x7c   :  { %3295 = vmatprep.subr.bf16.mxu0 %v5086_v14  ;;  %3623 = vmatprep.subr.bf16.mxu1 %v5089_v15  ;;  %v5173_v14 = vld [vmem:[%s7494_s1 + $0x5ac] ss:$16 sps:$4 sm:$0xff]   ;;  %v5168_v15 = vld [vmem:[%s7494_s1 + $0x5a0] ss:$16 sps:$4 sm:$0xff]  }
  0x7f   :  { %3296 = vmatpush1.bf16.msra.mxu0 %v5084_v16  ;;  %3624 = vmatpush1.bf16.msra.mxu1 %v5087_v17  ;;  %v5171_v16 = vld [vmem:[%s7494_s1 + $0x5a8] ss:$16 sps:$4 sm:$0xff]   ;;  %v5176_v17 = vld [vmem:[%s7494_s1 + $0x5c4] ss:$16 sps:$4 sm:$0xff]  }
  0x80   :  { %3306 = vmatprep.subr.bf16.mxu0 %v5092_v18  ;;  %3634 = vmatprep.subr.bf16.mxu1 %v5095_v19  ;;  %v5179_v18 = vld [vmem:[%s7494_s1 + $0x5cc] ss:$16 sps:$4 sm:$0xff]   ;;  %v47_v19 = vcombine.high %v6172_v23, %v6172_v23 }
  0x81   :  { %v5185_v23 = vld [vmem:[%s7494_s1 + $0x5ec] ss:$16 sps:$4 sm:$0xff]  }
  0x82   :  { %3298 = vmatmul.mubr.bf16.vlgmr.msra.gmra.mrb[0].mxu0 %v116_v21  ;;  %3626 = vmatmul.mubr.bf16.vlgmr.msra.gmra.mrb[0].mxu1 %v116_v21  ;;  %v5177_v21 = vld [vmem:[%s7494_s1 + $0x5c8] ss:$16 sps:$4 sm:$0xff]  }
  0x83   :  { %3307 = vmatpush1.bf16.msra.mxu0 %v5090_v20  ;;  %3635 = vmatpush1.bf16.msra.mxu1 %v5093_v22  ;;  %v5174_v20 = vld [vmem:[%s7494_s1 + $0x5c0] ss:$16 sps:$4 sm:$0xff]   ;;  %v5182_v22 = vld [vmem:[%s7494_s1 + $0x5e4] ss:$16 sps:$4 sm:$0xff]  }
  0x84   :  { %3308 = vmatprep.subr.bf16.mxu0 %v5098_v24  ;;  %3636 = vmatprep.subr.bf16.mxu1 %v5101_v9  ;;  %v6357_v24 = vrot.slane %v47_v19, %v5892_v49  ;;  %v5180_v9 = vld [vmem:[%s7494_s1 + $0x5e0] ss:$16 sps:$4 sm:$0xff]   ;;  %v5261_v19 = vld [vmem:[%s7494_s1 + $0x788] ss:$16 sps:$4 sm:$0xff]  }
  0x85   :  { %3338 = vmatprep.mubr.bf16.mxu0 %v119_v31  ;;  %3666 = vmatprep.mubr.bf16.mxu1 %v119_v31  ;;  %v5186_v31 = vld [vmem:[%s7494_s1 + $0x600] ss:$16 sps:$4 sm:$0xff]  }
  0x87   :  { %3309 = vmatpush1.bf16.msra.mxu0 %v5096_v27  ;;  %3637 = vmatpush1.bf16.msra.mxu1 %v5099_v28  ;;  %v5188_v27 = vld [vmem:[%s7494_s1 + $0x604] ss:$16 sps:$4 sm:$0xff]   ;;  %v5191_v28 = vld [vmem:[%s7494_s1 + $0x60c] ss:$16 sps:$4 sm:$0xff]  }
  0x88   :  { %3310 = vmatprep.subr.bf16.mxu0 %v5104_v29  ;;  %3638 = vmatprep.subr.bf16.mxu1 %v5107_v30  ;;  %v63_v29 = vcombine.high %v6357_v24, %v6357_v24  ;;  %v118_v30 = vpack.c.bf16 %v6182_v25, %v6182_v25  ;;  %v5197_v25 = vld [vmem:[%s7494_s1 + $0x62c] ss:$16 sps:$4 sm:$0xff]  }
  0x8b   :  { %3311 = vmatpush1.bf16.msra.mxu0 %v5102_v32  ;;  %3639 = vmatpush1.bf16.msra.mxu1 %v5105_v33  ;;  %v5189_v32 = vld [vmem:[%s7494_s1 + $0x608] ss:$16 sps:$4 sm:$0xff]   ;;  %v5194_v33 = vld [vmem:[%s7494_s1 + $0x624] ss:$16 sps:$4 sm:$0xff]  }
  0x8c   :  { %3312 = vmatprep.subr.bf16.mxu0 %v5110_v34  ;;  %3640 = vmatprep.subr.bf16.mxu1 %v5113_v35  ;;  %v121_v34 = vpack.c.bf16 %v63_v29, %v63_v29  ;;  %v5192_v35 = vld [vmem:[%s7494_s1 + $0x620] ss:$16 sps:$4 sm:$0xff]   ;;  %v5273_v29 = vld [vmem:[%s7494_s1 + $0x7c8] ss:$16 sps:$4 sm:$0xff]  }
  0x8f   :  { %3313 = vmatpush1.bf16.msra.mxu0 %v5108_v36  ;;  %3641 = vmatpush1.bf16.msra.mxu1 %v5111_v37  ;;  %v5195_v36 = vld [vmem:[%s7494_s1 + $0x628] ss:$16 sps:$4 sm:$0xff]   ;;  %v5200_v37 = vld [vmem:[%s7494_s1 + $0x644] ss:$16 sps:$4 sm:$0xff]  }
  0x90   :  { %3314 = vmatprep.subr.bf16.mxu0 %v5116_v38  ;;  %3642 = vmatprep.subr.bf16.mxu1 %v5119_v39  ;;  %v5203_v38 = vld [vmem:[%s7494_s1 + $0x64c] ss:$16 sps:$4 sm:$0xff]   ;;  %v5198_v39 = vld [vmem:[%s7494_s1 + $0x640] ss:$16 sps:$4 sm:$0xff]  }
  0x93   :  { %3315 = vmatpush1.bf16.msra.mxu0 %v5114_v40  ;;  %3643 = vmatpush1.bf16.msra.mxu1 %v5117_v41  ;;  %v5201_v40 = vld [vmem:[%s7494_s1 + $0x648] ss:$16 sps:$4 sm:$0xff]   ;;  %v5206_v41 = vld [vmem:[%s7494_s1 + $0x664] ss:$16 sps:$4 sm:$0xff]  }
  0x94   :  { %3316 = vmatprep.subr.bf16.mxu0 %v5122_v42  ;;  %3644 = vmatprep.subr.bf16.mxu1 %v5125_v44  ;;  %v5209_v42 = vld [vmem:[%s7494_s1 + $0x66c] ss:$16 sps:$4 sm:$0xff]   ;;  %v5204_v44 = vld [vmem:[%s7494_s1 + $0x660] ss:$16 sps:$4 sm:$0xff]  }
  0x97   :  { %3317 = vmatpush1.bf16.msra.mxu0 %v5120_v45  ;;  %3645 = vmatpush1.bf16.msra.mxu1 %v5123_v46  ;;  %v5207_v45 = vld [vmem:[%s7494_s1 + $0x668] ss:$16 sps:$4 sm:$0xff]   ;;  %v5212_v46 = vld [vmem:[%s7494_s1 + $0x684] ss:$16 sps:$4 sm:$0xff]  }
  0x98   :  { %3318 = vmatprep.subr.bf16.mxu0 %v5128_v47  ;;  %3646 = vmatprep.subr.bf16.mxu1 %v5131_v48  ;;  %v5215_v47 = vld [vmem:[%s7494_s1 + $0x68c] ss:$16 sps:$4 sm:$0xff]   ;;  %v5210_v48 = vld [vmem:[%s7494_s1 + $0x680] ss:$16 sps:$4 sm:$0xff]  }
  0x9b   :  { %3319 = vmatpush1.bf16.msra.mxu0 %v5126_v50  ;;  %3647 = vmatpush1.bf16.msra.mxu1 %v5129_v51  ;;  %v5213_v50 = vld [vmem:[%s7494_s1 + $0x688] ss:$16 sps:$4 sm:$0xff]   ;;  %v5218_v51 = vld [vmem:[%s7494_s1 + $0x6a4] ss:$16 sps:$4 sm:$0xff]  }
  0x9c   :  { %3320 = vmatprep.subr.bf16.mxu0 %v5134_v52  ;;  %3648 = vmatprep.subr.bf16.mxu1 %v5137_v53  ;;  %v5221_v52 = vld [vmem:[%s7494_s1 + $0x6ac] ss:$16 sps:$4 sm:$0xff]   ;;  %v5216_v53 = vld [vmem:[%s7494_s1 + $0x6a0] ss:$16 sps:$4 sm:$0xff]  }
  0x9f   :  { %3321 = vmatpush1.bf16.msra.mxu0 %v5132_v54  ;;  %3649 = vmatpush1.bf16.msra.mxu1 %v5135_v55  ;;  %v5219_v54 = vld [vmem:[%s7494_s1 + $0x6a8] ss:$16 sps:$4 sm:$0xff]   ;;  %v5224_v55 = vld [vmem:[%s7494_s1 + $0x6c4] ss:$16 sps:$4 sm:$0xff]  }
  0xa0   :  { %3322 = vmatprep.subr.bf16.mxu0 %v5140_v56  ;;  %3650 = vmatprep.subr.bf16.mxu1 %v5143_v57  ;;  %v5227_v56 = vld [vmem:[%s7494_s1 + $0x6cc] ss:$16 sps:$4 sm:$0xff]   ;;  %v5222_v57 = vld [vmem:[%s7494_s1 + $0x6c0] ss:$16 sps:$4 sm:$0xff]  }
  0xa3   :  { %3323 = vmatpush1.bf16.msra.mxu0 %v5138_v58  ;;  %3651 = vmatpush1.bf16.msra.mxu1 %v5141_v59  ;;  %v5225_v58 = vld [vmem:[%s7494_s1 + $0x6c8] ss:$16 sps:$4 sm:$0xff]   ;;  %v5230_v59 = vld [vmem:[%s7494_s1 + $0x6e4] ss:$16 sps:$4 sm:$0xff]  }
  0xa4   :  { %3324 = vmatprep.subr.bf16.mxu0 %v5146_v60  ;;  %3652 = vmatprep.subr.bf16.mxu1 %v5149_v61  ;;  %v5233_v60 = vld [vmem:[%s7494_s1 + $0x6ec] ss:$16 sps:$4 sm:$0xff]   ;;  %v5228_v61 = vld [vmem:[%s7494_s1 + $0x6e0] ss:$16 sps:$4 sm:$0xff]  }
  0xa7   :  { %3325 = vmatpush1.bf16.msra.mxu0 %v5144_v62  ;;  %3653 = vmatpush1.bf16.msra.mxu1 %v5147_v63  ;;  %v5231_v62 = vld [vmem:[%s7494_s1 + $0x6e8] ss:$16 sps:$4 sm:$0xff]   ;;  %v5236_v63 = vld [vmem:[%s7494_s1 + $0x704] ss:$16 sps:$4 sm:$0xff]  }
  0xa8   :  { %3326 = vmatprep.subr.bf16.mxu0 %v5152_v0  ;;  %3654 = vmatprep.subr.bf16.mxu1 %v5155_v1  ;;  %v5239_v0 = vld [vmem:[%s7494_s1 + $0x70c] ss:$16 sps:$4 sm:$0xff]   ;;  %v5234_v1 = vld [vmem:[%s7494_s1 + $0x700] ss:$16 sps:$4 sm:$0xff]  }
  0xab   :  { %3327 = vmatpush1.bf16.msra.mxu0 %v5150_v2  ;;  %3655 = vmatpush1.bf16.msra.mxu1 %v5153_v3  ;;  %v5237_v2 = vld [vmem:[%s7494_s1 + $0x708] ss:$16 sps:$4 sm:$0xff]   ;;  %v5242_v3 = vld [vmem:[%s7494_s1 + $0x724] ss:$16 sps:$4 sm:$0xff]  }
  0xac   :  { %3328 = vmatprep.subr.bf16.mxu0 %v5158_v4  ;;  %3656 = vmatprep.subr.bf16.mxu1 %v5161_v5  ;;  %v5245_v4 = vld [vmem:[%s7494_s1 + $0x72c] ss:$16 sps:$4 sm:$0xff]   ;;  %v5240_v5 = vld [vmem:[%s7494_s1 + $0x720] ss:$16 sps:$4 sm:$0xff]  }
  0xaf   :  { %3329 = vmatpush1.bf16.msra.mxu0 %v5156_v6  ;;  %3657 = vmatpush1.bf16.msra.mxu1 %v5159_v7  ;;  %v5243_v6 = vld [vmem:[%s7494_s1 + $0x728] ss:$16 sps:$4 sm:$0xff]   ;;  %v5248_v7 = vld [vmem:[%s7494_s1 + $0x744] ss:$16 sps:$4 sm:$0xff]  }
  0xb0   :  { %3330 = vmatprep.subr.bf16.mxu0 %v5164_v8  ;;  %3658 = vmatprep.subr.bf16.mxu1 %v5167_v10  ;;  %v5251_v8 = vld [vmem:[%s7494_s1 + $0x74c] ss:$16 sps:$4 sm:$0xff]   ;;  %v5246_v10 = vld [vmem:[%s7494_s1 + $0x740] ss:$16 sps:$4 sm:$0xff]  }
  0xb3   :  { %3331 = vmatpush1.bf16.msra.mxu0 %v5162_v11  ;;  %3659 = vmatpush1.bf16.msra.mxu1 %v5165_v12  ;;  %v5249_v11 = vld [vmem:[%s7494_s1 + $0x748] ss:$16 sps:$4 sm:$0xff]   ;;  %v5254_v12 = vld [vmem:[%s7494_s1 + $0x764] ss:$16 sps:$4 sm:$0xff]  }
  0xb4   :  { %3332 = vmatprep.subr.bf16.mxu0 %v5170_v13  ;;  %3660 = vmatprep.subr.bf16.mxu1 %v5173_v14  ;;  %v5257_v13 = vld [vmem:[%s7494_s1 + $0x76c] ss:$16 sps:$4 sm:$0xff]   ;;  %v5252_v14 = vld [vmem:[%s7494_s1 + $0x760] ss:$16 sps:$4 sm:$0xff]  }
  0xb7   :  { %3333 = vmatpush1.bf16.msra.mxu0 %v5168_v15  ;;  %3661 = vmatpush1.bf16.msra.mxu1 %v5171_v16  ;;  %v5255_v15 = vld [vmem:[%s7494_s1 + $0x768] ss:$16 sps:$4 sm:$0xff]   ;;  %v5260_v16 = vld [vmem:[%s7494_s1 + $0x784] ss:$16 sps:$4 sm:$0xff]  }
  0xb8   :  { %3334 = vmatprep.subr.bf16.mxu0 %v5176_v17  ;;  %3662 = vmatprep.subr.bf16.mxu1 %v5179_v18  ;;  %v5263_v17 = vld [vmem:[%s7494_s1 + $0x78c] ss:$16 sps:$4 sm:$0xff]   ;;  %v5258_v18 = vld [vmem:[%s7494_s1 + $0x780] ss:$16 sps:$4 sm:$0xff]  }
  0xbb   :  { %3335 = vmatpush1.bf16.msra.mxu0 %v5174_v20  ;;  %3663 = vmatpush1.bf16.msra.mxu1 %v5177_v21  ;;  %v5266_v20 = vld [vmem:[%s7494_s1 + $0x7a4] ss:$16 sps:$4 sm:$0xff]   ;;  %v5269_v21 = vld [vmem:[%s7494_s1 + $0x7ac] ss:$16 sps:$4 sm:$0xff]  }
  0xbc   :  { %3336 = vmatprep.subr.bf16.mxu0 %v5182_v22  ;;  %3664 = vmatprep.subr.bf16.mxu1 %v5185_v23  ;;  %v5264_v22 = vld [vmem:[%s7494_s1 + $0x7a0] ss:$16 sps:$4 sm:$0xff]   ;;  %v5267_v23 = vld [vmem:[%s7494_s1 + $0x7a8] ss:$16 sps:$4 sm:$0xff]  }
  0xbf   :  { %3337 = vmatpush1.bf16.msra.mxu0 %v5180_v9  ;;  %3665 = vmatpush1.bf16.msra.mxu1 %v5183_v26  ;;  %v5272_v9 = vld [vmem:[%s7494_s1 + $0x7c4] ss:$16 sps:$4 sm:$0xff]   ;;  %v5275_v26 = vld [vmem:[%s7494_s1 + $0x7cc] ss:$16 sps:$4 sm:$0xff]  }
  0xc0   :  { %3347 = vmatprep.subr.bf16.mxu0 %v5188_v27  ;;  %3675 = vmatprep.subr.bf16.mxu1 %v5191_v28  ;;  %v5270_v27 = vld [vmem:[%s7494_s1 + $0x7c0] ss:$16 sps:$4 sm:$0xff]  }
  0xc1   :  { %v6549_v28 = vld [vmem:[%s7493_s0 + $0x10] sm:$0xff] }
  0xc2   :  { %3339 = vmatmul.mubr.bf16.vlgmr.msra.gmra.mrb[0].mxu0 %v118_v30  ;;  %3667 = vmatmul.mubr.bf16.vlgmr.msra.gmra.mrb[0].mxu1 %v118_v30  ;;  %v5278_v30 = vld [vmem:[%s7494_s1 + $0x7e4] ss:$16 sps:$4 sm:$0xff]  }
  0xc3   :  { %3348 = vmatpush1.bf16.msra.mxu0 %v5186_v31  ;;  %3676 = vmatpush1.bf16.msra.mxu1 %v5189_v32  ;;  %v5281_v31 = vld [vmem:[%s7494_s1 + $0x7ec] ss:$16 sps:$4 sm:$0xff]   ;;  %v6562_v32 = vrot.slane %v6549_v28, %v5892_v49 }
  0xc4   :  { %3349 = vmatprep.subr.bf16.mxu0 %v5194_v33  ;;  %3677 = vmatprep.subr.bf16.mxu1 %v5197_v25  ;;  %v5276_v33 = vld [vmem:[%s7494_s1 + $0x7e0] ss:$16 sps:$4 sm:$0xff]   ;;  %v5279_v25 = vld [vmem:[%s7494_s1 + $0x7e8] ss:$16 sps:$4 sm:$0xff]  }
  0xc5   :  { %3379 = vmatprep.mubr.bf16.mxu0 %v121_v34  ;;  %3707 = vmatprep.mubr.bf16.mxu1 %v121_v34  ;;  %v5285_v34 = vld [vmem:[%s7494_s1 + $0x804] ss:$16 sps:$4 sm:$0xff]  }
  0xc7   :  { %3350 = vmatpush1.bf16.msra.mxu0 %v5192_v35  ;;  %3678 = vmatpush1.bf16.msra.mxu1 %v5195_v36  ;;  %v5288_v35 = vld [vmem:[%s7494_s1 + $0x80c] ss:$16 sps:$4 sm:$0xff]   ;;  %v79_v36 = vcombine.high %v6562_v32, %v6562_v32 }
  0xc8   :  { %3351 = vmatprep.subr.bf16.mxu0 %v5200_v37  ;;  %3679 = vmatprep.subr.bf16.mxu1 %v5203_v38  ;;  %v5283_v37 = vld [vmem:[%s7494_s1 + $0x800] ss:$16 sps:$4 sm:$0xff]   ;;  %v120_v38 = vpack.c.bf16 %v6357_v24, %v6357_v24 }
  0xc9   :  { %v5289_v24 = vld [vmem:[%s7494_s1 + $0x820] ss:$16 sps:$4 sm:$0xff]  }
  0xcb   :  { %3352 = vmatpush1.bf16.msra.mxu0 %v5198_v39  ;;  %3680 = vmatpush1.bf16.msra.mxu1 %v5201_v40  ;;  %v5286_v39 = vld [vmem:[%s7494_s1 + $0x808] ss:$16 sps:$4 sm:$0xff]   ;;  %v5291_v40 = vld [vmem:[%s7494_s1 + $0x824] ss:$16 sps:$4 sm:$0xff]  }
  0xcc   :  { %3353 = vmatprep.subr.bf16.mxu0 %v5206_v41  ;;  %3681 = vmatprep.subr.bf16.mxu1 %v5209_v42  ;;  %v5294_v41 = vld [vmem:[%s7494_s1 + $0x82c] ss:$16 sps:$4 sm:$0xff]   ;;  %v123_v42 = vpack.c.bf16 %v79_v36, %v79_v36  ;;  %v5367_v36 = vld [vmem:[%s7494_s1 + $0x9c0] ss:$16 sps:$4 sm:$0xff]  }
  0xcf   :  { %3354 = vmatpush1.bf16.msra.mxu0 %v5204_v44  ;;  %3682 = vmatpush1.bf16.msra.mxu1 %v5207_v45  ;;  %v5292_v44 = vld [vmem:[%s7494_s1 + $0x828] ss:$16 sps:$4 sm:$0xff]   ;;  %v5297_v45 = vld [vmem:[%s7494_s1 + $0x844] ss:$16 sps:$4 sm:$0xff]  }
  0xd0   :  { %3355 = vmatprep.subr.bf16.mxu0 %v5212_v46  ;;  %3683 = vmatprep.subr.bf16.mxu1 %v5215_v47  ;;  %v5300_v46 = vld [vmem:[%s7494_s1 + $0x84c] ss:$16 sps:$4 sm:$0xff]   ;;  %v5295_v47 = vld [vmem:[%s7494_s1 + $0x840] ss:$16 sps:$4 sm:$0xff]  }
  0xd3   :  { %3356 = vmatpush1.bf16.msra.mxu0 %v5210_v48  ;;  %3684 = vmatpush1.bf16.msra.mxu1 %v5213_v50  ;;  %v5298_v48 = vld [vmem:[%s7494_s1 + $0x848] ss:$16 sps:$4 sm:$0xff]   ;;  %v5303_v50 = vld [vmem:[%s7494_s1 + $0x864] ss:$16 sps:$4 sm:$0xff]  }
  0xd4   :  { %3357 = vmatprep.subr.bf16.mxu0 %v5218_v51  ;;  %3685 = vmatprep.subr.bf16.mxu1 %v5221_v52  ;;  %v5306_v51 = vld [vmem:[%s7494_s1 + $0x86c] ss:$16 sps:$4 sm:$0xff]   ;;  %v5301_v52 = vld [vmem:[%s7494_s1 + $0x860] ss:$16 sps:$4 sm:$0xff]  }
  0xd7   :  { %3358 = vmatpush1.bf16.msra.mxu0 %v5216_v53  ;;  %3686 = vmatpush1.bf16.msra.mxu1 %v5219_v54  ;;  %v5304_v53 = vld [vmem:[%s7494_s1 + $0x868] ss:$16 sps:$4 sm:$0xff]   ;;  %v5309_v54 = vld [vmem:[%s7494_s1 + $0x884] ss:$16 sps:$4 sm:$0xff]  }
  0xd8   :  { %3359 = vmatprep.subr.bf16.mxu0 %v5224_v55  ;;  %3687 = vmatprep.subr.bf16.mxu1 %v5227_v56  ;;  %v5312_v55 = vld [vmem:[%s7494_s1 + $0x88c] ss:$16 sps:$4 sm:$0xff]   ;;  %v5307_v56 = vld [vmem:[%s7494_s1 + $0x880] ss:$16 sps:$4 sm:$0xff]  }
  0xdb   :  { %3360 = vmatpush1.bf16.msra.mxu0 %v5222_v57  ;;  %3688 = vmatpush1.bf16.msra.mxu1 %v5225_v58  ;;  %v5310_v57 = vld [vmem:[%s7494_s1 + $0x888] ss:$16 sps:$4 sm:$0xff]   ;;  %v5315_v58 = vld [vmem:[%s7494_s1 + $0x8a4] ss:$16 sps:$4 sm:$0xff]  }
  0xdc   :  { %3361 = vmatprep.subr.bf16.mxu0 %v5230_v59  ;;  %3689 = vmatprep.subr.bf16.mxu1 %v5233_v60  ;;  %v5318_v59 = vld [vmem:[%s7494_s1 + $0x8ac] ss:$16 sps:$4 sm:$0xff]   ;;  %v5313_v60 = vld [vmem:[%s7494_s1 + $0x8a0] ss:$16 sps:$4 sm:$0xff]  }
  0xdf   :  { %3362 = vmatpush1.bf16.msra.mxu0 %v5228_v61  ;;  %3690 = vmatpush1.bf16.msra.mxu1 %v5231_v62  ;;  %v5316_v61 = vld [vmem:[%s7494_s1 + $0x8a8] ss:$16 sps:$4 sm:$0xff]   ;;  %v5321_v62 = vld [vmem:[%s7494_s1 + $0x8c4] ss:$16 sps:$4 sm:$0xff]  }
  0xe0   :  { %3363 = vmatprep.subr.bf16.mxu0 %v5236_v63  ;;  %3691 = vmatprep.subr.bf16.mxu1 %v5239_v0  ;;  %v5324_v63 = vld [vmem:[%s7494_s1 + $0x8cc] ss:$16 sps:$4 sm:$0xff]   ;;  %v5319_v0 = vld [vmem:[%s7494_s1 + $0x8c0] ss:$16 sps:$4 sm:$0xff]  }
  0xe3   :  { %3364 = vmatpush1.bf16.msra.mxu0 %v5234_v1  ;;  %3692 = vmatpush1.bf16.msra.mxu1 %v5237_v2  ;;  %v5322_v1 = vld [vmem:[%s7494_s1 + $0x8c8] ss:$16 sps:$4 sm:$0xff]   ;;  %v5327_v2 = vld [vmem:[%s7494_s1 + $0x8e4] ss:$16 sps:$4 sm:$0xff]  }
  0xe4   :  { %3365 = vmatprep.subr.bf16.mxu0 %v5242_v3  ;;  %3693 = vmatprep.subr.bf16.mxu1 %v5245_v4  ;;  %v5330_v3 = vld [vmem:[%s7494_s1 + $0x8ec] ss:$16 sps:$4 sm:$0xff]   ;;  %v5325_v4 = vld [vmem:[%s7494_s1 + $0x8e0] ss:$16 sps:$4 sm:$0xff]  }
  0xe7   :  { %3366 = vmatpush1.bf16.msra.mxu0 %v5240_v5  ;;  %3694 = vmatpush1.bf16.msra.mxu1 %v5243_v6  ;;  %v5328_v5 = vld [vmem:[%s7494_s1 + $0x8e8] ss:$16 sps:$4 sm:$0xff]   ;;  %v5333_v6 = vld [vmem:[%s7494_s1 + $0x904] ss:$16 sps:$4 sm:$0xff]  }
  0xe8   :  { %3367 = vmatprep.subr.bf16.mxu0 %v5248_v7  ;;  %3695 = vmatprep.subr.bf16.mxu1 %v5251_v8  ;;  %v5336_v7 = vld [vmem:[%s7494_s1 + $0x90c] ss:$16 sps:$4 sm:$0xff]   ;;  %v5331_v8 = vld [vmem:[%s7494_s1 + $0x900] ss:$16 sps:$4 sm:$0xff]  }
  0xeb   :  { %3368 = vmatpush1.bf16.msra.mxu0 %v5246_v10  ;;  %3696 = vmatpush1.bf16.msra.mxu1 %v5249_v11  ;;  %v5334_v10 = vld [vmem:[%s7494_s1 + $0x908] ss:$16 sps:$4 sm:$0xff]   ;;  %v5339_v11 = vld [vmem:[%s7494_s1 + $0x924] ss:$16 sps:$4 sm:$0xff]  }
  0xec   :  { %3369 = vmatprep.subr.bf16.mxu0 %v5254_v12  ;;  %3697 = vmatprep.subr.bf16.mxu1 %v5257_v13  ;;  %v5342_v12 = vld [vmem:[%s7494_s1 + $0x92c] ss:$16 sps:$4 sm:$0xff]   ;;  %v5337_v13 = vld [vmem:[%s7494_s1 + $0x920] ss:$16 sps:$4 sm:$0xff]  }
  0xef   :  { %3370 = vmatpush1.bf16.msra.mxu0 %v5252_v14  ;;  %3698 = vmatpush1.bf16.msra.mxu1 %v5255_v15  ;;  %v5340_v14 = vld [vmem:[%s7494_s1 + $0x928] ss:$16 sps:$4 sm:$0xff]   ;;  %v5345_v15 = vld [vmem:[%s7494_s1 + $0x944] ss:$16 sps:$4 sm:$0xff]  }
  0xf0   :  { %3371 = vmatprep.subr.bf16.mxu0 %v5260_v16  ;;  %3699 = vmatprep.subr.bf16.mxu1 %v5263_v17  ;;  %v5348_v16 = vld [vmem:[%s7494_s1 + $0x94c] ss:$16 sps:$4 sm:$0xff]   ;;  %v5343_v17 = vld [vmem:[%s7494_s1 + $0x940] ss:$16 sps:$4 sm:$0xff]  }
  0xf3   :  { %3372 = vmatpush1.bf16.msra.mxu0 %v5258_v18  ;;  %3700 = vmatpush1.bf16.msra.mxu1 %v5261_v19  ;;  %v5346_v18 = vld [vmem:[%s7494_s1 + $0x948] ss:$16 sps:$4 sm:$0xff]   ;;  %v5351_v19 = vld [vmem:[%s7494_s1 + $0x964] ss:$16 sps:$4 sm:$0xff]  }
  0xf4   :  { %3373 = vmatprep.subr.bf16.mxu0 %v5266_v20  ;;  %3701 = vmatprep.subr.bf16.mxu1 %v5269_v21  ;;  %v5354_v20 = vld [vmem:[%s7494_s1 + $0x96c] ss:$16 sps:$4 sm:$0xff]   ;;  %v5349_v21 = vld [vmem:[%s7494_s1 + $0x960] ss:$16 sps:$4 sm:$0xff]  }
  0xf7   :  { %3374 = vmatpush1.bf16.msra.mxu0 %v5264_v22  ;;  %3702 = vmatpush1.bf16.msra.mxu1 %v5267_v23  ;;  %v5352_v22 = vld [vmem:[%s7494_s1 + $0x968] ss:$16 sps:$4 sm:$0xff]   ;;  %v5357_v23 = vld [vmem:[%s7494_s1 + $0x984] ss:$16 sps:$4 sm:$0xff]  }
  0xf8   :  { %3375 = vmatprep.subr.bf16.mxu0 %v5272_v9  ;;  %3703 = vmatprep.subr.bf16.mxu1 %v5275_v26  ;;  %v5360_v9 = vld [vmem:[%s7494_s1 + $0x98c] ss:$16 sps:$4 sm:$0xff]   ;;  %v5355_v26 = vld [vmem:[%s7494_s1 + $0x980] ss:$16 sps:$4 sm:$0xff]  }
  0xfb   :  { %3376 = vmatpush1.bf16.msra.mxu0 %v5270_v27  ;;  %3704 = vmatpush1.bf16.msra.mxu1 %v5273_v29  ;;  %v5358_v27 = vld [vmem:[%s7494_s1 + $0x988] ss:$16 sps:$4 sm:$0xff]   ;;  %v5363_v29 = vld [vmem:[%s7494_s1 + $0x9a4] ss:$16 sps:$4 sm:$0xff]  }
  0xfc   :  { %3377 = vmatprep.subr.bf16.mxu0 %v5278_v30  ;;  %3705 = vmatprep.subr.bf16.mxu1 %v5281_v31  ;;  %v5366_v30 = vld [vmem:[%s7494_s1 + $0x9ac] ss:$16 sps:$4 sm:$0xff]   ;;  %v5361_v31 = vld [vmem:[%s7494_s1 + $0x9a0] ss:$16 sps:$4 sm:$0xff]  }
  0xff   :  { %3378 = vmatpush1.bf16.msra.mxu0 %v5276_v33  ;;  %3706 = vmatpush1.bf16.msra.mxu1 %v5279_v25  ;;  %v5364_v33 = vld [vmem:[%s7494_s1 + $0x9a8] ss:$16 sps:$4 sm:$0xff]   ;;  %v5369_v25 = vld [vmem:[%s7494_s1 + $0x9c4] ss:$16 sps:$4 sm:$0xff]  }
 0x100   :  { %3388 = vmatprep.subr.bf16.mxu0 %v5285_v34  ;;  %3716 = vmatprep.subr.bf16.mxu1 %v5288_v35  ;;  %v5372_v34 = vld [vmem:[%s7494_s1 + $0x9cc] ss:$16 sps:$4 sm:$0xff]   ;;  %v64_v35 = vcombine.high %v6549_v28, %v6549_v28 }
 0x101   :  { %v5378_v28 = vld [vmem:[%s7494_s1 + $0x9ec] ss:$16 sps:$4 sm:$0xff]  }
 0x102   :  { %3380 = vmatmul.mubr.bf16.vlgmr.msra.gmra.mrb[0].mxu0 %v120_v38  ;;  %3708 = vmatmul.mubr.bf16.vlgmr.msra.gmra.mrb[0].mxu1 %v120_v38  ;;  %v5375_v38 = vld [vmem:[%s7494_s1 + $0x9e4] ss:$16 sps:$4 sm:$0xff]  }
 0x103   :  { %3389 = vmatpush1.bf16.msra.mxu0 %v5283_v37  ;;  %3717 = vmatpush1.bf16.msra.mxu1 %v5286_v39  ;;  %v5370_v37 = vld [vmem:[%s7494_s1 + $0x9c8] ss:$16 sps:$4 sm:$0xff]   ;;  %v6763_v39 = vrot.slane %v64_v35, %v5892_v49 }
 0x104   :  { %3390 = vmatprep.subr.bf16.mxu0 %v5291_v40  ;;  %3718 = vmatprep.subr.bf16.mxu1 %v5294_v41  ;;  %v5373_v40 = vld [vmem:[%s7494_s1 + $0x9e0] ss:$16 sps:$4 sm:$0xff]   ;;  %v5376_v41 = vld [vmem:[%s7494_s1 + $0x9e8] ss:$16 sps:$4 sm:$0xff]  }
 0x105   :  { %3420 = vmatprep.mubr.bf16.mxu0 %v123_v42  ;;  %3748 = vmatprep.mubr.bf16.mxu1 %v123_v42  ;;  %v5381_v42 = vld [vmem:[%s7494_s1 + $0xa04] ss:$16 sps:$4 sm:$0xff]  }
 0x107   :  { %3391 = vmatpush1.bf16.msra.mxu0 %v5289_v24  ;;  %3719 = vmatpush1.bf16.msra.mxu1 %v5292_v44  ;;  %v5384_v24 = vld [vmem:[%s7494_s1 + $0xa0c] ss:$16 sps:$4 sm:$0xff]   ;;  %v80_v44 = vcombine.high %v6763_v39, %v6763_v39 }
 0x108   :  { %3392 = vmatprep.subr.bf16.mxu0 %v5297_v45  ;;  %3720 = vmatprep.subr.bf16.mxu1 %v5300_v46  ;;  %v122_v45 = vpack.c.bf16 %v6562_v32, %v6562_v32  ;;  %v5379_v46 = vld [vmem:[%s7494_s1 + $0xa00] ss:$16 sps:$4 sm:$0xff]   ;;  %v5390_v32 = vld [vmem:[%s7494_s1 + $0xa2c] ss:$16 sps:$4 sm:$0xff]  }
 0x10b   :  { %3393 = vmatpush1.bf16.msra.mxu0 %v5295_v47  ;;  %3721 = vmatpush1.bf16.msra.mxu1 %v5298_v48  ;;  %v5382_v47 = vld [vmem:[%s7494_s1 + $0xa08] ss:$16 sps:$4 sm:$0xff]   ;;  %v5387_v48 = vld [vmem:[%s7494_s1 + $0xa24] ss:$16 sps:$4 sm:$0xff]  }
 0x10c   :  { %3394 = vmatprep.subr.bf16.mxu0 %v5303_v50  ;;  %3722 = vmatprep.subr.bf16.mxu1 %v5306_v51  ;;  %v125_v50 = vpack.c.bf16 %v80_v44, %v80_v44  ;;  %v5385_v51 = vld [vmem:[%s7494_s1 + $0xa20] ss:$16 sps:$4 sm:$0xff]  }
 0x10f   :  { %3395 = vmatpush1.bf16.msra.mxu0 %v5301_v52  ;;  %3723 = vmatpush1.bf16.msra.mxu1 %v5304_v53  ;;  %v5388_v52 = vld [vmem:[%s7494_s1 + $0xa28] ss:$16 sps:$4 sm:$0xff]   ;;  %v5393_v53 = vld [vmem:[%s7494_s1 + $0xa44] ss:$16 sps:$4 sm:$0xff]  }
 0x110   :  { %3396 = vmatprep.subr.bf16.mxu0 %v5309_v54  ;;  %3724 = vmatprep.subr.bf16.mxu1 %v5312_v55  ;;  %v5396_v54 = vld [vmem:[%s7494_s1 + $0xa4c] ss:$16 sps:$4 sm:$0xff]   ;;  %v5391_v55 = vld [vmem:[%s7494_s1 + $0xa40] ss:$16 sps:$4 sm:$0xff]  }
 0x113   :  { %3397 = vmatpush1.bf16.msra.mxu0 %v5307_v56  ;;  %3725 = vmatpush1.bf16.msra.mxu1 %v5310_v57  ;;  %v5394_v56 = vld [vmem:[%s7494_s1 + $0xa48] ss:$16 sps:$4 sm:$0xff]   ;;  %v5399_v57 = vld [vmem:[%s7494_s1 + $0xa64] ss:$16 sps:$4 sm:$0xff]  }
 0x114   :  { %3398 = vmatprep.subr.bf16.mxu0 %v5315_v58  ;;  %3726 = vmatprep.subr.bf16.mxu1 %v5318_v59  ;;  %v5402_v58 = vld [vmem:[%s7494_s1 + $0xa6c] ss:$16 sps:$4 sm:$0xff]   ;;  %v5397_v59 = vld [vmem:[%s7494_s1 + $0xa60] ss:$16 sps:$4 sm:$0xff]  }
 0x117   :  { %3399 = vmatpush1.bf16.msra.mxu0 %v5313_v60  ;;  %3727 = vmatpush1.bf16.msra.mxu1 %v5316_v61  ;;  %v5400_v60 = vld [vmem:[%s7494_s1 + $0xa68] ss:$16 sps:$4 sm:$0xff]   ;;  %v5405_v61 = vld [vmem:[%s7494_s1 + $0xa84] ss:$16 sps:$4 sm:$0xff]  }
 0x118   :  { %3400 = vmatprep.subr.bf16.mxu0 %v5321_v62  ;;  %3728 = vmatprep.subr.bf16.mxu1 %v5324_v63  ;;  %v5408_v62 = vld [vmem:[%s7494_s1 + $0xa8c] ss:$16 sps:$4 sm:$0xff]   ;;  %v5403_v63 = vld [vmem:[%s7494_s1 + $0xa80] ss:$16 sps:$4 sm:$0xff]  }
 0x11b   :  { %3401 = vmatpush1.bf16.msra.mxu0 %v5319_v0  ;;  %3729 = vmatpush1.bf16.msra.mxu1 %v5322_v1  ;;  %v5406_v0 = vld [vmem:[%s7494_s1 + $0xa88] ss:$16 sps:$4 sm:$0xff]   ;;  %v5411_v1 = vld [vmem:[%s7494_s1 + $0xaa4] ss:$16 sps:$4 sm:$0xff]  }
 0x11c   :  { %3402 = vmatprep.subr.bf16.mxu0 %v5327_v2  ;;  %3730 = vmatprep.subr.bf16.mxu1 %v5330_v3  ;;  %v5414_v2 = vld [vmem:[%s7494_s1 + $0xaac] ss:$16 sps:$4 sm:$0xff]   ;;  %v5409_v3 = vld [vmem:[%s7494_s1 + $0xaa0] ss:$16 sps:$4 sm:$0xff]  }
 0x11f   :  { %3403 = vmatpush1.bf16.msra.mxu0 %v5325_v4  ;;  %3731 = vmatpush1.bf16.msra.mxu1 %v5328_v5  ;;  %v5412_v4 = vld [vmem:[%s7494_s1 + $0xaa8] ss:$16 sps:$4 sm:$0xff]   ;;  %v5417_v5 = vld [vmem:[%s7494_s1 + $0xac4] ss:$16 sps:$4 sm:$0xff]  }
 0x120   :  { %3404 = vmatprep.subr.bf16.mxu0 %v5333_v6  ;;  %3732 = vmatprep.subr.bf16.mxu1 %v5336_v7  ;;  %v5420_v6 = vld [vmem:[%s7494_s1 + $0xacc] ss:$16 sps:$4 sm:$0xff]   ;;  %v5415_v7 = vld [vmem:[%s7494_s1 + $0xac0] ss:$16 sps:$4 sm:$0xff]  }
 0x123   :  { %3405 = vmatpush1.bf16.msra.mxu0 %v5331_v8  ;;  %3733 = vmatpush1.bf16.msra.mxu1 %v5334_v10  ;;  %v5418_v8 = vld [vmem:[%s7494_s1 + $0xac8] ss:$16 sps:$4 sm:$0xff]   ;;  %v5423_v10 = vld [vmem:[%s7494_s1 + $0xae4] ss:$16 sps:$4 sm:$0xff]  }
 0x124   :  { %3406 = vmatprep.subr.bf16.mxu0 %v5339_v11  ;;  %3734 = vmatprep.subr.bf16.mxu1 %v5342_v12  ;;  %v5426_v11 = vld [vmem:[%s7494_s1 + $0xaec] ss:$16 sps:$4 sm:$0xff]   ;;  %v5421_v12 = vld [vmem:[%s7494_s1 + $0xae0] ss:$16 sps:$4 sm:$0xff]  }
 0x127   :  { %3407 = vmatpush1.bf16.msra.mxu0 %v5337_v13  ;;  %3735 = vmatpush1.bf16.msra.mxu1 %v5340_v14  ;;  %v5424_v13 = vld [vmem:[%s7494_s1 + $0xae8] ss:$16 sps:$4 sm:$0xff]   ;;  %v5429_v14 = vld [vmem:[%s7494_s1 + $0xb04] ss:$16 sps:$4 sm:$0xff]  }
 0x128   :  { %3408 = vmatprep.subr.bf16.mxu0 %v5345_v15  ;;  %3736 = vmatprep.subr.bf16.mxu1 %v5348_v16  ;;  %v5432_v15 = vld [vmem:[%s7494_s1 + $0xb0c] ss:$16 sps:$4 sm:$0xff]   ;;  %v5427_v16 = vld [vmem:[%s7494_s1 + $0xb00] ss:$16 sps:$4 sm:$0xff]  }
 0x12b   :  { %3409 = vmatpush1.bf16.msra.mxu0 %v5343_v17  ;;  %3737 = vmatpush1.bf16.msra.mxu1 %v5346_v18  ;;  %v5430_v17 = vld [vmem:[%s7494_s1 + $0xb08] ss:$16 sps:$4 sm:$0xff]   ;;  %v5435_v18 = vld [vmem:[%s7494_s1 + $0xb24] ss:$16 sps:$4 sm:$0xff]  }
 0x12c   :  { %3410 = vmatprep.subr.bf16.mxu0 %v5351_v19  ;;  %3738 = vmatprep.subr.bf16.mxu1 %v5354_v20  ;;  %v5438_v19 = vld [vmem:[%s7494_s1 + $0xb2c] ss:$16 sps:$4 sm:$0xff]  }
 0x12f   :  { %3411 = vmatpush1.bf16.msra.mxu0 %v5349_v21  ;;  %3739 = vmatpush1.bf16.msra.mxu1 %v5352_v22 }
 0x130   :  { %3412 = vmatprep.subr.bf16.mxu0 %v5357_v23  ;;  %3740 = vmatprep.subr.bf16.mxu1 %v5360_v9 }
 0x133   :  { %3413 = vmatpush1.bf16.msra.mxu0 %v5355_v26  ;;  %3741 = vmatpush1.bf16.msra.mxu1 %v5358_v27 }
 0x134   :  { %3414 = vmatprep.subr.bf16.mxu0 %v5363_v29  ;;  %3742 = vmatprep.subr.bf16.mxu1 %v5366_v30 }
 0x137   :  { %3415 = vmatpush1.bf16.msra.mxu0 %v5361_v31  ;;  %3743 = vmatpush1.bf16.msra.mxu1 %v5364_v33 }
 0x138   :  { %3416 = vmatprep.subr.bf16.mxu0 %v5369_v25  ;;  %3744 = vmatprep.subr.bf16.mxu1 %v5372_v34 }
 0x13b   :  { %3417 = vmatpush1.bf16.msra.mxu0 %v5367_v36  ;;  %3745 = vmatpush1.bf16.msra.mxu1 %v5370_v37 }
 0x13c   :  { %3418 = vmatprep.subr.bf16.mxu0 %v5375_v38  ;;  %3746 = vmatprep.subr.bf16.mxu1 %v5378_v28 }
 0x13f   :  { %3419 = vmatpush1.bf16.msra.mxu0 %v5373_v40  ;;  %3747 = vmatpush1.bf16.msra.mxu1 %v5376_v41 }
 0x140   :  { %3429 = vmatprep.subr.bf16.mxu0 %v5381_v42  ;;  %3757 = vmatprep.subr.bf16.mxu1 %v5384_v24 }
 0x142   :  { %3421 = vmatmul.mubr.bf16.vlgmr.msra.gmra.mrb[0].mxu0 %v122_v45  ;;  %3749 = vmatmul.mubr.bf16.vlgmr.msra.gmra.mrb[0].mxu1 %v122_v45 }
 0x143   :  { %3430 = vmatpush1.bf16.msra.mxu0 %v5379_v46  ;;  %3758 = vmatpush1.bf16.msra.mxu1 %v5382_v47 }
 0x144   :  { %3431 = vmatprep.subr.bf16.mxu0 %v5387_v48  ;;  %3759 = vmatprep.subr.bf16.mxu1 %v5390_v32 }
 0x145   :  { %3461 = vmatprep.mubr.bf16.mxu0 %v125_v50  ;;  %3789 = vmatprep.mubr.bf16.mxu1 %v125_v50 }
 0x147   :  { %3432 = vmatpush1.bf16.msra.mxu0 %v5385_v51  ;;  %3760 = vmatpush1.bf16.msra.mxu1 %v5388_v52 }
 0x148   :  { %3433 = vmatprep.subr.bf16.mxu0 %v5393_v53  ;;  %3761 = vmatprep.subr.bf16.mxu1 %v5396_v54 }
 0x14b   :  { %3434 = vmatpush1.bf16.msra.mxu0 %v5391_v55  ;;  %3762 = vmatpush1.bf16.msra.mxu1 %v5394_v56 }
 0x14c   :  { %3435 = vmatprep.subr.bf16.mxu0 %v5399_v57  ;;  %3763 = vmatprep.subr.bf16.mxu1 %v5402_v58 }
 0x14f   :  { %3436 = vmatpush1.bf16.msra.mxu0 %v5397_v59  ;;  %3764 = vmatpush1.bf16.msra.mxu1 %v5400_v60 }
 0x150   :  { %3437 = vmatprep.subr.bf16.mxu0 %v5405_v61  ;;  %3765 = vmatprep.subr.bf16.mxu1 %v5408_v62 }
 0x153   :  { %3438 = vmatpush1.bf16.msra.mxu0 %v5403_v63  ;;  %3766 = vmatpush1.bf16.msra.mxu1 %v5406_v0 }
 0x154   :  { %3439 = vmatprep.subr.bf16.mxu0 %v5411_v1  ;;  %3767 = vmatprep.subr.bf16.mxu1 %v5414_v2 }
 0x157   :  { %3440 = vmatpush1.bf16.msra.mxu0 %v5409_v3  ;;  %3768 = vmatpush1.bf16.msra.mxu1 %v5412_v4 }
 0x158   :  { %3441 = vmatprep.subr.bf16.mxu0 %v5417_v5  ;;  %3769 = vmatprep.subr.bf16.mxu1 %v5420_v6 }
 0x15b   :  { %3442 = vmatpush1.bf16.msra.mxu0 %v5415_v7  ;;  %3770 = vmatpush1.bf16.msra.mxu1 %v5418_v8 }
 0x15c   :  { %3443 = vmatprep.subr.bf16.mxu0 %v5423_v10  ;;  %3771 = vmatprep.subr.bf16.mxu1 %v5426_v11 }
 0x15f   :  { %3444 = vmatpush1.bf16.msra.mxu0 %v5421_v12  ;;  %3772 = vmatpush1.bf16.msra.mxu1 %v5424_v13 }
 0x160   :  { %3445 = vmatprep.subr.bf16.mxu0 %v5429_v14  ;;  %3773 = vmatprep.subr.bf16.mxu1 %v5432_v15 }
 0x161   :  { %10 = vsyncpa [#allocation3], 0  ;;  %v5433_v20 = vld [vmem:[%s7494_s1 + $0xb20] ss:$16 sps:$4 sm:$0xff]   ;;  %v5436_v21 = vld [vmem:[%s7494_s1 + $0xb28] ss:$16 sps:$4 sm:$0xff]   ;;  %v124_v53 = vpack.c.bf16 %v6763_v39, %v6763_v39 }
 0x162   :  { %v5441_v22 = vld [vmem:[%s7494_s1 + $0xb44] ss:$16 sps:$4 sm:$0xff]   ;;  %v5444_v23 = vld [vmem:[%s7494_s1 + $0xb4c] ss:$16 sps:$4 sm:$0xff]   ;;  %v5439_v9 = vld [vmem:[%s7494_s1 + $0xb40] ss:$16 sps:$4 sm:$0xff]  }
 0x163   :  { %3446 = vmatpush1.bf16.msra.mxu0 %v5427_v16  ;;  %3774 = vmatpush1.bf16.msra.mxu1 %v5430_v17  ;;  %v5442_v26 = vld [vmem:[%s7494_s1 + $0xb48] ss:$16 sps:$4 sm:$0xff]   ;;  %v5447_v27 = vld [vmem:[%s7494_s1 + $0xb64] ss:$16 sps:$4 sm:$0xff]   ;;  %v5450_v29 = vld [vmem:[%s7494_s1 + $0xb6c] ss:$16 sps:$4 sm:$0xff]  }
 0x164   :  { %3447 = vmatprep.subr.bf16.mxu0 %v5435_v18  ;;  %3775 = vmatprep.subr.bf16.mxu1 %v5438_v19  ;;  %v5445_v30 = vld [vmem:[%s7494_s1 + $0xb60] ss:$16 sps:$4 sm:$0xff]   ;;  %v5448_v31 = vld [vmem:[%s7494_s1 + $0xb68] ss:$16 sps:$4 sm:$0xff]   ;;  %v5453_v33 = vld [vmem:[%s7494_s1 + $0xb84] ss:$16 sps:$4 sm:$0xff]  }
 0x165   :  { %v5456_v25 = vld [vmem:[%s7494_s1 + $0xb8c] ss:$16 sps:$4 sm:$0xff]   ;;  %v5451_v34 = vld [vmem:[%s7494_s1 + $0xb80] ss:$16 sps:$4 sm:$0xff]   ;;  %v5454_v35 = vld [vmem:[%s7494_s1 + $0xb88] ss:$16 sps:$4 sm:$0xff]  }
 0x166   :  { %v5459_v36 = vld [vmem:[%s7494_s1 + $0xba4] ss:$16 sps:$4 sm:$0xff]   ;;  %v5462_v37 = vld [vmem:[%s7494_s1 + $0xbac] ss:$16 sps:$4 sm:$0xff]   ;;  %v5457_v38 = vld [vmem:[%s7494_s1 + $0xba0] ss:$16 sps:$4 sm:$0xff]  }
 0x167   :  { %3448 = vmatpush1.bf16.msra.mxu0 %v5433_v20  ;;  %3776 = vmatpush1.bf16.msra.mxu1 %v5436_v21  ;;  %v5460_v28 = vld [vmem:[%s7494_s1 + $0xba8] ss:$16 sps:$4 sm:$0xff]   ;;  %v5465_v40 = vld [vmem:[%s7494_s1 + $0xbc4] ss:$16 sps:$4 sm:$0xff]   ;;  %v5468_v41 = vld [vmem:[%s7494_s1 + $0xbcc] ss:$16 sps:$4 sm:$0xff]  }
 0x168   :  { %3449 = vmatprep.subr.bf16.mxu0 %v5441_v22  ;;  %3777 = vmatprep.subr.bf16.mxu1 %v5444_v23  ;;  %v6952_v42 = vld [vmem:[%s7493_s0 + $0x18] sm:$0xff]  ;;  %v5463_v24 = vld [vmem:[%s7494_s1 + $0xbc0] ss:$16 sps:$4 sm:$0xff]   ;;  %v5471_v45 = vld [vmem:[%s7494_s1 + $0xbe4] ss:$16 sps:$4 sm:$0xff]   ;;  %s5726_s25 = smov [#allocation2]  }
 0x169   :  { %v5466_v44 = vld [vmem:[%s7494_s1 + $0xbc8] ss:$16 sps:$4 sm:$0xff]   ;;  %v5474_v46 = vld [vmem:[%s7494_s1 + $0xbec] ss:$16 sps:$4 sm:$0xff]   ;;  %v6968_v47 = vrot.slane %v6952_v42, %v5892_v49  ;;  %v5469_v48 = vld [vmem:[%s7494_s1 + $0xbe0] ss:$16 sps:$4 sm:$0xff]  }
 0x16a   :  { %v5472_v32 = vld [vmem:[%s7494_s1 + $0xbe8] ss:$16 sps:$4 sm:$0xff]   ;;  %v5478_v50 = vld [vmem:[%s7494_s1 + $0xc04] ss:$16 sps:$4 sm:$0xff]   ;;  %v5481_v51 = vld [vmem:[%s7494_s1 + $0xc0c] ss:$16 sps:$4 sm:$0xff]  }
 0x16b   :  { %3450 = vmatpush1.bf16.msra.mxu0 %v5439_v9  ;;  %3778 = vmatpush1.bf16.msra.mxu1 %v5442_v26  ;;  %v96_v52 = vcombine.high %v6968_v47, %v6968_v47  ;;  %v5476_v54 = vld [vmem:[%s7494_s1 + $0xc00] ss:$16 sps:$4 sm:$0xff]   ;;  %v5479_v55 = vld [vmem:[%s7494_s1 + $0xc08] ss:$16 sps:$4 sm:$0xff]   ;;  %v5484_v56 = vld [vmem:[%s7494_s1 + $0xc24] ss:$16 sps:$4 sm:$0xff]  }
 0x16c   :  { %3451 = vmatprep.subr.bf16.mxu0 %v5447_v27  ;;  %3779 = vmatprep.subr.bf16.mxu1 %v5450_v29  ;;  %v5487_v39 = vld [vmem:[%s7494_s1 + $0xc2c] ss:$16 sps:$4 sm:$0xff]   ;;  %v5482_v58 = vld [vmem:[%s7494_s1 + $0xc20] ss:$16 sps:$4 sm:$0xff]   ;;  %v5485_v59 = vld [vmem:[%s7494_s1 + $0xc28] ss:$16 sps:$4 sm:$0xff]  }
 0x16d   :  { %v127_v57 = vpack.c.bf16 %v96_v52, %v96_v52  ;;  %v5490_v60 = vld [vmem:[%s7494_s1 + $0xc44] ss:$16 sps:$4 sm:$0xff]   ;;  %v5493_v61 = vld [vmem:[%s7494_s1 + $0xc4c] ss:$16 sps:$4 sm:$0xff]   ;;  %v5488_v62 = vld [vmem:[%s7494_s1 + $0xc40] ss:$16 sps:$4 sm:$0xff]  }
 0x16e   :  { %v5491_v63 = vld [vmem:[%s7494_s1 + $0xc48] ss:$16 sps:$4 sm:$0xff]   ;;  %v5496_v0 = vld [vmem:[%s7494_s1 + $0xc64] ss:$16 sps:$4 sm:$0xff]   ;;  %v5499_v1 = vld [vmem:[%s7494_s1 + $0xc6c] ss:$16 sps:$4 sm:$0xff]  }
 0x16f   :  { %3452 = vmatpush1.bf16.msra.mxu0 %v5445_v30  ;;  %3780 = vmatpush1.bf16.msra.mxu1 %v5448_v31  ;;  %v5494_v2 = vld [vmem:[%s7494_s1 + $0xc60] ss:$16 sps:$4 sm:$0xff]   ;;  %v5497_v3 = vld [vmem:[%s7494_s1 + $0xc68] ss:$16 sps:$4 sm:$0xff]   ;;  %v5502_v4 = vld [vmem:[%s7494_s1 + $0xc84] ss:$16 sps:$4 sm:$0xff]  }
 0x170   :  { %3453 = vmatprep.subr.bf16.mxu0 %v5453_v33  ;;  %3781 = vmatprep.subr.bf16.mxu1 %v5456_v25  ;;  %v5505_v5 = vld [vmem:[%s7494_s1 + $0xc8c] ss:$16 sps:$4 sm:$0xff]   ;;  %v5500_v6 = vld [vmem:[%s7494_s1 + $0xc80] ss:$16 sps:$4 sm:$0xff]   ;;  %v5503_v7 = vld [vmem:[%s7494_s1 + $0xc88] ss:$16 sps:$4 sm:$0xff]  }
 0x171   :  { %v5508_v8 = vld [vmem:[%s7494_s1 + $0xca4] ss:$16 sps:$4 sm:$0xff]   ;;  %v5511_v10 = vld [vmem:[%s7494_s1 + $0xcac] ss:$16 sps:$4 sm:$0xff]   ;;  %v5506_v11 = vld [vmem:[%s7494_s1 + $0xca0] ss:$16 sps:$4 sm:$0xff]  }
 0x172   :  { %v5509_v12 = vld [vmem:[%s7494_s1 + $0xca8] ss:$16 sps:$4 sm:$0xff]   ;;  %v5514_v13 = vld [vmem:[%s7494_s1 + $0xcc4] ss:$16 sps:$4 sm:$0xff]   ;;  %v5517_v14 = vld [vmem:[%s7494_s1 + $0xccc] ss:$16 sps:$4 sm:$0xff]  }
 0x173   :  { %3454 = vmatpush1.bf16.msra.mxu0 %v5451_v34  ;;  %3782 = vmatpush1.bf16.msra.mxu1 %v5454_v35  ;;  %v5512_v15 = vld [vmem:[%s7494_s1 + $0xcc0] ss:$16 sps:$4 sm:$0xff]   ;;  %v5515_v16 = vld [vmem:[%s7494_s1 + $0xcc8] ss:$16 sps:$4 sm:$0xff]   ;;  %v5520_v17 = vld [vmem:[%s7494_s1 + $0xce4] ss:$16 sps:$4 sm:$0xff]  }
 0x174   :  { %3455 = vmatprep.subr.bf16.mxu0 %v5459_v36  ;;  %3783 = vmatprep.subr.bf16.mxu1 %v5462_v37  ;;  %v5523_v18 = vld [vmem:[%s7494_s1 + $0xcec] ss:$16 sps:$4 sm:$0xff]   ;;  %v5518_v19 = vld [vmem:[%s7494_s1 + $0xce0] ss:$16 sps:$4 sm:$0xff]   ;;  %v5521_v20 = vld [vmem:[%s7494_s1 + $0xce8] ss:$16 sps:$4 sm:$0xff]  }
 0x175   :  { %v5526_v21 = vld [vmem:[%s7494_s1 + $0xd04] ss:$16 sps:$4 sm:$0xff]   ;;  %v5529_v22 = vld [vmem:[%s7494_s1 + $0xd0c] ss:$16 sps:$4 sm:$0xff]   ;;  %v5524_v23 = vld [vmem:[%s7494_s1 + $0xd00] ss:$16 sps:$4 sm:$0xff]  }
 0x176   :  { %v5527_v9 = vld [vmem:[%s7494_s1 + $0xd08] ss:$16 sps:$4 sm:$0xff]   ;;  %v5532_v26 = vld [vmem:[%s7494_s1 + $0xd24] ss:$16 sps:$4 sm:$0xff]   ;;  %v5535_v27 = vld [vmem:[%s7494_s1 + $0xd2c] ss:$16 sps:$4 sm:$0xff]  }
 0x177   :  { %3456 = vmatpush1.bf16.msra.mxu0 %v5457_v38  ;;  %3784 = vmatpush1.bf16.msra.mxu1 %v5460_v28  ;;  %v5530_v29 = vld [vmem:[%s7494_s1 + $0xd20] ss:$16 sps:$4 sm:$0xff]   ;;  %v5533_v30 = vld [vmem:[%s7494_s1 + $0xd28] ss:$16 sps:$4 sm:$0xff]   ;;  %v5538_v31 = vld [vmem:[%s7494_s1 + $0xd44] ss:$16 sps:$4 sm:$0xff]  }
 0x178   :  { %3457 = vmatprep.subr.bf16.mxu0 %v5465_v40  ;;  %3785 = vmatprep.subr.bf16.mxu1 %v5468_v41  ;;  %v5541_v33 = vld [vmem:[%s7494_s1 + $0xd4c] ss:$16 sps:$4 sm:$0xff]   ;;  %v5536_v25 = vld [vmem:[%s7494_s1 + $0xd40] ss:$16 sps:$4 sm:$0xff]   ;;  %v5539_v34 = vld [vmem:[%s7494_s1 + $0xd48] ss:$16 sps:$4 sm:$0xff]  }
 0x179   :  { %v5544_v35 = vld [vmem:[%s7494_s1 + $0xd64] ss:$16 sps:$4 sm:$0xff]   ;;  %v5547_v36 = vld [vmem:[%s7494_s1 + $0xd6c] ss:$16 sps:$4 sm:$0xff]   ;;  %v5542_v37 = vld [vmem:[%s7494_s1 + $0xd60] ss:$16 sps:$4 sm:$0xff]  }
 0x17a   :  { %v5545_v38 = vld [vmem:[%s7494_s1 + $0xd68] ss:$16 sps:$4 sm:$0xff]   ;;  %v5550_v28 = vld [vmem:[%s7494_s1 + $0xd84] ss:$16 sps:$4 sm:$0xff]   ;;  %v5553_v40 = vld [vmem:[%s7494_s1 + $0xd8c] ss:$16 sps:$4 sm:$0xff]  }
 0x17b   :  { %3458 = vmatpush1.bf16.msra.mxu0 %v5463_v24  ;;  %3786 = vmatpush1.bf16.msra.mxu1 %v5466_v44  ;;  %v5548_v41 = vld [vmem:[%s7494_s1 + $0xd80] ss:$16 sps:$4 sm:$0xff]   ;;  %v5551_v24 = vld [vmem:[%s7494_s1 + $0xd88] ss:$16 sps:$4 sm:$0xff]   ;;  %v5556_v44 = vld [vmem:[%s7494_s1 + $0xda4] ss:$16 sps:$4 sm:$0xff]  }
 0x17c   :  { %3459 = vmatprep.subr.bf16.mxu0 %v5471_v45  ;;  %3787 = vmatprep.subr.bf16.mxu1 %v5474_v46  ;;  %v5559_v45 = vld [vmem:[%s7494_s1 + $0xdac] ss:$16 sps:$4 sm:$0xff]   ;;  %v5554_v46 = vld [vmem:[%s7494_s1 + $0xda0] ss:$16 sps:$4 sm:$0xff]   ;;  %s4238_s26 = sshll.u32 %s5726_s25, 4  ;;  %s4239_s26 = int_to_ptr.vmem [resolvable:$true] %s4238_s26 }
 0x17d   :  { %v5560_v52 = vld [vmem:[%s7494_s1 + $0xdc0] ss:$16 sps:$4 sm:$0xff]   ;;  %s5701_s27 = scalar_lea.vmem %s4239_s26, 32  ;;  %p5706_p1 = scmp.lt.s32.totalorder %s4239_s26, %s4239_s26 }
 0x17e   :  { %p5702_p0 = scmp.ne.s32.totalorder %s4239_s26, %s5701_s27  ;;  %p5707_p2 = scmp.lt.s32.totalorder %s5701_s27, %s5701_s27 }
 0x17f   :  { %3460 = vmatpush1.bf16.msra.mxu0 %v5469_v48  ;;  %3788 = vmatpush1.bf16.msra.mxu1 %v5472_v32  ;;  %v5557_v48 = vld [vmem:[%s7494_s1 + $0xda8] ss:$16 sps:$4 sm:$0xff]   ;;  %v5562_v32 = vld [vmem:[%s7494_s1 + $0xdc4] ss:$16 sps:$4 sm:$0xff]  }
 0x180   :  { %3470 = vmatprep.subr.bf16.mxu0 %v5478_v50  ;;  %3798 = vmatprep.subr.bf16.mxu1 %v5481_v51  ;;  %v5565_v50 = vld [vmem:[%s7494_s1 + $0xdcc] ss:$16 sps:$4 sm:$0xff]   ;;  %v81_v51 = vcombine.high %v6952_v42, %v6952_v42  ;;  %p5708_p3 = por %p5707_p2, %p5706_p1 }
 0x181   :  { %v5571_v42 = vld [vmem:[%s7494_s1 + $0xdec] ss:$16 sps:$4 sm:$0xff]  }
 0x182   :  { %3462 = vmatmul.mubr.bf16.vlgmr.msra.gmra.mrb[0].mxu0 %v124_v53  ;;  %3790 = vmatmul.mubr.bf16.vlgmr.msra.gmra.mrb[0].mxu1 %v124_v53  ;;  %v5563_v53 = vld [vmem:[%s7494_s1 + $0xdc8] ss:$16 sps:$4 sm:$0xff]   ;;  %p5709_p4 = pnand %p5708_p3, %p5702_p0 }
 0x183   :  { %3471 = vmatpush1.bf16.msra.mxu0 %v5476_v54  ;;  %3799 = vmatpush1.bf16.msra.mxu1 %v5479_v55  ;;  %v5568_v54 = vld [vmem:[%s7494_s1 + $0xde4] ss:$16 sps:$4 sm:$0xff]   ;;  %v7169_v55 = vrot.slane %v81_v51, %v5892_v49  ;;  %v5577_v49 = vld [vmem:[%s7494_s1 + $0xe0c] ss:$16 sps:$4 sm:$0xff]  }
 0x184   :  { %3472 = vmatprep.subr.bf16.mxu0 %v5484_v56  ;;  %3800 = vmatprep.subr.bf16.mxu1 %v5487_v39  ;;  %v5566_v56 = vld [vmem:[%s7494_s1 + $0xde0] ss:$16 sps:$4 sm:$0xff]   ;;  %v5569_v39 = vld [vmem:[%s7494_s1 + $0xde8] ss:$16 sps:$4 sm:$0xff]   ;;  %v5652_v51 = vld [vmem:[%s7494_s1 + $0xfa4] ss:$16 sps:$4 sm:$0xff]  }
 0x185   :  { %3502 = vmatprep.mubr.bf16.mxu0 %v127_v57  ;;  %3830 = vmatprep.mubr.bf16.mxu1 %v127_v57  ;;  %v5574_v57 = vld [vmem:[%s7494_s1 + $0xe04] ss:$16 sps:$4 sm:$0xff]  }
 0x187   :  { %3473 = vmatpush1.bf16.msra.mxu0 %v5482_v58  ;;  %3801 = vmatpush1.bf16.msra.mxu1 %v5485_v59  ;;  %v97_v58 = vcombine.high %v7169_v55, %v7169_v55  ;;  %v126_v59 = vpack.c.bf16 %v6968_v47, %v6968_v47  ;;  %v5583_v47 = vld [vmem:[%s7494_s1 + $0xe2c] ss:$16 sps:$4 sm:$0xff]  }
 0x188   :  { %3474 = vmatprep.subr.bf16.mxu0 %v5490_v60  ;;  %3802 = vmatprep.subr.bf16.mxu1 %v5493_v61  ;;  %v5572_v60 = vld [vmem:[%s7494_s1 + $0xe00] ss:$16 sps:$4 sm:$0xff]   ;;  %v5575_v61 = vld [vmem:[%s7494_s1 + $0xe08] ss:$16 sps:$4 sm:$0xff]  }
 0x18b   :  { %3475 = vmatpush1.bf16.msra.mxu0 %v5488_v62  ;;  %3803 = vmatpush1.bf16.msra.mxu1 %v5491_v63  ;;  %v5580_v62 = vld [vmem:[%s7494_s1 + $0xe24] ss:$16 sps:$4 sm:$0xff]   ;;  %v129_v63 = vpack.c.bf16 %v97_v58, %v97_v58  ;;  %v5667_v58 = vld [vmem:[%s7494_s1 + $0xfec] ss:$16 sps:$4 sm:$0xff]  }
 0x18c   :  { %3476 = vmatprep.subr.bf16.mxu0 %v5496_v0  ;;  %3804 = vmatprep.subr.bf16.mxu1 %v5499_v1  ;;  %v5578_v0 = vld [vmem:[%s7494_s1 + $0xe20] ss:$16 sps:$4 sm:$0xff]   ;;  %v5581_v1 = vld [vmem:[%s7494_s1 + $0xe28] ss:$16 sps:$4 sm:$0xff]  }
 0x18f   :  { %3477 = vmatpush1.bf16.msra.mxu0 %v5494_v2  ;;  %3805 = vmatpush1.bf16.msra.mxu1 %v5497_v3  ;;  %v5586_v2 = vld [vmem:[%s7494_s1 + $0xe44] ss:$16 sps:$4 sm:$0xff]   ;;  %v5589_v3 = vld [vmem:[%s7494_s1 + $0xe4c] ss:$16 sps:$4 sm:$0xff]  }
 0x190   :  { %3478 = vmatprep.subr.bf16.mxu0 %v5502_v4  ;;  %3806 = vmatprep.subr.bf16.mxu1 %v5505_v5  ;;  %v5584_v4 = vld [vmem:[%s7494_s1 + $0xe40] ss:$16 sps:$4 sm:$0xff]   ;;  %v5587_v5 = vld [vmem:[%s7494_s1 + $0xe48] ss:$16 sps:$4 sm:$0xff]  }
 0x193   :  { %3479 = vmatpush1.bf16.msra.mxu0 %v5500_v6  ;;  %3807 = vmatpush1.bf16.msra.mxu1 %v5503_v7  ;;  %v5592_v6 = vld [vmem:[%s7494_s1 + $0xe64] ss:$16 sps:$4 sm:$0xff]   ;;  %v5595_v7 = vld [vmem:[%s7494_s1 + $0xe6c] ss:$16 sps:$4 sm:$0xff]  }
 0x194   :  { %3480 = vmatprep.subr.bf16.mxu0 %v5508_v8  ;;  %3808 = vmatprep.subr.bf16.mxu1 %v5511_v10  ;;  %v5590_v8 = vld [vmem:[%s7494_s1 + $0xe60] ss:$16 sps:$4 sm:$0xff]   ;;  %v5593_v10 = vld [vmem:[%s7494_s1 + $0xe68] ss:$16 sps:$4 sm:$0xff]  }
 0x197   :  { %3481 = vmatpush1.bf16.msra.mxu0 %v5506_v11  ;;  %3809 = vmatpush1.bf16.msra.mxu1 %v5509_v12  ;;  %v5598_v11 = vld [vmem:[%s7494_s1 + $0xe84] ss:$16 sps:$4 sm:$0xff]   ;;  %v5601_v12 = vld [vmem:[%s7494_s1 + $0xe8c] ss:$16 sps:$4 sm:$0xff]  }
 0x198   :  { %3482 = vmatprep.subr.bf16.mxu0 %v5514_v13  ;;  %3810 = vmatprep.subr.bf16.mxu1 %v5517_v14  ;;  %v5596_v13 = vld [vmem:[%s7494_s1 + $0xe80] ss:$16 sps:$4 sm:$0xff]   ;;  %v5599_v14 = vld [vmem:[%s7494_s1 + $0xe88] ss:$16 sps:$4 sm:$0xff]  }
 0x19b   :  { %3483 = vmatpush1.bf16.msra.mxu0 %v5512_v15  ;;  %3811 = vmatpush1.bf16.msra.mxu1 %v5515_v16  ;;  %v5604_v15 = vld [vmem:[%s7494_s1 + $0xea4] ss:$16 sps:$4 sm:$0xff]   ;;  %v5607_v16 = vld [vmem:[%s7494_s1 + $0xeac] ss:$16 sps:$4 sm:$0xff]  }
 0x19c   :  { %3484 = vmatprep.subr.bf16.mxu0 %v5520_v17  ;;  %3812 = vmatprep.subr.bf16.mxu1 %v5523_v18  ;;  %v5602_v17 = vld [vmem:[%s7494_s1 + $0xea0] ss:$16 sps:$4 sm:$0xff]   ;;  %v5605_v18 = vld [vmem:[%s7494_s1 + $0xea8] ss:$16 sps:$4 sm:$0xff]  }
 0x19f   :  { %3485 = vmatpush1.bf16.msra.mxu0 %v5518_v19  ;;  %3813 = vmatpush1.bf16.msra.mxu1 %v5521_v20  ;;  %v5610_v19 = vld [vmem:[%s7494_s1 + $0xec4] ss:$16 sps:$4 sm:$0xff]   ;;  %v5613_v20 = vld [vmem:[%s7494_s1 + $0xecc] ss:$16 sps:$4 sm:$0xff]  }
 0x1a0   :  { %3486 = vmatprep.subr.bf16.mxu0 %v5526_v21  ;;  %3814 = vmatprep.subr.bf16.mxu1 %v5529_v22  ;;  %v5608_v21 = vld [vmem:[%s7494_s1 + $0xec0] ss:$16 sps:$4 sm:$0xff]   ;;  %v5611_v22 = vld [vmem:[%s7494_s1 + $0xec8] ss:$16 sps:$4 sm:$0xff]  }
 0x1a3   :  { %3487 = vmatpush1.bf16.msra.mxu0 %v5524_v23  ;;  %3815 = vmatpush1.bf16.msra.mxu1 %v5527_v9  ;;  %v5616_v23 = vld [vmem:[%s7494_s1 + $0xee4] ss:$16 sps:$4 sm:$0xff]   ;;  %v5619_v9 = vld [vmem:[%s7494_s1 + $0xeec] ss:$16 sps:$4 sm:$0xff]  }
 0x1a4   :  { %3488 = vmatprep.subr.bf16.mxu0 %v5532_v26  ;;  %3816 = vmatprep.subr.bf16.mxu1 %v5535_v27  ;;  %v5614_v26 = vld [vmem:[%s7494_s1 + $0xee0] ss:$16 sps:$4 sm:$0xff]   ;;  %v5617_v27 = vld [vmem:[%s7494_s1 + $0xee8] ss:$16 sps:$4 sm:$0xff]  }
 0x1a7   :  { %3489 = vmatpush1.bf16.msra.mxu0 %v5530_v29  ;;  %3817 = vmatpush1.bf16.msra.mxu1 %v5533_v30  ;;  %v5622_v29 = vld [vmem:[%s7494_s1 + $0xf04] ss:$16 sps:$4 sm:$0xff]   ;;  %v5625_v30 = vld [vmem:[%s7494_s1 + $0xf0c] ss:$16 sps:$4 sm:$0xff]  }
 0x1a8   :  { %3490 = vmatprep.subr.bf16.mxu0 %v5538_v31  ;;  %3818 = vmatprep.subr.bf16.mxu1 %v5541_v33  ;;  %v5620_v31 = vld [vmem:[%s7494_s1 + $0xf00] ss:$16 sps:$4 sm:$0xff]   ;;  %v5623_v33 = vld [vmem:[%s7494_s1 + $0xf08] ss:$16 sps:$4 sm:$0xff]  }
 0x1ab   :  { %3491 = vmatpush1.bf16.msra.mxu0 %v5536_v25  ;;  %3819 = vmatpush1.bf16.msra.mxu1 %v5539_v34  ;;  %v5628_v25 = vld [vmem:[%s7494_s1 + $0xf24] ss:$16 sps:$4 sm:$0xff]   ;;  %v5631_v34 = vld [vmem:[%s7494_s1 + $0xf2c] ss:$16 sps:$4 sm:$0xff]  }
 0x1ac   :  { %3492 = vmatprep.subr.bf16.mxu0 %v5544_v35  ;;  %3820 = vmatprep.subr.bf16.mxu1 %v5547_v36  ;;  %v5626_v35 = vld [vmem:[%s7494_s1 + $0xf20] ss:$16 sps:$4 sm:$0xff]   ;;  %v5629_v36 = vld [vmem:[%s7494_s1 + $0xf28] ss:$16 sps:$4 sm:$0xff]  }
 0x1af   :  { %3493 = vmatpush1.bf16.msra.mxu0 %v5542_v37  ;;  %3821 = vmatpush1.bf16.msra.mxu1 %v5545_v38  ;;  %v5634_v37 = vld [vmem:[%s7494_s1 + $0xf44] ss:$16 sps:$4 sm:$0xff]   ;;  %v5637_v38 = vld [vmem:[%s7494_s1 + $0xf4c] ss:$16 sps:$4 sm:$0xff]  }
 0x1b0   :  { %3494 = vmatprep.subr.bf16.mxu0 %v5550_v28  ;;  %3822 = vmatprep.subr.bf16.mxu1 %v5553_v40  ;;  %v5632_v28 = vld [vmem:[%s7494_s1 + $0xf40] ss:$16 sps:$4 sm:$0xff]   ;;  %v5635_v40 = vld [vmem:[%s7494_s1 + $0xf48] ss:$16 sps:$4 sm:$0xff]  }
 0x1b3   :  { %3495 = vmatpush1.bf16.msra.mxu0 %v5548_v41  ;;  %3823 = vmatpush1.bf16.msra.mxu1 %v5551_v24  ;;  %v5640_v41 = vld [vmem:[%s7494_s1 + $0xf64] ss:$16 sps:$4 sm:$0xff]   ;;  %v5643_v24 = vld [vmem:[%s7494_s1 + $0xf6c] ss:$16 sps:$4 sm:$0xff]  }
 0x1b4   :  { %3496 = vmatprep.subr.bf16.mxu0 %v5556_v44  ;;  %3824 = vmatprep.subr.bf16.mxu1 %v5559_v45  ;;  %v5638_v44 = vld [vmem:[%s7494_s1 + $0xf60] ss:$16 sps:$4 sm:$0xff]   ;;  %v5641_v45 = vld [vmem:[%s7494_s1 + $0xf68] ss:$16 sps:$4 sm:$0xff]  }
 0x1b7   :  { %3497 = vmatpush1.bf16.msra.mxu0 %v5554_v46  ;;  %3825 = vmatpush1.bf16.msra.mxu1 %v5557_v48  ;;  %v5646_v46 = vld [vmem:[%s7494_s1 + $0xf84] ss:$16 sps:$4 sm:$0xff]   ;;  %v5649_v48 = vld [vmem:[%s7494_s1 + $0xf8c] ss:$16 sps:$4 sm:$0xff]  }
 0x1b8   :  { %3498 = vmatprep.subr.bf16.mxu0 %v5562_v32  ;;  %3826 = vmatprep.subr.bf16.mxu1 %v5565_v50  ;;  %v5644_v32 = vld [vmem:[%s7494_s1 + $0xf80] ss:$16 sps:$4 sm:$0xff]   ;;  %v5647_v50 = vld [vmem:[%s7494_s1 + $0xf88] ss:$16 sps:$4 sm:$0xff]  }
 0x1bb   :  { %3499 = vmatpush1.bf16.msra.mxu0 %v5560_v52  ;;  %3827 = vmatpush1.bf16.msra.mxu1 %v5563_v53  ;;  %v5655_v52 = vld [vmem:[%s7494_s1 + $0xfac] ss:$16 sps:$4 sm:$0xff]   ;;  %v5650_v53 = vld [vmem:[%s7494_s1 + $0xfa0] ss:$16 sps:$4 sm:$0xff]  }
 0x1bc   :  { %3500 = vmatprep.subr.bf16.mxu0 %v5568_v54  ;;  %3828 = vmatprep.subr.bf16.mxu1 %v5571_v42  ;;  %v5653_v54 = vld [vmem:[%s7494_s1 + $0xfa8] ss:$16 sps:$4 sm:$0xff]   ;;  %v5658_v42 = vld [vmem:[%s7494_s1 + $0xfc4] ss:$16 sps:$4 sm:$0xff]  }
 0x1bf   :  { %3501 = vmatpush1.bf16.msra.mxu0 %v5566_v56  ;;  %3829 = vmatpush1.bf16.msra.mxu1 %v5569_v39  ;;  %v5661_v56 = vld [vmem:[%s7494_s1 + $0xfcc] ss:$16 sps:$4 sm:$0xff]   ;;  %v5656_v39 = vld [vmem:[%s7494_s1 + $0xfc0] ss:$16 sps:$4 sm:$0xff]  }
 0x1c0   :  { %3511 = vmatprep.subr.bf16.mxu0 %v5574_v57  ;;  %3839 = vmatprep.subr.bf16.mxu1 %v5577_v49  ;;  %v5659_v57 = vld [vmem:[%s7494_s1 + $0xfc8] ss:$16 sps:$4 sm:$0xff]   ;;  %v5664_v49 = vld [vmem:[%s7494_s1 + $0xfe4] ss:$16 sps:$4 sm:$0xff]  }
 0x1c2   :  { %3503 = vmatmul.mubr.bf16.vlgmr.msra.gmra.mrb[0].mxu0 %v126_v59  ;;  %3831 = vmatmul.mubr.bf16.vlgmr.msra.gmra.mrb[0].mxu1 %v126_v59  ;;  %v5662_v59 = vld [vmem:[%s7494_s1 + $0xfe0] ss:$16 sps:$4 sm:$0xff]  }
 0x1c3   :  { %3512 = vmatpush1.bf16.msra.mxu0 %v5572_v60  ;;  %3840 = vmatpush1.bf16.msra.mxu1 %v5575_v61  ;;  %v5665_v60 = vld [vmem:[%s7494_s1 + $0xfe8] ss:$16 sps:$4 sm:$0xff]   ;;  %v5669_v61 = vld [vmem:[%s7496_s3 + $0x40] sm:$0xff]  }
 0x1c4   :  { %3513 = vmatprep.subr.bf16.mxu0 %v5580_v62  ;;  %3841 = vmatprep.subr.bf16.mxu1 %v5583_v47  ;;  %v5670_v62 = vld [vmem:[%s7496_s3 + $0xc0] sm:$0xff]   ;;  %v128_v47 = vpack.c.bf16 %v7169_v55, %v7169_v55  ;;  %v5674_v55 = vld [vmem:[%s7496_s3 + $0xc8] sm:$0xff]  }
 0x1c5   :  { %3543 = vmatprep.mubr.bf16.mxu0 %v129_v63  ;;  %3871 = vmatprep.mubr.bf16.mxu1 %v129_v63  ;;  %v5671_v63 = vld [vmem:[%s7496_s3] sm:$0xff]  }
 0x1c7   :  { %3514 = vmatpush1.bf16.msra.mxu0 %v5578_v0  ;;  %3842 = vmatpush1.bf16.msra.mxu1 %v5581_v1  ;;  %v5672_v0 = vld [vmem:[%s7496_s3 + $0x80] sm:$0xff]   ;;  %v5673_v1 = vld [vmem:[%s7496_s3 + $0x48] sm:$0xff]  }
 0x1c8   :  { %3515 = vmatprep.subr.bf16.mxu0 %v5586_v2  ;;  %3843 = vmatprep.subr.bf16.mxu1 %v5589_v3  ;;  %v5675_v2 = vld [vmem:[%s7496_s3 + $0x8] sm:$0xff]  }
 0x1c9   :  { %v5676_v3 = vld [vmem:[%s7496_s3 + $0x88] sm:$0xff]  }
 0x1cb   :  { %3516 = vmatpush1.bf16.msra.mxu0 %v5584_v4  ;;  %3844 = vmatpush1.bf16.msra.mxu1 %v5587_v5  ;;  %v5677_v4 = vld [vmem:[%s7496_s3 + $0x50] sm:$0xff]  }
 0x1cc   :  { %3517 = vmatprep.subr.bf16.mxu0 %v5592_v6  ;;  %3845 = vmatprep.subr.bf16.mxu1 %v5595_v7  ;;  %v5678_v5 = vld [vmem:[%s7496_s3 + $0xd0] sm:$0xff]  }
 0x1cd   :  { %v5679_v6 = vld [vmem:[%s7496_s3 + $0x10] sm:$0xff]  }
 0x1ce   :  { %v5680_v7 = vld [vmem:[%s7496_s3 + $0x90] sm:$0xff]  }
 0x1cf   :  { %3518 = vmatpush1.bf16.msra.mxu0 %v5590_v8  ;;  %3846 = vmatpush1.bf16.msra.mxu1 %v5593_v10  ;;  %v5681_v8 = vld [vmem:[%s7496_s3 + $0x58] sm:$0xff]  }
 0x1d0   :  { %3519 = vmatprep.subr.bf16.mxu0 %v5598_v11  ;;  %3847 = vmatprep.subr.bf16.mxu1 %v5601_v12  ;;  %v5682_v10 = vld [vmem:[%s7496_s3 + $0xd8] sm:$0xff]  }
 0x1d1   :  { %v5683_v11 = vld [vmem:[%s7496_s3 + $0x18] sm:$0xff]  }
 0x1d2   :  { %v5684_v12 = vld [vmem:[%s7496_s3 + $0x98] sm:$0xff]  }
 0x1d3   :  { %3520 = vmatpush1.bf16.msra.mxu0 %v5596_v13  ;;  %3848 = vmatpush1.bf16.msra.mxu1 %v5599_v14  ;;  %v5685_v13 = vld [vmem:[%s7496_s3 + $0x60] sm:$0xff]  }
 0x1d4   :  { %3521 = vmatprep.subr.bf16.mxu0 %v5604_v15  ;;  %3849 = vmatprep.subr.bf16.mxu1 %v5607_v16  ;;  %v5686_v14 = vld [vmem:[%s7496_s3 + $0xe0] sm:$0xff]  }
 0x1d5   :  { %v5687_v15 = vld [vmem:[%s7496_s3 + $0x20] sm:$0xff]  }
 0x1d6   :  { %v5688_v16 = vld [vmem:[%s7496_s3 + $0xa0] sm:$0xff]  }
 0x1d7   :  { %3522 = vmatpush1.bf16.msra.mxu0 %v5602_v17  ;;  %3850 = vmatpush1.bf16.msra.mxu1 %v5605_v18  ;;  %v5689_v17 = vld [vmem:[%s7496_s3 + $0x68] sm:$0xff]  }
 0x1d8   :  { %3523 = vmatprep.subr.bf16.mxu0 %v5610_v19  ;;  %3851 = vmatprep.subr.bf16.mxu1 %v5613_v20  ;;  %v5690_v18 = vld [vmem:[%s7496_s3 + $0xe8] sm:$0xff]  }
 0x1d9   :  { %v5691_v19 = vld [vmem:[%s7496_s3 + $0x28] sm:$0xff]  }
 0x1da   :  { %v5692_v20 = vld [vmem:[%s7496_s3 + $0xa8] sm:$0xff]  }
 0x1db   :  { %3524 = vmatpush1.bf16.msra.mxu0 %v5608_v21  ;;  %3852 = vmatpush1.bf16.msra.mxu1 %v5611_v22  ;;  %v5693_v21 = vld [vmem:[%s7496_s3 + $0x70] sm:$0xff]  }
 0x1dc   :  { %3525 = vmatprep.subr.bf16.mxu0 %v5616_v23  ;;  %3853 = vmatprep.subr.bf16.mxu1 %v5619_v9  ;;  %v5694_v22 = vld [vmem:[%s7496_s3 + $0xf0] sm:$0xff]  }
 0x1dd   :  { %v5695_v23 = vld [vmem:[%s7496_s3 + $0x30] sm:$0xff]  }
 0x1de   :  { %v5696_v9 = vld [vmem:[%s7496_s3 + $0xb0] sm:$0xff]  }
 0x1df   :  { %3526 = vmatpush1.bf16.msra.mxu0 %v5614_v26  ;;  %3854 = vmatpush1.bf16.msra.mxu1 %v5617_v27  ;;  %v5697_v26 = vld [vmem:[%s7496_s3 + $0x78] sm:$0xff]  }
 0x1e0   :  { %3527 = vmatprep.subr.bf16.mxu0 %v5622_v29  ;;  %3855 = vmatprep.subr.bf16.mxu1 %v5625_v30  ;;  %v5698_v27 = vld [vmem:[%s7496_s3 + $0xf8] sm:$0xff]  }
 0x1e1   :  { %v5699_v29 = vld [vmem:[%s7496_s3 + $0x38] sm:$0xff]  }
 0x1e2   :  { %v5700_v30 = vld [vmem:[%s7496_s3 + $0xb8] sm:$0xff]  }
 0x1e3   :  { %3528 = vmatpush1.bf16.msra.mxu0 %v5620_v31  ;;  %3856 = vmatpush1.bf16.msra.mxu1 %v5623_v33  ;;  %v646_v31 = vsub.s32 0, %v5874_v43  ;;  %v654_v33 = vsub.s32 2, %v5874_v43 }
 0x1e4   :  { %3529 = vmatprep.subr.bf16.mxu0 %v5628_v25  ;;  %3857 = vmatprep.subr.bf16.mxu1 %v5631_v34  ;;  %v642_v25 = vld [vmem:[%s7495_s2] sm:$0xf]  ;;  %v650_v34 = vsub.s32 1, %v5874_v43 }
 0x1e7   :  { %3530 = vmatpush1.bf16.msra.mxu0 %v5626_v35  ;;  %3858 = vmatpush1.bf16.msra.mxu1 %v5629_v36  ;;  %v658_v35 = vsub.s32 3, %v5874_v43  ;;  %v647_v36 = vrot.slane %v642_v25, %v646_v31 }
 0x1e8   :  { %3531 = vmatprep.subr.bf16.mxu0 %v5634_v37  ;;  %3859 = vmatprep.subr.bf16.mxu1 %v5637_v38  ;;  %v655_v37 = vrot.slane %v642_v25, %v654_v33  ;;  %v651_v38 = vrot.slane %v642_v25, %v650_v34 }
 0x1eb   :  { %3532 = vmatpush1.bf16.msra.mxu0 %v5632_v28  ;;  %3860 = vmatpush1.bf16.msra.mxu1 %v5635_v40  ;;  %v659_v28 = vrot.slane %v642_v25, %v658_v35 }
 0x1ec   :  { %3533 = vmatprep.subr.bf16.mxu0 %v5640_v41  ;;  %3861 = vmatprep.subr.bf16.mxu1 %v5643_v24 }
 0x1ef   :  { %3534 = vmatpush1.bf16.msra.mxu0 %v5638_v44  ;;  %3862 = vmatpush1.bf16.msra.mxu1 %v5641_v45 }
 0x1f0   :  { %3535 = vmatprep.subr.bf16.mxu0 %v5646_v46  ;;  %3863 = vmatprep.subr.bf16.mxu1 %v5649_v48 }
 0x1f3   :  { %3536 = vmatpush1.bf16.msra.mxu0 %v5644_v32  ;;  %3864 = vmatpush1.bf16.msra.mxu1 %v5647_v50 }
 0x1f4   :  { %3537 = vmatprep.subr.bf16.mxu0 %v5652_v51  ;;  %3865 = vmatprep.subr.bf16.mxu1 %v5655_v52 }
 0x1f7   :  { %3538 = vmatpush1.bf16.msra.mxu0 %v5650_v53  ;;  %3866 = vmatpush1.bf16.msra.mxu1 %v5653_v54 }
 0x1f8   :  { %3539 = vmatprep.subr.bf16.mxu0 %v5658_v42  ;;  %3867 = vmatprep.subr.bf16.mxu1 %v5661_v56 }
 0x1fb   :  { %3540 = vmatpush1.bf16.msra.mxu0 %v5656_v39  ;;  %3868 = vmatpush1.bf16.msra.mxu1 %v5659_v57 }
 0x1fc   :  { %3541 = vmatprep.subr.bf16.mxu0 %v5664_v49  ;;  %3869 = vmatprep.subr.bf16.mxu1 %v5667_v58 }
 0x1ff   :  { %3542 = vmatpush1.bf16.msra.mxu0 %v5662_v59  ;;  %3870 = vmatpush1.bf16.msra.mxu1 %v5665_v60 }
 0x200   :  { %4791 = vmatprep.subr.bf16.mxu0 %v5669_v61  ;;  %4813 = vmatprep.subr.bf16.mxu1 %v5670_v62  ;;  %v4758_v61 = vld [vmem:[%s7497_s4] ss:$0 sm:$0xff] }
 0x202   :  { %3544 = vmatmul.mubr.bf16.vlgmr.msra.gmra.mrb[0].mxu0 %v128_v47  ;;  %3872 = vmatmul.mubr.bf16.vlgmr.msra.gmra.mrb[0].mxu1 %v128_v47 }
 0x203   :  { %4792 = vmatpush3.bf16.msra.mxu0 %v5671_v63  ;;  %4814 = vmatpush3.bf16.msra.mxu1 %v5672_v0 }
 0x204   :  { %4793 = vmatprep.subr.bf16.mxu0 %v5673_v1  ;;  %4815 = vmatprep.subr.bf16.mxu1 %v5674_v55 }
 0x207   :  { %4794 = vmatpush3.bf16.msra.mxu0 %v5675_v2  ;;  %4816 = vmatpush3.bf16.msra.mxu1 %v5676_v3 }
 0x208   :  { %4795 = vmatprep.subr.bf16.mxu0 %v5677_v4  ;;  %4817 = vmatprep.subr.bf16.mxu1 %v5678_v5 }
 0x20b   :  { %4796 = vmatpush3.bf16.msra.mxu0 %v5679_v6  ;;  %4818 = vmatpush3.bf16.msra.mxu1 %v5680_v7 }
 0x20c   :  { %4797 = vmatprep.subr.bf16.mxu0 %v5681_v8  ;;  %4819 = vmatprep.subr.bf16.mxu1 %v5682_v10 }
 0x20f   :  { %4798 = vmatpush3.bf16.msra.mxu0 %v5683_v11  ;;  %4820 = vmatpush3.bf16.msra.mxu1 %v5684_v12 }
 0x210   :  { %4799 = vmatprep.subr.bf16.mxu0 %v5685_v13  ;;  %4821 = vmatprep.subr.bf16.mxu1 %v5686_v14 }
 0x213   :  { %4800 = vmatpush3.bf16.msra.mxu0 %v5687_v15  ;;  %4822 = vmatpush3.bf16.msra.mxu1 %v5688_v16 }
 0x214   :  { %4801 = vmatprep.subr.bf16.mxu0 %v5689_v17  ;;  %4823 = vmatprep.subr.bf16.mxu1 %v5690_v18 }
 0x217   :  { %4802 = vmatpush3.bf16.msra.mxu0 %v5691_v19  ;;  %4824 = vmatpush3.bf16.msra.mxu1 %v5692_v20 }
 0x218   :  { %4803 = vmatprep.subr.bf16.mxu0 %v5693_v21  ;;  %4825 = vmatprep.subr.bf16.mxu1 %v5694_v22 }
 0x21b   :  { %4804 = vmatpush3.bf16.msra.mxu0 %v5695_v23  ;;  %4826 = vmatpush3.bf16.msra.mxu1 %v5696_v9 }
 0x21c   :  { %4805 = vmatprep.subr.bf16.mxu0 %v5697_v26  ;;  %4827 = vmatprep.subr.bf16.mxu1 %v5698_v27 }
 0x21f   :  { %4806 = vmatpush3.bf16.msra.mxu0 %v5699_v29  ;;  %4828 = vmatpush3.bf16.msra.mxu1 %v5700_v30 }
 0x2d5   :  { %v3545_v40 = vpop.f32.mrb[0].mxu0  ;;  %v3873_v41 = vpop.f32.mrb[0].mxu1 }
 0x2d6   :  { %v4835_v24 = vadd.f32 %v3545_v40, %v647_v36  ;;  %v4837_v44 = vadd.f32 %v3873_v41, %v655_v37  ;;  %v3547_v45 = vpop.f32.mrb[1].mxu0  ;;  %v3875_v46 = vpop.f32.mrb[1].mxu1 }
 0x2d7   :  { %v4836_v48 = vadd.f32 %v3547_v45, %v651_v38  ;;  %v4838_v32 = vadd.f32 %v3875_v46, %v659_v28  ;;  %v3549_v50 = vpop.f32.mrb[2].mxu0  ;;  %v3877_v51 = vpop.f32.mrb[2].mxu1 }
 0x2d8   :  { %v3880_v52 = vmax.f32 %v4835_v24, 0.0  ;;  %v3882_v53 = vmax.f32 %v4837_v44, 0.0  ;;  %v3550_v54 = vpop.f32.mrb[3].mxu0  ;;  %v3878_v42 = vpop.f32.mrb[3].mxu1 }
 0x2d9   :  { %v3881_v56 = vmax.f32 %v4836_v48, 0.0  ;;  %v3883_v43 = vmax.f32 %v4838_v32, 0.0 }
 0x2da   :  { %v3884_v49 = vpack.c.bf16 %v3880_v52, %v3880_v52  ;;  %v3886_v58 = vpack.c.bf16 %v3882_v53, %v3882_v53 }
 0x2db   :  { %v3885_v39 = vpack.c.bf16 %v3881_v56, %v3881_v56  ;;  %v3887_v57 = vpack.c.bf16 %v3883_v43, %v3883_v43 }
 0x2dd   :  { %4183 = vmatprep.mubr.bf16.mxu0 %v3885_v39  ;;  %4223 = vmatprep.mubr.bf16.mxu1 %v3887_v57 }
 0x2de   :  { %4184 = vmatmul.mubr.bf16.vlgmr.msra.gmra.mrb[4].mxu0 %v3884_v49  ;;  %4224 = vmatmul.mubr.bf16.vlgmr.msra.gmra.mrb[4].mxu1 %v3886_v58 }
 0x3b1   :  { %v4807_v59 = vpop.f32.mrb[4].mxu0  ;;  %v4829_v60 = vpop.f32.mrb[4].mxu1 }
 0x3b2   :  { %v4808_v62 = vpop.f32.mrb[5].mxu0  ;;  %v4830_v47 = vpop.f32.mrb[5].mxu1 }
 0x3b3   :  { %v4809_v63 = vadd.f32 %v4808_v62, %v4807_v59  ;;  %v4831_v0 = vadd.f32 %v4830_v47, %v4829_v60  ;;  %v4810_v1 = vpop.f32.mrb[6].mxu0  ;;  %v4832_v55 = vpop.f32.mrb[6].mxu1 }
 0x3b4   :  { %v4811_v2 = vpop.f32.mrb[7].mxu0  ;;  %v4833_v3 = vpop.f32.mrb[7].mxu1 }
 0x3b5   :  { %v4186_v4 = vadd.f32 %v4809_v63, %v4758_v61 }
 0x3b7   :  { %v4226_v5 = vadd.f32 %v4831_v0, %v4186_v4 }
 0x3b9   :  { %4231 = vst [vmem:[#allocation2] sm:$0x3] %v4226_v5 }
 0x3ba   :  { %5712 = shalt.err (!%p5709_p4)
}
 0x3bb   :  { %s5713_s29 = scalar_lea.hbm %s7498_s5, 32 }
 0x3bc   :  { %p5714_p5 = scmp.ne.s32.totalorder %s7498_s5, %s5713_s29  ;;  %p5717_p6 = scmp.lt.u32.totalorder %s5713_s29, %s7498_s5 }
 0x3be   :  { %p5719_p7 = pnand %p5717_p6, %p5714_p5 }
 0x3c0   :  { %5722 = shalt.err (!%p5719_p7)
}
 0x3c1   :  { %4241 = dma.vmem_to_hbm [thread:$0]  %s4239_s26, 32, %s7498_s5, [#allocation3]  }
 0x3c2   :  { %5723 = dma.done.wait [#allocation3], 32  }
 0x3c3   :  { %5724 = vsyncadd [#allocation3], 4294967264 }
 0x3c4   :  { %4245 = vsyncpa [#allocation3], 1 }

</bundles_post_ra>
